<compile_context>
chip_gen: v6e
topology: v6e:2x2x1
jax: 0.10.0
libtpu: 0.0.40
codegen_flags: <defaults>
</compile_context>

<pallas_src>
import functools

import jax
import jax.numpy as jnp
import numpy as np
from jax.experimental import pallas as pl
from jax.experimental.pallas import tpu as pltpu


def _round_up(v, m):
    return ((v + m - 1) // m) * m


# --------------------------------------------------------------------------
# Fused Pallas kernel (all LSTM layers, both directions, final Linear)
# --------------------------------------------------------------------------
def _make_fused_kernel(num_layers, T, Bp, H, L):
    G = 4 * L  # fused gate width: [i | f | o | g], each block 128-lane aligned

    def kernel(*refs):
        n_in = 1 + 3 * num_layers + 2
        x_ref = refs[0]                              # (T*Bp, I)
        layer_refs = refs[1:1 + 3 * num_layers]      # per layer: wih, whh, bias
        lin_w_ref = refs[1 + 3 * num_layers]         # (L, Opad)
        lin_b_ref = refs[2 + 3 * num_layers]         # (1, Opad)
        out_ref = refs[n_in]                         # (T*Bp, Opad)
        gates_scr, act_scr = refs[n_in + 1:]         # (T*Bp, 4L), (T*Bp, L)

        # Lane masks: within every 128-lane block, lanes [0:H) belong to the
        # forward direction and lanes [H:2H) to the backward direction.
        lane_g = jax.lax.broadcasted_iota(jnp.int32, (Bp, G), 1)
        fwd_g = (lane_g % L) < H                     # fwd lanes of gate buffer
        lane_h = jax.lax.broadcasted_iota(jnp.int32, (Bp, L), 1)
        fwd_h = lane_h < H                           # fwd lanes of hidden state

        def blk(t):
            return slice(t * Bp, (t + 1) * Bp)

        for layer in range(num_layers):
            wih_ref, whh_ref, b_ref = layer_refs[3 * layer:3 * layer + 3]

            # ---- hoisted input projection (all timesteps, both dirs) ------
            if layer == 0:
                raw = jnp.dot(x_ref[...], wih_ref[...],
                              preferred_element_type=jnp.float32) + b_ref[...]
            else:
                raw = jnp.dot(act_scr[...], wih_ref[...],
                              preferred_element_type=jnp.float32) + b_ref[...]

            # ---- time-align bwd lanes (outside the serial recurrence) -----
            # At step t the fused cell consumes x[t] on fwd lanes and
            # x[T-1-t] on bwd lanes.
            for t in range(T):
                gates_scr[blk(t), :] = jnp.where(
                    fwd_g, raw[blk(t), :], raw[blk(T - 1 - t), :])

            # ---- fused bidirectional recurrence ---------------------------
            h = jnp.zeros((Bp, L), jnp.float32)
            c = jnp.zeros((Bp, L), jnp.float32)
            for t in range(T):
                g = gates_scr[blk(t), :] + jnp.dot(
                    h, whh_ref[...], preferred_element_type=jnp.float32)
                # gate blocks (128-lane aligned): [i, f, o, g]
                sg = jax.nn.sigmoid(g[:, 0:3 * L])
                gg = jnp.tanh(g[:, 3 * L:4 * L])
                c = sg[:, L:2 * L] * c + sg[:, 0:L] * gg
                h = sg[:, 2 * L:3 * L] * jnp.tanh(c)
                act_scr[blk(t), :] = h           # step-ordered (bwd reversed)

            # ---- un-reverse the bwd half back to time order ---------------
            for t in range((T + 1) // 2):
                tb = T - 1 - t
                a = act_scr[blk(t), :]
                b = act_scr[blk(tb), :]
                act_scr[blk(t), :] = jnp.where(fwd_h, a, b)
                act_scr[blk(tb), :] = jnp.where(fwd_h, b, a)

        # ---- final Linear, fused (dropout = identity in eval mode) --------
        out_ref[...] = jnp.dot(act_scr[...], lin_w_ref[...],
                               preferred_element_type=jnp.float32) + lin_b_ref[...]

    return kernel


# --------------------------------------------------------------------------
# Host-side weight packing
# --------------------------------------------------------------------------
def _pack_gate_cols(w_f, w_b, H, L):
    """(K, 4H) per direction in PyTorch gate order (i, f, g, o) ->
    (K, 4L) fused [i, f, o, g] blocks, each block = [fwd(H) | bwd(H) | pad]."""
    K = w_f.shape[0]
    out = jnp.zeros((K, 4 * L), jnp.float32)
    for tgt, src in enumerate((0, 1, 3, 2)):          # i, f, o, g
        out = out.at[:, tgt * L:tgt * L + H].set(w_f[:, src * H:(src + 1) * H])
        out = out.at[:, tgt * L + H:tgt * L + 2 * H].set(
            w_b[:, src * H:(src + 1) * H])
    return out


def _pack_whh(whh_f, whh_b, H, L):
    """Block-diagonal fused recurrent weight (L, 4L)."""
    out = jnp.zeros((L, 4 * L), jnp.float32)
    for tgt, src in enumerate((0, 1, 3, 2)):          # i, f, o, g
        out = out.at[0:H, tgt * L:tgt * L + H].set(
            whh_f[:, src * H:(src + 1) * H])
        out = out.at[H:2 * H, tgt * L + H:tgt * L + 2 * H].set(
            whh_b[:, src * H:(src + 1) * H])
    return out


def _full_spec(shape):
    zeros = (0,) * len(shape)
    return pl.BlockSpec(shape, lambda *_: zeros)


# --------------------------------------------------------------------------
# Wrapper
# --------------------------------------------------------------------------
def model_forward(x, params, num_layers):
    T, B, I = x.shape
    H = params["l0_fwd"][1].shape[0]
    O = params["lin_w"].shape[1]

    Bp = _round_up(max(B, 8), 8)        # sublane-aligned batch
    L = _round_up(2 * H, 128)           # lane-aligned fused hidden width
    Opad = _round_up(O, 128)            # lane-dense output

    # Zero-pad batch so every per-timestep row slice is a full (8, .) tile.
    x_p = jnp.zeros((T, Bp, I), jnp.float32).at[:, :B, :].set(x)
    ops = [x_p.reshape(T * Bp, I)]

    for layer in range(num_layers):
        w_ih_f, w_hh_f, b_f = params[f"l{layer}_fwd"]
        w_ih_b, w_hh_b, b_b = params[f"l{layer}_bwd"]
        wih = _pack_gate_cols(w_ih_f, w_ih_b, H, L)          # (in_dim, 4L)
        if layer > 0:
            # layer input is the L-wide packed activation: pad K rows to L
            wih = jnp.zeros((L, 4 * L), jnp.float32).at[0:2 * H, :].set(wih)
        whh = _pack_whh(w_hh_f, w_hh_b, H, L)                # (L, 4L)
        bias = _pack_gate_cols(b_f, b_b, H, L)               # (1, 4L)
        ops += [wih, whh, bias]

    lin_w = jnp.zeros((L, Opad), jnp.float32).at[0:2 * H, 0:O].set(params["lin_w"])
    lin_b = jnp.zeros((1, Opad), jnp.float32).at[:, 0:O].set(params["lin_b"])
    ops += [lin_w, lin_b]

    kernel = _make_fused_kernel(num_layers, T, Bp, H, L)

    out2d = pl.pallas_call(
        kernel,
        out_shape=jax.ShapeDtypeStruct((T * Bp, Opad), jnp.float32),
        grid_spec=pltpu.PrefetchScalarGridSpec(
            num_scalar_prefetch=0,
            grid=(1,),
            in_specs=[_full_spec(op.shape) for op in ops],
            out_specs=_full_spec((T * Bp, Opad)),
            scratch_shapes=[
                pltpu.VMEM((T * Bp, 4 * L), jnp.float32),  # step-aligned gates
                pltpu.VMEM((T * Bp, L), jnp.float32),      # packed hidden seq
            ],
        ),
        compiler_params=pltpu.CompilerParams(
            dimension_semantics=("arbitrary",)),
    )(*ops)

    return out2d.reshape(T, Bp, Opad)[:, :B, :O]


# --------------------------------------------------------------------------
# Parameter init (deterministic, PyTorch-style uniform ranges; synthetic)
# --------------------------------------------------------------------------
def init_params(key, input_size, hidden_size, output_size, num_layers):
    params = {}
    k_lstm = 1.0 / np.sqrt(hidden_size)
    for layer in range(num_layers):
        in_dim = input_size if layer == 0 else 2 * hidden_size
        for direction in ("fwd", "bwd"):
            key, k1, k2, k3, k4 = jax.random.split(key, 5)
            w_ih = jax.random.uniform(
                k1, (in_dim, 4 * hidden_size), jnp.float32, -k_lstm, k_lstm)
            w_hh = jax.random.uniform(
                k2, (hidden_size, 4 * hidden_size), jnp.float32, -k_lstm, k_lstm)
            b_ih = jax.random.uniform(
                k3, (1, 4 * hidden_size), jnp.float32, -k_lstm, k_lstm)
            b_hh = jax.random.uniform(
                k4, (1, 4 * hidden_size), jnp.float32, -k_lstm, k_lstm)
            params[f"l{layer}_{direction}"] = (w_ih, w_hh, b_ih + b_hh)

    k_lin = 1.0 / np.sqrt(2 * hidden_size)
    key, k1, k2 = jax.random.split(key, 3)
    params["lin_w"] = jax.random.uniform(
        k1, (2 * hidden_size, output_size), jnp.float32, -k_lin, k_lin)
    params["lin_b"] = jax.random.uniform(
        k2, (1, output_size), jnp.float32, -k_lin, k_lin)
    return params


# --------------------------------------------------------------------------
# Pure-JAX reference (PyTorch gate order i, f, g, o; unpermuted weights)
# --------------------------------------------------------------------------
def _ref_lstm_direction(x, w_ih, w_hh, b, *, reverse):
    T, B, _ = x.shape
    H = w_hh.shape[0]
    xs = x[::-1] if reverse else x

    def step(carry, x_t):
        h, c = carry
        gates = x_t @ w_ih + h @ w_hh + b
        i_g, f_g, g_g, o_g = jnp.split(gates, 4, axis=-1)
        i_g = jax.nn.sigmoid(i_g)
        f_g = jax.nn.sigmoid(f_g)
        g_g = jnp.tanh(g_g)
        o_g = jax.nn.sigmoid(o_g)
        c = f_g * c + i_g * g_g
        h = o_g * jnp.tanh(c)
        return (h, c), h

    init = (jnp.zeros((B, H), jnp.float32), jnp.zeros((B, H), jnp.float32))
    _, hs = jax.lax.scan(step, init, xs)
    return hs[::-1] if reverse else hs


def ref_forward(x, params, num_layers):
    layer_in = x
    for layer in range(num_layers):
        w_ih_f, w_hh_f, b_f = params[f"l{layer}_fwd"]
        w_ih_b, w_hh_b, b_b = params[f"l{layer}_bwd"]
        h_fwd = _ref_lstm_direction(layer_in, w_ih_f, w_hh_f, b_f, reverse=False)
        h_bwd = _ref_lstm_direction(layer_in, w_ih_b, w_hh_b, b_b, reverse=True)
        layer_in = jnp.concatenate([h_fwd, h_bwd], axis=-1)
    return layer_in @ params["lin_w"] + params["lin_b"]


# --------------------------------------------------------------------------
if __name__ == "__main__":
    # Small shapes consistent with the module's forward:
    # input (T, B, input_size), output (T, B, output_size).
    T, B = 8, 2
    INPUT_SIZE, HIDDEN_SIZE, OUTPUT_SIZE, NUM_LAYERS = 16, 32, 16, 2

    key = jax.random.PRNGKey(0)
    key, xk = jax.random.split(key)
    x = jax.random.normal(xk, (T, B, INPUT_SIZE), dtype=jnp.float32)

    params = init_params(key, INPUT_SIZE, HIDDEN_SIZE, OUTPUT_SIZE, NUM_LAYERS)

    fwd = jax.jit(functools.partial(model_forward, num_layers=NUM_LAYERS))
    out = fwd(x, params)
    out = jax.block_until_ready(out)

    assert out.shape == (T, B, OUTPUT_SIZE), out.shape
    assert out.dtype == jnp.float32

    # Silent correctness check vs. pure-JAX reference.
    ref = jax.block_until_ready(ref_forward(x, params, NUM_LAYERS))
    np.testing.assert_allclose(np.asarray(out), np.asarray(ref),
                               rtol=1e-4, atol=1e-4)

    print("KERNEL_OK")
</pallas_src>

<mosaic_0001>
module attributes {stable_mosaic.version = 11 : i64} {
  func.func @kernel(%arg0: i32, %arg1: memref<64x16xf32, #tpu.memory_space<vmem>>, %arg2: memref<16x512xf32, #tpu.memory_space<vmem>>, %arg3: memref<128x512xf32, #tpu.memory_space<vmem>>, %arg4: memref<1x512xf32, #tpu.memory_space<vmem>>, %arg5: memref<128x512xf32, #tpu.memory_space<vmem>>, %arg6: memref<128x512xf32, #tpu.memory_space<vmem>>, %arg7: memref<1x512xf32, #tpu.memory_space<vmem>>, %arg8: memref<128x128xf32, #tpu.memory_space<vmem>>, %arg9: memref<1x128xf32, #tpu.memory_space<vmem>>, %arg10: memref<64x128xf32, #tpu.memory_space<vmem>>, %arg11: memref<64x512xf32, #tpu.memory_space<vmem>>, %arg12: memref<64x128xf32, #tpu.memory_space<vmem>>) attributes {dimension_semantics = [#tpu.dimension_semantics<arbitrary>], iteration_bounds = array<i64: 1>, scalar_prefetch = 0 : i64, scratch_operands = 2 : i64, tpu.core_type = #tpu.core_type<tc>, window_params = [{pipeline_mode = #tpu.pipeline_mode<synchronous>, transform_indices = @transform_0, window_bounds = array<i64: 64, 16>}, {pipeline_mode = #tpu.pipeline_mode<synchronous>, transform_indices = @transform_1, window_bounds = array<i64: 16, 512>}, {pipeline_mode = #tpu.pipeline_mode<synchronous>, transform_indices = @transform_2, window_bounds = array<i64: 128, 512>}, {pipeline_mode = #tpu.pipeline_mode<synchronous>, transform_indices = @transform_3, window_bounds = array<i64: 1, 512>}, {pipeline_mode = #tpu.pipeline_mode<synchronous>, transform_indices = @transform_4, window_bounds = array<i64: 128, 512>}, {pipeline_mode = #tpu.pipeline_mode<synchronous>, transform_indices = @transform_5, window_bounds = array<i64: 128, 512>}, {pipeline_mode = #tpu.pipeline_mode<synchronous>, transform_indices = @transform_6, window_bounds = array<i64: 1, 512>}, {pipeline_mode = #tpu.pipeline_mode<synchronous>, transform_indices = @transform_7, window_bounds = array<i64: 128, 128>}, {pipeline_mode = #tpu.pipeline_mode<synchronous>, transform_indices = @transform_8, window_bounds = array<i64: 1, 128>}, {pipeline_mode = #tpu.pipeline_mode<synchronous>, transform_indices = @transform_9, window_bounds = array<i64: 64, 128>}]} {
    %0 = tpu.iota {dimensions = array<i32: 1>} : vector<8x512xi32>
    %c128_i32 = arith.constant 128 : i32
    %c0_i32 = arith.constant 0 : i32
    %1 = arith.cmpi eq, %c128_i32, %c0_i32 : i32
    %c1_i32 = arith.constant 1 : i32
    %2 = arith.select %1, %c1_i32, %c128_i32 : i32
    %3 = vector.broadcast %2 : i32 to vector<8x512xi32>
    %4 = arith.remsi %0, %3 : vector<8x512xi32>
    %c0_i32_0 = arith.constant 0 : i32
    %5 = vector.broadcast %c0_i32_0 : i32 to vector<8x512xi32>
    %6 = arith.cmpi ne, %4, %5 : vector<8x512xi32>
    %c0_i32_1 = arith.constant 0 : i32
    %7 = vector.broadcast %c0_i32_1 : i32 to vector<8x512xi32>
    %8 = arith.cmpi slt, %4, %7 : vector<8x512xi32>
    %c0_i32_2 = arith.constant 0 : i32
    %9 = arith.cmpi slt, %2, %c0_i32_2 : i32
    %10 = vector.broadcast %9 : i1 to vector<8x512xi1>
    %11 = vector.broadcast %10 : vector<8x512xi1> to vector<8x512xi1>
    %12 = arith.xori %8, %11 : vector<8x512xi1>
    %13 = arith.andi %12, %6 : vector<8x512xi1>
    %14 = vector.broadcast %2 : i32 to vector<8x512xi32>
    %15 = arith.addi %4, %14 : vector<8x512xi32>
    %16 = arith.select %13, %15, %4 : vector<8x512xi1>, vector<8x512xi32>
    %c32_i32 = arith.constant 32 : i32
    %17 = vector.broadcast %c32_i32 : i32 to vector<8x512xi32>
    %18 = arith.cmpi slt, %16, %17 : vector<8x512xi32>
    %19 = tpu.iota {dimensions = array<i32: 1>} : vector<8x128xi32>
    %c32_i32_3 = arith.constant 32 : i32
    %20 = vector.broadcast %c32_i32_3 : i32 to vector<8x128xi32>
    %21 = arith.cmpi slt, %19, %20 : vector<8x128xi32>
    %c0 = arith.constant 0 : index
    %c0_4 = arith.constant 0 : index
    %22 = vector.load %arg1[%c0, %c0_4] : memref<64x16xf32, #tpu.memory_space<vmem>>, vector<64x16xf32>
    %c0_5 = arith.constant 0 : index
    %c0_6 = arith.constant 0 : index
    %23 = vector.load %arg2[%c0_5, %c0_6] : memref<16x512xf32, #tpu.memory_space<vmem>>, vector<16x512xf32>
    %cst = arith.constant dense<0.000000e+00> : vector<64x512xf32>
    %24 = tpu.matmul %22, %23, %cst {dimension_numbers = #tpu.dot_dimension_numbers<[1], [0], [0], [1], [0, 0, 1, 1], [], []>} : vector<64x16xf32>, vector<16x512xf32>, vector<64x512xf32> -> vector<64x512xf32>
    %c0_7 = arith.constant 0 : index
    %c0_8 = arith.constant 0 : index
    %25 = vector.load %arg4[%c0_7, %c0_8] : memref<1x512xf32, #tpu.memory_space<vmem>>, vector<1x512xf32>
    %26 = vector.broadcast %25 : vector<1x512xf32> to vector<64x512xf32>
    %27 = arith.addf %24, %26 : vector<64x512xf32>
    %28 = vector.extract_strided_slice %27 {offsets = [0, 0], sizes = [8, 512], strides = [1, 1]} : vector<64x512xf32> to vector<8x512xf32>
    %29 = vector.extract_strided_slice %27 {offsets = [56, 0], sizes = [8, 512], strides = [1, 1]} : vector<64x512xf32> to vector<8x512xf32>
    %30 = arith.select %18, %28, %29 : vector<8x512xi1>, vector<8x512xf32>
    %c0_9 = arith.constant 0 : index
    %c0_10 = arith.constant 0 : index
    %31 = vector.load %arg11[%c0_9, %c0_10] : memref<64x512xf32, #tpu.memory_space<vmem>>, vector<8x512xf32>
    tpu.vector_store %arg11[%c0_9, %c0_10], %30 {strides = array<i32>} : memref<64x512xf32, #tpu.memory_space<vmem>>, vector<8x512xf32>,
    %32 = vector.extract_strided_slice %27 {offsets = [8, 0], sizes = [8, 512], strides = [1, 1]} : vector<64x512xf32> to vector<8x512xf32>
    %33 = vector.extract_strided_slice %27 {offsets = [48, 0], sizes = [8, 512], strides = [1, 1]} : vector<64x512xf32> to vector<8x512xf32>
    %34 = arith.select %18, %32, %33 : vector<8x512xi1>, vector<8x512xf32>
    %c8 = arith.constant 8 : index
    %c0_11 = arith.constant 0 : index
    %35 = vector.load %arg11[%c8, %c0_11] : memref<64x512xf32, #tpu.memory_space<vmem>>, vector<8x512xf32>
    tpu.vector_store %arg11[%c8, %c0_11], %34 {strides = array<i32>} : memref<64x512xf32, #tpu.memory_space<vmem>>, vector<8x512xf32>,
    %36 = vector.extract_strided_slice %27 {offsets = [16, 0], sizes = [8, 512], strides = [1, 1]} : vector<64x512xf32> to vector<8x512xf32>
    %37 = vector.extract_strided_slice %27 {offsets = [40, 0], sizes = [8, 512], strides = [1, 1]} : vector<64x512xf32> to vector<8x512xf32>
    %38 = arith.select %18, %36, %37 : vector<8x512xi1>, vector<8x512xf32>
    %c16 = arith.constant 16 : index
    %c0_12 = arith.constant 0 : index
    %39 = vector.load %arg11[%c16, %c0_12] : memref<64x512xf32, #tpu.memory_space<vmem>>, vector<8x512xf32>
    tpu.vector_store %arg11[%c16, %c0_12], %38 {strides = array<i32>} : memref<64x512xf32, #tpu.memory_space<vmem>>, vector<8x512xf32>,
    %40 = vector.extract_strided_slice %27 {offsets = [24, 0], sizes = [8, 512], strides = [1, 1]} : vector<64x512xf32> to vector<8x512xf32>
    %41 = vector.extract_strided_slice %27 {offsets = [32, 0], sizes = [8, 512], strides = [1, 1]} : vector<64x512xf32> to vector<8x512xf32>
    %42 = arith.select %18, %40, %41 : vector<8x512xi1>, vector<8x512xf32>
    %c24 = arith.constant 24 : index
    %c0_13 = arith.constant 0 : index
    %43 = vector.load %arg11[%c24, %c0_13] : memref<64x512xf32, #tpu.memory_space<vmem>>, vector<8x512xf32>
    tpu.vector_store %arg11[%c24, %c0_13], %42 {strides = array<i32>} : memref<64x512xf32, #tpu.memory_space<vmem>>, vector<8x512xf32>,
    %44 = vector.extract_strided_slice %27 {offsets = [32, 0], sizes = [8, 512], strides = [1, 1]} : vector<64x512xf32> to vector<8x512xf32>
    %45 = vector.extract_strided_slice %27 {offsets = [24, 0], sizes = [8, 512], strides = [1, 1]} : vector<64x512xf32> to vector<8x512xf32>
    %46 = arith.select %18, %44, %45 : vector<8x512xi1>, vector<8x512xf32>
    %c32 = arith.constant 32 : index
    %c0_14 = arith.constant 0 : index
    %47 = vector.load %arg11[%c32, %c0_14] : memref<64x512xf32, #tpu.memory_space<vmem>>, vector<8x512xf32>
    tpu.vector_store %arg11[%c32, %c0_14], %46 {strides = array<i32>} : memref<64x512xf32, #tpu.memory_space<vmem>>, vector<8x512xf32>,
    %48 = vector.extract_strided_slice %27 {offsets = [40, 0], sizes = [8, 512], strides = [1, 1]} : vector<64x512xf32> to vector<8x512xf32>
    %49 = vector.extract_strided_slice %27 {offsets = [16, 0], sizes = [8, 512], strides = [1, 1]} : vector<64x512xf32> to vector<8x512xf32>
    %50 = arith.select %18, %48, %49 : vector<8x512xi1>, vector<8x512xf32>
    %c40 = arith.constant 40 : index
    %c0_15 = arith.constant 0 : index
    %51 = vector.load %arg11[%c40, %c0_15] : memref<64x512xf32, #tpu.memory_space<vmem>>, vector<8x512xf32>
    tpu.vector_store %arg11[%c40, %c0_15], %50 {strides = array<i32>} : memref<64x512xf32, #tpu.memory_space<vmem>>, vector<8x512xf32>,
    %52 = vector.extract_strided_slice %27 {offsets = [48, 0], sizes = [8, 512], strides = [1, 1]} : vector<64x512xf32> to vector<8x512xf32>
    %53 = vector.extract_strided_slice %27 {offsets = [8, 0], sizes = [8, 512], strides = [1, 1]} : vector<64x512xf32> to vector<8x512xf32>
    %54 = arith.select %18, %52, %53 : vector<8x512xi1>, vector<8x512xf32>
    %c48 = arith.constant 48 : index
    %c0_16 = arith.constant 0 : index
    %55 = vector.load %arg11[%c48, %c0_16] : memref<64x512xf32, #tpu.memory_space<vmem>>, vector<8x512xf32>
    tpu.vector_store %arg11[%c48, %c0_16], %54 {strides = array<i32>} : memref<64x512xf32, #tpu.memory_space<vmem>>, vector<8x512xf32>,
    %56 = vector.extract_strided_slice %27 {offsets = [56, 0], sizes = [8, 512], strides = [1, 1]} : vector<64x512xf32> to vector<8x512xf32>
    %57 = vector.extract_strided_slice %27 {offsets = [0, 0], sizes = [8, 512], strides = [1, 1]} : vector<64x512xf32> to vector<8x512xf32>
    %58 = arith.select %18, %56, %57 : vector<8x512xi1>, vector<8x512xf32>
    %c56 = arith.constant 56 : index
    %c0_17 = arith.constant 0 : index
    %59 = vector.load %arg11[%c56, %c0_17] : memref<64x512xf32, #tpu.memory_space<vmem>>, vector<8x512xf32>
    tpu.vector_store %arg11[%c56, %c0_17], %58 {strides = array<i32>} : memref<64x512xf32, #tpu.memory_space<vmem>>, vector<8x512xf32>,
    %cst_18 = arith.constant 0.000000e+00 : f32
    %60 = vector.broadcast %cst_18 : f32 to vector<8x128xf32>
    %cst_19 = arith.constant 0.000000e+00 : f32
    %61 = vector.broadcast %cst_19 : f32 to vector<8x128xf32>
    %c0_20 = arith.constant 0 : index
    %c0_21 = arith.constant 0 : index
    %62 = vector.load %arg11[%c0_20, %c0_21] : memref<64x512xf32, #tpu.memory_space<vmem>>, vector<8x512xf32>
    %c0_22 = arith.constant 0 : index
    %c0_23 = arith.constant 0 : index
    %63 = vector.load %arg3[%c0_22, %c0_23] : memref<128x512xf32, #tpu.memory_space<vmem>>, vector<128x512xf32>
    %cst_24 = arith.constant dense<0.000000e+00> : vector<8x512xf32>
    %64 = tpu.matmul %60, %63, %cst_24 {dimension_numbers = #tpu.dot_dimension_numbers<[1], [0], [0], [1], [0, 0, 1, 1], [], []>} : vector<8x128xf32>, vector<128x512xf32>, vector<8x512xf32> -> vector<8x512xf32>
    %65 = arith.addf %62, %64 : vector<8x512xf32>
    %66 = vector.extract_strided_slice %65 {offsets = [0, 0], sizes = [8, 384], strides = [1, 1]} : vector<8x512xf32> to vector<8x384xf32>
    %67 = arith.negf %66 : vector<8x384xf32>
    %68 = math.exp %67 : vector<8x384xf32>
    %cst_25 = arith.constant 1.000000e+00 : f32
    %69 = vector.broadcast %cst_25 : f32 to vector<8x384xf32>
    %70 = arith.addf %69, %68 : vector<8x384xf32>
    %71 = arith.divf %69, %70 : vector<8x384xf32>
    %72 = vector.extract_strided_slice %65 {offsets = [0, 384], sizes = [8, 128], strides = [1, 1]} : vector<8x512xf32> to vector<8x128xf32>
    %73 = math.tanh %72 : vector<8x128xf32>
    %74 = vector.extract_strided_slice %71 {offsets = [0, 128], sizes = [8, 128], strides = [1, 1]} : vector<8x384xf32> to vector<8x128xf32>
    %75 = arith.mulf %74, %61 : vector<8x128xf32>
    %76 = vector.extract_strided_slice %71 {offsets = [0, 0], sizes = [8, 128], strides = [1, 1]} : vector<8x384xf32> to vector<8x128xf32>
    %77 = arith.mulf %76, %73 : vector<8x128xf32>
    %78 = arith.addf %75, %77 : vector<8x128xf32>
    %79 = vector.extract_strided_slice %71 {offsets = [0, 256], sizes = [8, 128], strides = [1, 1]} : vector<8x384xf32> to vector<8x128xf32>
    %80 = math.tanh %78 : vector<8x128xf32>
    %81 = arith.mulf %79, %80 : vector<8x128xf32>
    %c0_26 = arith.constant 0 : index
    %c0_27 = arith.constant 0 : index
    %82 = vector.load %arg12[%c0_26, %c0_27] : memref<64x128xf32, #tpu.memory_space<vmem>>, vector<8x128xf32>
    tpu.vector_store %arg12[%c0_26, %c0_27], %81 {strides = array<i32>} : memref<64x128xf32, #tpu.memory_space<vmem>>, vector<8x128xf32>,
    %c8_28 = arith.constant 8 : index
    %c0_29 = arith.constant 0 : index
    %83 = vector.load %arg11[%c8_28, %c0_29] : memref<64x512xf32, #tpu.memory_space<vmem>>, vector<8x512xf32>
    %c0_30 = arith.constant 0 : index
    %c0_31 = arith.constant 0 : index
    %84 = vector.load %arg3[%c0_30, %c0_31] : memref<128x512xf32, #tpu.memory_space<vmem>>, vector<128x512xf32>
    %cst_32 = arith.constant dense<0.000000e+00> : vector<8x512xf32>
    %85 = tpu.matmul %81, %84, %cst_32 {dimension_numbers = #tpu.dot_dimension_numbers<[1], [0], [0], [1], [0, 0, 1, 1], [], []>} : vector<8x128xf32>, vector<128x512xf32>, vector<8x512xf32> -> vector<8x512xf32>
    %86 = arith.addf %83, %85 : vector<8x512xf32>
    %87 = vector.extract_strided_slice %86 {offsets = [0, 0], sizes = [8, 384], strides = [1, 1]} : vector<8x512xf32> to vector<8x384xf32>
    %88 = arith.negf %87 : vector<8x384xf32>
    %89 = math.exp %88 : vector<8x384xf32>
    %cst_33 = arith.constant 1.000000e+00 : f32
    %90 = vector.broadcast %cst_33 : f32 to vector<8x384xf32>
    %91 = arith.addf %90, %89 : vector<8x384xf32>
    %92 = arith.divf %90, %91 : vector<8x384xf32>
    %93 = vector.extract_strided_slice %86 {offsets = [0, 384], sizes = [8, 128], strides = [1, 1]} : vector<8x512xf32> to vector<8x128xf32>
    %94 = math.tanh %93 : vector<8x128xf32>
    %95 = vector.extract_strided_slice %92 {offsets = [0, 128], sizes = [8, 128], strides = [1, 1]} : vector<8x384xf32> to vector<8x128xf32>
    %96 = arith.mulf %95, %78 : vector<8x128xf32>
    %97 = vector.extract_strided_slice %92 {offsets = [0, 0], sizes = [8, 128], strides = [1, 1]} : vector<8x384xf32> to vector<8x128xf32>
    %98 = arith.mulf %97, %94 : vector<8x128xf32>
    %99 = arith.addf %96, %98 : vector<8x128xf32>
    %100 = vector.extract_strided_slice %92 {offsets = [0, 256], sizes = [8, 128], strides = [1, 1]} : vector<8x384xf32> to vector<8x128xf32>
    %101 = math.tanh %99 : vector<8x128xf32>
    %102 = arith.mulf %100, %101 : vector<8x128xf32>
    %c8_34 = arith.constant 8 : index
    %c0_35 = arith.constant 0 : index
    %103 = vector.load %arg12[%c8_34, %c0_35] : memref<64x128xf32, #tpu.memory_space<vmem>>, vector<8x128xf32>
    tpu.vector_store %arg12[%c8_34, %c0_35], %102 {strides = array<i32>} : memref<64x128xf32, #tpu.memory_space<vmem>>, vector<8x128xf32>,
    %c16_36 = arith.constant 16 : index
    %c0_37 = arith.constant 0 : index
    %104 = vector.load %arg11[%c16_36, %c0_37] : memref<64x512xf32, #tpu.memory_space<vmem>>, vector<8x512xf32>
    %c0_38 = arith.constant 0 : index
    %c0_39 = arith.constant 0 : index
    %105 = vector.load %arg3[%c0_38, %c0_39] : memref<128x512xf32, #tpu.memory_space<vmem>>, vector<128x512xf32>
    %cst_40 = arith.constant dense<0.000000e+00> : vector<8x512xf32>
    %106 = tpu.matmul %102, %105, %cst_40 {dimension_numbers = #tpu.dot_dimension_numbers<[1], [0], [0], [1], [0, 0, 1, 1], [], []>} : vector<8x128xf32>, vector<128x512xf32>, vector<8x512xf32> -> vector<8x512xf32>
    %107 = arith.addf %104, %106 : vector<8x512xf32>
    %108 = vector.extract_strided_slice %107 {offsets = [0, 0], sizes = [8, 384], strides = [1, 1]} : vector<8x512xf32> to vector<8x384xf32>
    %109 = arith.negf %108 : vector<8x384xf32>
    %110 = math.exp %109 : vector<8x384xf32>
    %cst_41 = arith.constant 1.000000e+00 : f32
    %111 = vector.broadcast %cst_41 : f32 to vector<8x384xf32>
    %112 = arith.addf %111, %110 : vector<8x384xf32>
    %113 = arith.divf %111, %112 : vector<8x384xf32>
    %114 = vector.extract_strided_slice %107 {offsets = [0, 384], sizes = [8, 128], strides = [1, 1]} : vector<8x512xf32> to vector<8x128xf32>
    %115 = math.tanh %114 : vector<8x128xf32>
    %116 = vector.extract_strided_slice %113 {offsets = [0, 128], sizes = [8, 128], strides = [1, 1]} : vector<8x384xf32> to vector<8x128xf32>
    %117 = arith.mulf %116, %99 : vector<8x128xf32>
    %118 = vector.extract_strided_slice %113 {offsets = [0, 0], sizes = [8, 128], strides = [1, 1]} : vector<8x384xf32> to vector<8x128xf32>
    %119 = arith.mulf %118, %115 : vector<8x128xf32>
    %120 = arith.addf %117, %119 : vector<8x128xf32>
    %121 = vector.extract_strided_slice %113 {offsets = [0, 256], sizes = [8, 128], strides = [1, 1]} : vector<8x384xf32> to vector<8x128xf32>
    %122 = math.tanh %120 : vector<8x128xf32>
    %123 = arith.mulf %121, %122 : vector<8x128xf32>
    %c16_42 = arith.constant 16 : index
    %c0_43 = arith.constant 0 : index
    %124 = vector.load %arg12[%c16_42, %c0_43] : memref<64x128xf32, #tpu.memory_space<vmem>>, vector<8x128xf32>
    tpu.vector_store %arg12[%c16_42, %c0_43], %123 {strides = array<i32>} : memref<64x128xf32, #tpu.memory_space<vmem>>, vector<8x128xf32>,
    %c24_44 = arith.constant 24 : index
    %c0_45 = arith.constant 0 : index
    %125 = vector.load %arg11[%c24_44, %c0_45] : memref<64x512xf32, #tpu.memory_space<vmem>>, vector<8x512xf32>
    %c0_46 = arith.constant 0 : index
    %c0_47 = arith.constant 0 : index
    %126 = vector.load %arg3[%c0_46, %c0_47] : memref<128x512xf32, #tpu.memory_space<vmem>>, vector<128x512xf32>
    %cst_48 = arith.constant dense<0.000000e+00> : vector<8x512xf32>
    %127 = tpu.matmul %123, %126, %cst_48 {dimension_numbers = #tpu.dot_dimension_numbers<[1], [0], [0], [1], [0, 0, 1, 1], [], []>} : vector<8x128xf32>, vector<128x512xf32>, vector<8x512xf32> -> vector<8x512xf32>
    %128 = arith.addf %125, %127 : vector<8x512xf32>
    %129 = vector.extract_strided_slice %128 {offsets = [0, 0], sizes = [8, 384], strides = [1, 1]} : vector<8x512xf32> to vector<8x384xf32>
    %130 = arith.negf %129 : vector<8x384xf32>
    %131 = math.exp %130 : vector<8x384xf32>
    %cst_49 = arith.constant 1.000000e+00 : f32
    %132 = vector.broadcast %cst_49 : f32 to vector<8x384xf32>
    %133 = arith.addf %132, %131 : vector<8x384xf32>
    %134 = arith.divf %132, %133 : vector<8x384xf32>
    %135 = vector.extract_strided_slice %128 {offsets = [0, 384], sizes = [8, 128], strides = [1, 1]} : vector<8x512xf32> to vector<8x128xf32>
    %136 = math.tanh %135 : vector<8x128xf32>
    %137 = vector.extract_strided_slice %134 {offsets = [0, 128], sizes = [8, 128], strides = [1, 1]} : vector<8x384xf32> to vector<8x128xf32>
    %138 = arith.mulf %137, %120 : vector<8x128xf32>
    %139 = vector.extract_strided_slice %134 {offsets = [0, 0], sizes = [8, 128], strides = [1, 1]} : vector<8x384xf32> to vector<8x128xf32>
    %140 = arith.mulf %139, %136 : vector<8x128xf32>
    %141 = arith.addf %138, %140 : vector<8x128xf32>
    %142 = vector.extract_strided_slice %134 {offsets = [0, 256], sizes = [8, 128], strides = [1, 1]} : vector<8x384xf32> to vector<8x128xf32>
    %143 = math.tanh %141 : vector<8x128xf32>
    %144 = arith.mulf %142, %143 : vector<8x128xf32>
    %c24_50 = arith.constant 24 : index
    %c0_51 = arith.constant 0 : index
    %145 = vector.load %arg12[%c24_50, %c0_51] : memref<64x128xf32, #tpu.memory_space<vmem>>, vector<8x128xf32>
    tpu.vector_store %arg12[%c24_50, %c0_51], %144 {strides = array<i32>} : memref<64x128xf32, #tpu.memory_space<vmem>>, vector<8x128xf32>,
    %c32_52 = arith.constant 32 : index
    %c0_53 = arith.constant 0 : index
    %146 = vector.load %arg11[%c32_52, %c0_53] : memref<64x512xf32, #tpu.memory_space<vmem>>, vector<8x512xf32>
    %c0_54 = arith.constant 0 : index
    %c0_55 = arith.constant 0 : index
    %147 = vector.load %arg3[%c0_54, %c0_55] : memref<128x512xf32, #tpu.memory_space<vmem>>, vector<128x512xf32>
    %cst_56 = arith.constant dense<0.000000e+00> : vector<8x512xf32>
    %148 = tpu.matmul %144, %147, %cst_56 {dimension_numbers = #tpu.dot_dimension_numbers<[1], [0], [0], [1], [0, 0, 1, 1], [], []>} : vector<8x128xf32>, vector<128x512xf32>, vector<8x512xf32> -> vector<8x512xf32>
    %149 = arith.addf %146, %148 : vector<8x512xf32>
    %150 = vector.extract_strided_slice %149 {offsets = [0, 0], sizes = [8, 384], strides = [1, 1]} : vector<8x512xf32> to vector<8x384xf32>
    %151 = arith.negf %150 : vector<8x384xf32>
    %152 = math.exp %151 : vector<8x384xf32>
    %cst_57 = arith.constant 1.000000e+00 : f32
    %153 = vector.broadcast %cst_57 : f32 to vector<8x384xf32>
    %154 = arith.addf %153, %152 : vector<8x384xf32>
    %155 = arith.divf %153, %154 : vector<8x384xf32>
    %156 = vector.extract_strided_slice %149 {offsets = [0, 384], sizes = [8, 128], strides = [1, 1]} : vector<8x512xf32> to vector<8x128xf32>
    %157 = math.tanh %156 : vector<8x128xf32>
    %158 = vector.extract_strided_slice %155 {offsets = [0, 128], sizes = [8, 128], strides = [1, 1]} : vector<8x384xf32> to vector<8x128xf32>
    %159 = arith.mulf %158, %141 : vector<8x128xf32>
    %160 = vector.extract_strided_slice %155 {offsets = [0, 0], sizes = [8, 128], strides = [1, 1]} : vector<8x384xf32> to vector<8x128xf32>
    %161 = arith.mulf %160, %157 : vector<8x128xf32>
    %162 = arith.addf %159, %161 : vector<8x128xf32>
    %163 = vector.extract_strided_slice %155 {offsets = [0, 256], sizes = [8, 128], strides = [1, 1]} : vector<8x384xf32> to vector<8x128xf32>
    %164 = math.tanh %162 : vector<8x128xf32>
    %165 = arith.mulf %163, %164 : vector<8x128xf32>
    %c32_58 = arith.constant 32 : index
    %c0_59 = arith.constant 0 : index
    %166 = vector.load %arg12[%c32_58, %c0_59] : memref<64x128xf32, #tpu.memory_space<vmem>>, vector<8x128xf32>
    tpu.vector_store %arg12[%c32_58, %c0_59], %165 {strides = array<i32>} : memref<64x128xf32, #tpu.memory_space<vmem>>, vector<8x128xf32>,
    %c40_60 = arith.constant 40 : index
    %c0_61 = arith.constant 0 : index
    %167 = vector.load %arg11[%c40_60, %c0_61] : memref<64x512xf32, #tpu.memory_space<vmem>>, vector<8x512xf32>
    %c0_62 = arith.constant 0 : index
    %c0_63 = arith.constant 0 : index
    %168 = vector.load %arg3[%c0_62, %c0_63] : memref<128x512xf32, #tpu.memory_space<vmem>>, vector<128x512xf32>
    %cst_64 = arith.constant dense<0.000000e+00> : vector<8x512xf32>
    %169 = tpu.matmul %165, %168, %cst_64 {dimension_numbers = #tpu.dot_dimension_numbers<[1], [0], [0], [1], [0, 0, 1, 1], [], []>} : vector<8x128xf32>, vector<128x512xf32>, vector<8x512xf32> -> vector<8x512xf32>
    %170 = arith.addf %167, %169 : vector<8x512xf32>
    %171 = vector.extract_strided_slice %170 {offsets = [0, 0], sizes = [8, 384], strides = [1, 1]} : vector<8x512xf32> to vector<8x384xf32>
    %172 = arith.negf %171 : vector<8x384xf32>
    %173 = math.exp %172 : vector<8x384xf32>
    %cst_65 = arith.constant 1.000000e+00 : f32
    %174 = vector.broadcast %cst_65 : f32 to vector<8x384xf32>
    %175 = arith.addf %174, %173 : vector<8x384xf32>
    %176 = arith.divf %174, %175 : vector<8x384xf32>
    %177 = vector.extract_strided_slice %170 {offsets = [0, 384], sizes = [8, 128], strides = [1, 1]} : vector<8x512xf32> to vector<8x128xf32>
    %178 = math.tanh %177 : vector<8x128xf32>
    %179 = vector.extract_strided_slice %176 {offsets = [0, 128], sizes = [8, 128], strides = [1, 1]} : vector<8x384xf32> to vector<8x128xf32>
    %180 = arith.mulf %179, %162 : vector<8x128xf32>
    %181 = vector.extract_strided_slice %176 {offsets = [0, 0], sizes = [8, 128], strides = [1, 1]} : vector<8x384xf32> to vector<8x128xf32>
    %182 = arith.mulf %181, %178 : vector<8x128xf32>
    %183 = arith.addf %180, %182 : vector<8x128xf32>
    %184 = vector.extract_strided_slice %176 {offsets = [0, 256], sizes = [8, 128], strides = [1, 1]} : vector<8x384xf32> to vector<8x128xf32>
    %185 = math.tanh %183 : vector<8x128xf32>
    %186 = arith.mulf %184, %185 : vector<8x128xf32>
    %c40_66 = arith.constant 40 : index
    %c0_67 = arith.constant 0 : index
    %187 = vector.load %arg12[%c40_66, %c0_67] : memref<64x128xf32, #tpu.memory_space<vmem>>, vector<8x128xf32>
    tpu.vector_store %arg12[%c40_66, %c0_67], %186 {strides = array<i32>} : memref<64x128xf32, #tpu.memory_space<vmem>>, vector<8x128xf32>,
    %c48_68 = arith.constant 48 : index
    %c0_69 = arith.constant 0 : index
    %188 = vector.load %arg11[%c48_68, %c0_69] : memref<64x512xf32, #tpu.memory_space<vmem>>, vector<8x512xf32>
    %c0_70 = arith.constant 0 : index
    %c0_71 = arith.constant 0 : index
    %189 = vector.load %arg3[%c0_70, %c0_71] : memref<128x512xf32, #tpu.memory_space<vmem>>, vector<128x512xf32>
    %cst_72 = arith.constant dense<0.000000e+00> : vector<8x512xf32>
    %190 = tpu.matmul %186, %189, %cst_72 {dimension_numbers = #tpu.dot_dimension_numbers<[1], [0], [0], [1], [0, 0, 1, 1], [], []>} : vector<8x128xf32>, vector<128x512xf32>, vector<8x512xf32> -> vector<8x512xf32>
    %191 = arith.addf %188, %190 : vector<8x512xf32>
    %192 = vector.extract_strided_slice %191 {offsets = [0, 0], sizes = [8, 384], strides = [1, 1]} : vector<8x512xf32> to vector<8x384xf32>
    %193 = arith.negf %192 : vector<8x384xf32>
    %194 = math.exp %193 : vector<8x384xf32>
    %cst_73 = arith.constant 1.000000e+00 : f32
    %195 = vector.broadcast %cst_73 : f32 to vector<8x384xf32>
    %196 = arith.addf %195, %194 : vector<8x384xf32>
    %197 = arith.divf %195, %196 : vector<8x384xf32>
    %198 = vector.extract_strided_slice %191 {offsets = [0, 384], sizes = [8, 128], strides = [1, 1]} : vector<8x512xf32> to vector<8x128xf32>
    %199 = math.tanh %198 : vector<8x128xf32>
    %200 = vector.extract_strided_slice %197 {offsets = [0, 128], sizes = [8, 128], strides = [1, 1]} : vector<8x384xf32> to vector<8x128xf32>
    %201 = arith.mulf %200, %183 : vector<8x128xf32>
    %202 = vector.extract_strided_slice %197 {offsets = [0, 0], sizes = [8, 128], strides = [1, 1]} : vector<8x384xf32> to vector<8x128xf32>
    %203 = arith.mulf %202, %199 : vector<8x128xf32>
    %204 = arith.addf %201, %203 : vector<8x128xf32>
    %205 = vector.extract_strided_slice %197 {offsets = [0, 256], sizes = [8, 128], strides = [1, 1]} : vector<8x384xf32> to vector<8x128xf32>
    %206 = math.tanh %204 : vector<8x128xf32>
    %207 = arith.mulf %205, %206 : vector<8x128xf32>
    %c48_74 = arith.constant 48 : index
    %c0_75 = arith.constant 0 : index
    %208 = vector.load %arg12[%c48_74, %c0_75] : memref<64x128xf32, #tpu.memory_space<vmem>>, vector<8x128xf32>
    tpu.vector_store %arg12[%c48_74, %c0_75], %207 {strides = array<i32>} : memref<64x128xf32, #tpu.memory_space<vmem>>, vector<8x128xf32>,
    %c56_76 = arith.constant 56 : index
    %c0_77 = arith.constant 0 : index
    %209 = vector.load %arg11[%c56_76, %c0_77] : memref<64x512xf32, #tpu.memory_space<vmem>>, vector<8x512xf32>
    %c0_78 = arith.constant 0 : index
    %c0_79 = arith.constant 0 : index
    %210 = vector.load %arg3[%c0_78, %c0_79] : memref<128x512xf32, #tpu.memory_space<vmem>>, vector<128x512xf32>
    %cst_80 = arith.constant dense<0.000000e+00> : vector<8x512xf32>
    %211 = tpu.matmul %207, %210, %cst_80 {dimension_numbers = #tpu.dot_dimension_numbers<[1], [0], [0], [1], [0, 0, 1, 1], [], []>} : vector<8x128xf32>, vector<128x512xf32>, vector<8x512xf32> -> vector<8x512xf32>
    %212 = arith.addf %209, %211 : vector<8x512xf32>
    %213 = vector.extract_strided_slice %212 {offsets = [0, 0], sizes = [8, 384], strides = [1, 1]} : vector<8x512xf32> to vector<8x384xf32>
    %214 = arith.negf %213 : vector<8x384xf32>
    %215 = math.exp %214 : vector<8x384xf32>
    %cst_81 = arith.constant 1.000000e+00 : f32
    %216 = vector.broadcast %cst_81 : f32 to vector<8x384xf32>
    %217 = arith.addf %216, %215 : vector<8x384xf32>
    %218 = arith.divf %216, %217 : vector<8x384xf32>
    %219 = vector.extract_strided_slice %212 {offsets = [0, 384], sizes = [8, 128], strides = [1, 1]} : vector<8x512xf32> to vector<8x128xf32>
    %220 = math.tanh %219 : vector<8x128xf32>
    %221 = vector.extract_strided_slice %218 {offsets = [0, 128], sizes = [8, 128], strides = [1, 1]} : vector<8x384xf32> to vector<8x128xf32>
    %222 = arith.mulf %221, %204 : vector<8x128xf32>
    %223 = vector.extract_strided_slice %218 {offsets = [0, 0], sizes = [8, 128], strides = [1, 1]} : vector<8x384xf32> to vector<8x128xf32>
    %224 = arith.mulf %223, %220 : vector<8x128xf32>
    %225 = arith.addf %222, %224 : vector<8x128xf32>
    %226 = vector.extract_strided_slice %218 {offsets = [0, 256], sizes = [8, 128], strides = [1, 1]} : vector<8x384xf32> to vector<8x128xf32>
    %227 = math.tanh %225 : vector<8x128xf32>
    %228 = arith.mulf %226, %227 : vector<8x128xf32>
    %c56_82 = arith.constant 56 : index
    %c0_83 = arith.constant 0 : index
    %229 = vector.load %arg12[%c56_82, %c0_83] : memref<64x128xf32, #tpu.memory_space<vmem>>, vector<8x128xf32>
    tpu.vector_store %arg12[%c56_82, %c0_83], %228 {strides = array<i32>} : memref<64x128xf32, #tpu.memory_space<vmem>>, vector<8x128xf32>,
    %c0_84 = arith.constant 0 : index
    %c0_85 = arith.constant 0 : index
    %230 = vector.load %arg12[%c0_84, %c0_85] : memref<64x128xf32, #tpu.memory_space<vmem>>, vector<8x128xf32>
    %c56_86 = arith.constant 56 : index
    %c0_87 = arith.constant 0 : index
    %231 = vector.load %arg12[%c56_86, %c0_87] : memref<64x128xf32, #tpu.memory_space<vmem>>, vector<8x128xf32>
    %232 = arith.select %21, %230, %231 : vector<8x128xi1>, vector<8x128xf32>
    %c0_88 = arith.constant 0 : index
    %c0_89 = arith.constant 0 : index
    %233 = vector.load %arg12[%c0_88, %c0_89] : memref<64x128xf32, #tpu.memory_space<vmem>>, vector<8x128xf32>
    tpu.vector_store %arg12[%c0_88, %c0_89], %232 {strides = array<i32>} : memref<64x128xf32, #tpu.memory_space<vmem>>, vector<8x128xf32>,
    %234 = arith.select %21, %231, %230 : vector<8x128xi1>, vector<8x128xf32>
    %c56_90 = arith.constant 56 : index
    %c0_91 = arith.constant 0 : index
    %235 = vector.load %arg12[%c56_90, %c0_91] : memref<64x128xf32, #tpu.memory_space<vmem>>, vector<8x128xf32>
    tpu.vector_store %arg12[%c56_90, %c0_91], %234 {strides = array<i32>} : memref<64x128xf32, #tpu.memory_space<vmem>>, vector<8x128xf32>,
    %c8_92 = arith.constant 8 : index
    %c0_93 = arith.constant 0 : index
    %236 = vector.load %arg12[%c8_92, %c0_93] : memref<64x128xf32, #tpu.memory_space<vmem>>, vector<8x128xf32>
    %c48_94 = arith.constant 48 : index
    %c0_95 = arith.constant 0 : index
    %237 = vector.load %arg12[%c48_94, %c0_95] : memref<64x128xf32, #tpu.memory_space<vmem>>, vector<8x128xf32>
    %238 = arith.select %21, %236, %237 : vector<8x128xi1>, vector<8x128xf32>
    %c8_96 = arith.constant 8 : index
    %c0_97 = arith.constant 0 : index
    %239 = vector.load %arg12[%c8_96, %c0_97] : memref<64x128xf32, #tpu.memory_space<vmem>>, vector<8x128xf32>
    tpu.vector_store %arg12[%c8_96, %c0_97], %238 {strides = array<i32>} : memref<64x128xf32, #tpu.memory_space<vmem>>, vector<8x128xf32>,
    %240 = arith.select %21, %237, %236 : vector<8x128xi1>, vector<8x128xf32>
    %c48_98 = arith.constant 48 : index
    %c0_99 = arith.constant 0 : index
    %241 = vector.load %arg12[%c48_98, %c0_99] : memref<64x128xf32, #tpu.memory_space<vmem>>, vector<8x128xf32>
    tpu.vector_store %arg12[%c48_98, %c0_99], %240 {strides = array<i32>} : memref<64x128xf32, #tpu.memory_space<vmem>>, vector<8x128xf32>,
    %c16_100 = arith.constant 16 : index
    %c0_101 = arith.constant 0 : index
    %242 = vector.load %arg12[%c16_100, %c0_101] : memref<64x128xf32, #tpu.memory_space<vmem>>, vector<8x128xf32>
    %c40_102 = arith.constant 40 : index
    %c0_103 = arith.constant 0 : index
    %243 = vector.load %arg12[%c40_102, %c0_103] : memref<64x128xf32, #tpu.memory_space<vmem>>, vector<8x128xf32>
    %244 = arith.select %21, %242, %243 : vector<8x128xi1>, vector<8x128xf32>
    %c16_104 = arith.constant 16 : index
    %c0_105 = arith.constant 0 : index
    %245 = vector.load %arg12[%c16_104, %c0_105] : memref<64x128xf32, #tpu.memory_space<vmem>>, vector<8x128xf32>
    tpu.vector_store %arg12[%c16_104, %c0_105], %244 {strides = array<i32>} : memref<64x128xf32, #tpu.memory_space<vmem>>, vector<8x128xf32>,
    %246 = arith.select %21, %243, %242 : vector<8x128xi1>, vector<8x128xf32>
    %c40_106 = arith.constant 40 : index
    %c0_107 = arith.constant 0 : index
    %247 = vector.load %arg12[%c40_106, %c0_107] : memref<64x128xf32, #tpu.memory_space<vmem>>, vector<8x128xf32>
    tpu.vector_store %arg12[%c40_106, %c0_107], %246 {strides = array<i32>} : memref<64x128xf32, #tpu.memory_space<vmem>>, vector<8x128xf32>,
    %c24_108 = arith.constant 24 : index
    %c0_109 = arith.constant 0 : index
    %248 = vector.load %arg12[%c24_108, %c0_109] : memref<64x128xf32, #tpu.memory_space<vmem>>, vector<8x128xf32>
    %c32_110 = arith.constant 32 : index
    %c0_111 = arith.constant 0 : index
    %249 = vector.load %arg12[%c32_110, %c0_111] : memref<64x128xf32, #tpu.memory_space<vmem>>, vector<8x128xf32>
    %250 = arith.select %21, %248, %249 : vector<8x128xi1>, vector<8x128xf32>
    %c24_112 = arith.constant 24 : index
    %c0_113 = arith.constant 0 : index
    %251 = vector.load %arg12[%c24_112, %c0_113] : memref<64x128xf32, #tpu.memory_space<vmem>>, vector<8x128xf32>
    tpu.vector_store %arg12[%c24_112, %c0_113], %250 {strides = array<i32>} : memref<64x128xf32, #tpu.memory_space<vmem>>, vector<8x128xf32>,
    %252 = arith.select %21, %249, %248 : vector<8x128xi1>, vector<8x128xf32>
    %c32_114 = arith.constant 32 : index
    %c0_115 = arith.constant 0 : index
    %253 = vector.load %arg12[%c32_114, %c0_115] : memref<64x128xf32, #tpu.memory_space<vmem>>, vector<8x128xf32>
    tpu.vector_store %arg12[%c32_114, %c0_115], %252 {strides = array<i32>} : memref<64x128xf32, #tpu.memory_space<vmem>>, vector<8x128xf32>,
    %c0_116 = arith.constant 0 : index
    %c0_117 = arith.constant 0 : index
    %254 = vector.load %arg12[%c0_116, %c0_117] : memref<64x128xf32, #tpu.memory_space<vmem>>, vector<64x128xf32>
    %c0_118 = arith.constant 0 : index
    %c0_119 = arith.constant 0 : index
    %255 = vector.load %arg5[%c0_118, %c0_119] : memref<128x512xf32, #tpu.memory_space<vmem>>, vector<128x512xf32>
    %cst_120 = arith.constant dense<0.000000e+00> : vector<64x512xf32>
    %256 = tpu.matmul %254, %255, %cst_120 {dimension_numbers = #tpu.dot_dimension_numbers<[1], [0], [0], [1], [0, 0, 1, 1], [], []>} : vector<64x128xf32>, vector<128x512xf32>, vector<64x512xf32> -> vector<64x512xf32>
    %c0_121 = arith.constant 0 : index
    %c0_122 = arith.constant 0 : index
    %257 = vector.load %arg7[%c0_121, %c0_122] : memref<1x512xf32, #tpu.memory_space<vmem>>, vector<1x512xf32>
    %258 = vector.broadcast %257 : vector<1x512xf32> to vector<64x512xf32>
    %259 = arith.addf %256, %258 : vector<64x512xf32>
    %260 = vector.extract_strided_slice %259 {offsets = [0, 0], sizes = [8, 512], strides = [1, 1]} : vector<64x512xf32> to vector<8x512xf32>
    %261 = vector.extract_strided_slice %259 {offsets = [56, 0], sizes = [8, 512], strides = [1, 1]} : vector<64x512xf32> to vector<8x512xf32>
    %262 = arith.select %18, %260, %261 : vector<8x512xi1>, vector<8x512xf32>
    %c0_123 = arith.constant 0 : index
    %c0_124 = arith.constant 0 : index
    %263 = vector.load %arg11[%c0_123, %c0_124] : memref<64x512xf32, #tpu.memory_space<vmem>>, vector<8x512xf32>
    tpu.vector_store %arg11[%c0_123, %c0_124], %262 {strides = array<i32>} : memref<64x512xf32, #tpu.memory_space<vmem>>, vector<8x512xf32>,
    %264 = vector.extract_strided_slice %259 {offsets = [8, 0], sizes = [8, 512], strides = [1, 1]} : vector<64x512xf32> to vector<8x512xf32>
    %265 = vector.extract_strided_slice %259 {offsets = [48, 0], sizes = [8, 512], strides = [1, 1]} : vector<64x512xf32> to vector<8x512xf32>
    %266 = arith.select %18, %264, %265 : vector<8x512xi1>, vector<8x512xf32>
    %c8_125 = arith.constant 8 : index
    %c0_126 = arith.constant 0 : index
    %267 = vector.load %arg11[%c8_125, %c0_126] : memref<64x512xf32, #tpu.memory_space<vmem>>, vector<8x512xf32>
    tpu.vector_store %arg11[%c8_125, %c0_126], %266 {strides = array<i32>} : memref<64x512xf32, #tpu.memory_space<vmem>>, vector<8x512xf32>,
    %268 = vector.extract_strided_slice %259 {offsets = [16, 0], sizes = [8, 512], strides = [1, 1]} : vector<64x512xf32> to vector<8x512xf32>
    %269 = vector.extract_strided_slice %259 {offsets = [40, 0], sizes = [8, 512], strides = [1, 1]} : vector<64x512xf32> to vector<8x512xf32>
    %270 = arith.select %18, %268, %269 : vector<8x512xi1>, vector<8x512xf32>
    %c16_127 = arith.constant 16 : index
    %c0_128 = arith.constant 0 : index
    %271 = vector.load %arg11[%c16_127, %c0_128] : memref<64x512xf32, #tpu.memory_space<vmem>>, vector<8x512xf32>
    tpu.vector_store %arg11[%c16_127, %c0_128], %270 {strides = array<i32>} : memref<64x512xf32, #tpu.memory_space<vmem>>, vector<8x512xf32>,
    %272 = vector.extract_strided_slice %259 {offsets = [24, 0], sizes = [8, 512], strides = [1, 1]} : vector<64x512xf32> to vector<8x512xf32>
    %273 = vector.extract_strided_slice %259 {offsets = [32, 0], sizes = [8, 512], strides = [1, 1]} : vector<64x512xf32> to vector<8x512xf32>
    %274 = arith.select %18, %272, %273 : vector<8x512xi1>, vector<8x512xf32>
    %c24_129 = arith.constant 24 : index
    %c0_130 = arith.constant 0 : index
    %275 = vector.load %arg11[%c24_129, %c0_130] : memref<64x512xf32, #tpu.memory_space<vmem>>, vector<8x512xf32>
    tpu.vector_store %arg11[%c24_129, %c0_130], %274 {strides = array<i32>} : memref<64x512xf32, #tpu.memory_space<vmem>>, vector<8x512xf32>,
    %276 = vector.extract_strided_slice %259 {offsets = [32, 0], sizes = [8, 512], strides = [1, 1]} : vector<64x512xf32> to vector<8x512xf32>
    %277 = vector.extract_strided_slice %259 {offsets = [24, 0], sizes = [8, 512], strides = [1, 1]} : vector<64x512xf32> to vector<8x512xf32>
    %278 = arith.select %18, %276, %277 : vector<8x512xi1>, vector<8x512xf32>
    %c32_131 = arith.constant 32 : index
    %c0_132 = arith.constant 0 : index
    %279 = vector.load %arg11[%c32_131, %c0_132] : memref<64x512xf32, #tpu.memory_space<vmem>>, vector<8x512xf32>
    tpu.vector_store %arg11[%c32_131, %c0_132], %278 {strides = array<i32>} : memref<64x512xf32, #tpu.memory_space<vmem>>, vector<8x512xf32>,
    %280 = vector.extract_strided_slice %259 {offsets = [40, 0], sizes = [8, 512], strides = [1, 1]} : vector<64x512xf32> to vector<8x512xf32>
    %281 = vector.extract_strided_slice %259 {offsets = [16, 0], sizes = [8, 512], strides = [1, 1]} : vector<64x512xf32> to vector<8x512xf32>
    %282 = arith.select %18, %280, %281 : vector<8x512xi1>, vector<8x512xf32>
    %c40_133 = arith.constant 40 : index
    %c0_134 = arith.constant 0 : index
    %283 = vector.load %arg11[%c40_133, %c0_134] : memref<64x512xf32, #tpu.memory_space<vmem>>, vector<8x512xf32>
    tpu.vector_store %arg11[%c40_133, %c0_134], %282 {strides = array<i32>} : memref<64x512xf32, #tpu.memory_space<vmem>>, vector<8x512xf32>,
    %284 = vector.extract_strided_slice %259 {offsets = [48, 0], sizes = [8, 512], strides = [1, 1]} : vector<64x512xf32> to vector<8x512xf32>
    %285 = vector.extract_strided_slice %259 {offsets = [8, 0], sizes = [8, 512], strides = [1, 1]} : vector<64x512xf32> to vector<8x512xf32>
    %286 = arith.select %18, %284, %285 : vector<8x512xi1>, vector<8x512xf32>
    %c48_135 = arith.constant 48 : index
    %c0_136 = arith.constant 0 : index
    %287 = vector.load %arg11[%c48_135, %c0_136] : memref<64x512xf32, #tpu.memory_space<vmem>>, vector<8x512xf32>
    tpu.vector_store %arg11[%c48_135, %c0_136], %286 {strides = array<i32>} : memref<64x512xf32, #tpu.memory_space<vmem>>, vector<8x512xf32>,
    %288 = vector.extract_strided_slice %259 {offsets = [56, 0], sizes = [8, 512], strides = [1, 1]} : vector<64x512xf32> to vector<8x512xf32>
    %289 = vector.extract_strided_slice %259 {offsets = [0, 0], sizes = [8, 512], strides = [1, 1]} : vector<64x512xf32> to vector<8x512xf32>
    %290 = arith.select %18, %288, %289 : vector<8x512xi1>, vector<8x512xf32>
    %c56_137 = arith.constant 56 : index
    %c0_138 = arith.constant 0 : index
    %291 = vector.load %arg11[%c56_137, %c0_138] : memref<64x512xf32, #tpu.memory_space<vmem>>, vector<8x512xf32>
    tpu.vector_store %arg11[%c56_137, %c0_138], %290 {strides = array<i32>} : memref<64x512xf32, #tpu.memory_space<vmem>>, vector<8x512xf32>,
    %cst_139 = arith.constant 0.000000e+00 : f32
    %292 = vector.broadcast %cst_139 : f32 to vector<8x128xf32>
    %cst_140 = arith.constant 0.000000e+00 : f32
    %293 = vector.broadcast %cst_140 : f32 to vector<8x128xf32>
    %c0_141 = arith.constant 0 : index
    %c0_142 = arith.constant 0 : index
    %294 = vector.load %arg11[%c0_141, %c0_142] : memref<64x512xf32, #tpu.memory_space<vmem>>, vector<8x512xf32>
    %c0_143 = arith.constant 0 : index
    %c0_144 = arith.constant 0 : index
    %295 = vector.load %arg6[%c0_143, %c0_144] : memref<128x512xf32, #tpu.memory_space<vmem>>, vector<128x512xf32>
    %cst_145 = arith.constant dense<0.000000e+00> : vector<8x512xf32>
    %296 = tpu.matmul %292, %295, %cst_145 {dimension_numbers = #tpu.dot_dimension_numbers<[1], [0], [0], [1], [0, 0, 1, 1], [], []>} : vector<8x128xf32>, vector<128x512xf32>, vector<8x512xf32> -> vector<8x512xf32>
    %297 = arith.addf %294, %296 : vector<8x512xf32>
    %298 = vector.extract_strided_slice %297 {offsets = [0, 0], sizes = [8, 384], strides = [1, 1]} : vector<8x512xf32> to vector<8x384xf32>
    %299 = arith.negf %298 : vector<8x384xf32>
    %300 = math.exp %299 : vector<8x384xf32>
    %cst_146 = arith.constant 1.000000e+00 : f32
    %301 = vector.broadcast %cst_146 : f32 to vector<8x384xf32>
    %302 = arith.addf %301, %300 : vector<8x384xf32>
    %303 = arith.divf %301, %302 : vector<8x384xf32>
    %304 = vector.extract_strided_slice %297 {offsets = [0, 384], sizes = [8, 128], strides = [1, 1]} : vector<8x512xf32> to vector<8x128xf32>
    %305 = math.tanh %304 : vector<8x128xf32>
    %306 = vector.extract_strided_slice %303 {offsets = [0, 128], sizes = [8, 128], strides = [1, 1]} : vector<8x384xf32> to vector<8x128xf32>
    %307 = arith.mulf %306, %293 : vector<8x128xf32>
    %308 = vector.extract_strided_slice %303 {offsets = [0, 0], sizes = [8, 128], strides = [1, 1]} : vector<8x384xf32> to vector<8x128xf32>
    %309 = arith.mulf %308, %305 : vector<8x128xf32>
    %310 = arith.addf %307, %309 : vector<8x128xf32>
    %311 = vector.extract_strided_slice %303 {offsets = [0, 256], sizes = [8, 128], strides = [1, 1]} : vector<8x384xf32> to vector<8x128xf32>
    %312 = math.tanh %310 : vector<8x128xf32>
    %313 = arith.mulf %311, %312 : vector<8x128xf32>
    %c0_147 = arith.constant 0 : index
    %c0_148 = arith.constant 0 : index
    %314 = vector.load %arg12[%c0_147, %c0_148] : memref<64x128xf32, #tpu.memory_space<vmem>>, vector<8x128xf32>
    tpu.vector_store %arg12[%c0_147, %c0_148], %313 {strides = array<i32>} : memref<64x128xf32, #tpu.memory_space<vmem>>, vector<8x128xf32>,
    %c8_149 = arith.constant 8 : index
    %c0_150 = arith.constant 0 : index
    %315 = vector.load %arg11[%c8_149, %c0_150] : memref<64x512xf32, #tpu.memory_space<vmem>>, vector<8x512xf32>
    %c0_151 = arith.constant 0 : index
    %c0_152 = arith.constant 0 : index
    %316 = vector.load %arg6[%c0_151, %c0_152] : memref<128x512xf32, #tpu.memory_space<vmem>>, vector<128x512xf32>
    %cst_153 = arith.constant dense<0.000000e+00> : vector<8x512xf32>
    %317 = tpu.matmul %313, %316, %cst_153 {dimension_numbers = #tpu.dot_dimension_numbers<[1], [0], [0], [1], [0, 0, 1, 1], [], []>} : vector<8x128xf32>, vector<128x512xf32>, vector<8x512xf32> -> vector<8x512xf32>
    %318 = arith.addf %315, %317 : vector<8x512xf32>
    %319 = vector.extract_strided_slice %318 {offsets = [0, 0], sizes = [8, 384], strides = [1, 1]} : vector<8x512xf32> to vector<8x384xf32>
    %320 = arith.negf %319 : vector<8x384xf32>
    %321 = math.exp %320 : vector<8x384xf32>
    %cst_154 = arith.constant 1.000000e+00 : f32
    %322 = vector.broadcast %cst_154 : f32 to vector<8x384xf32>
    %323 = arith.addf %322, %321 : vector<8x384xf32>
    %324 = arith.divf %322, %323 : vector<8x384xf32>
    %325 = vector.extract_strided_slice %318 {offsets = [0, 384], sizes = [8, 128], strides = [1, 1]} : vector<8x512xf32> to vector<8x128xf32>
    %326 = math.tanh %325 : vector<8x128xf32>
    %327 = vector.extract_strided_slice %324 {offsets = [0, 128], sizes = [8, 128], strides = [1, 1]} : vector<8x384xf32> to vector<8x128xf32>
    %328 = arith.mulf %327, %310 : vector<8x128xf32>
    %329 = vector.extract_strided_slice %324 {offsets = [0, 0], sizes = [8, 128], strides = [1, 1]} : vector<8x384xf32> to vector<8x128xf32>
    %330 = arith.mulf %329, %326 : vector<8x128xf32>
    %331 = arith.addf %328, %330 : vector<8x128xf32>
    %332 = vector.extract_strided_slice %324 {offsets = [0, 256], sizes = [8, 128], strides = [1, 1]} : vector<8x384xf32> to vector<8x128xf32>
    %333 = math.tanh %331 : vector<8x128xf32>
    %334 = arith.mulf %332, %333 : vector<8x128xf32>
    %c8_155 = arith.constant 8 : index
    %c0_156 = arith.constant 0 : index
    %335 = vector.load %arg12[%c8_155, %c0_156] : memref<64x128xf32, #tpu.memory_space<vmem>>, vector<8x128xf32>
    tpu.vector_store %arg12[%c8_155, %c0_156], %334 {strides = array<i32>} : memref<64x128xf32, #tpu.memory_space<vmem>>, vector<8x128xf32>,
    %c16_157 = arith.constant 16 : index
    %c0_158 = arith.constant 0 : index
    %336 = vector.load %arg11[%c16_157, %c0_158] : memref<64x512xf32, #tpu.memory_space<vmem>>, vector<8x512xf32>
    %c0_159 = arith.constant 0 : index
    %c0_160 = arith.constant 0 : index
    %337 = vector.load %arg6[%c0_159, %c0_160] : memref<128x512xf32, #tpu.memory_space<vmem>>, vector<128x512xf32>
    %cst_161 = arith.constant dense<0.000000e+00> : vector<8x512xf32>
    %338 = tpu.matmul %334, %337, %cst_161 {dimension_numbers = #tpu.dot_dimension_numbers<[1], [0], [0], [1], [0, 0, 1, 1], [], []>} : vector<8x128xf32>, vector<128x512xf32>, vector<8x512xf32> -> vector<8x512xf32>
    %339 = arith.addf %336, %338 : vector<8x512xf32>
    %340 = vector.extract_strided_slice %339 {offsets = [0, 0], sizes = [8, 384], strides = [1, 1]} : vector<8x512xf32> to vector<8x384xf32>
    %341 = arith.negf %340 : vector<8x384xf32>
    %342 = math.exp %341 : vector<8x384xf32>
    %cst_162 = arith.constant 1.000000e+00 : f32
    %343 = vector.broadcast %cst_162 : f32 to vector<8x384xf32>
    %344 = arith.addf %343, %342 : vector<8x384xf32>
    %345 = arith.divf %343, %344 : vector<8x384xf32>
    %346 = vector.extract_strided_slice %339 {offsets = [0, 384], sizes = [8, 128], strides = [1, 1]} : vector<8x512xf32> to vector<8x128xf32>
    %347 = math.tanh %346 : vector<8x128xf32>
    %348 = vector.extract_strided_slice %345 {offsets = [0, 128], sizes = [8, 128], strides = [1, 1]} : vector<8x384xf32> to vector<8x128xf32>
    %349 = arith.mulf %348, %331 : vector<8x128xf32>
    %350 = vector.extract_strided_slice %345 {offsets = [0, 0], sizes = [8, 128], strides = [1, 1]} : vector<8x384xf32> to vector<8x128xf32>
    %351 = arith.mulf %350, %347 : vector<8x128xf32>
    %352 = arith.addf %349, %351 : vector<8x128xf32>
    %353 = vector.extract_strided_slice %345 {offsets = [0, 256], sizes = [8, 128], strides = [1, 1]} : vector<8x384xf32> to vector<8x128xf32>
    %354 = math.tanh %352 : vector<8x128xf32>
    %355 = arith.mulf %353, %354 : vector<8x128xf32>
    %c16_163 = arith.constant 16 : index
    %c0_164 = arith.constant 0 : index
    %356 = vector.load %arg12[%c16_163, %c0_164] : memref<64x128xf32, #tpu.memory_space<vmem>>, vector<8x128xf32>
    tpu.vector_store %arg12[%c16_163, %c0_164], %355 {strides = array<i32>} : memref<64x128xf32, #tpu.memory_space<vmem>>, vector<8x128xf32>,
    %c24_165 = arith.constant 24 : index
    %c0_166 = arith.constant 0 : index
    %357 = vector.load %arg11[%c24_165, %c0_166] : memref<64x512xf32, #tpu.memory_space<vmem>>, vector<8x512xf32>
    %c0_167 = arith.constant 0 : index
    %c0_168 = arith.constant 0 : index
    %358 = vector.load %arg6[%c0_167, %c0_168] : memref<128x512xf32, #tpu.memory_space<vmem>>, vector<128x512xf32>
    %cst_169 = arith.constant dense<0.000000e+00> : vector<8x512xf32>
    %359 = tpu.matmul %355, %358, %cst_169 {dimension_numbers = #tpu.dot_dimension_numbers<[1], [0], [0], [1], [0, 0, 1, 1], [], []>} : vector<8x128xf32>, vector<128x512xf32>, vector<8x512xf32> -> vector<8x512xf32>
    %360 = arith.addf %357, %359 : vector<8x512xf32>
    %361 = vector.extract_strided_slice %360 {offsets = [0, 0], sizes = [8, 384], strides = [1, 1]} : vector<8x512xf32> to vector<8x384xf32>
    %362 = arith.negf %361 : vector<8x384xf32>
    %363 = math.exp %362 : vector<8x384xf32>
    %cst_170 = arith.constant 1.000000e+00 : f32
    %364 = vector.broadcast %cst_170 : f32 to vector<8x384xf32>
    %365 = arith.addf %364, %363 : vector<8x384xf32>
    %366 = arith.divf %364, %365 : vector<8x384xf32>
    %367 = vector.extract_strided_slice %360 {offsets = [0, 384], sizes = [8, 128], strides = [1, 1]} : vector<8x512xf32> to vector<8x128xf32>
    %368 = math.tanh %367 : vector<8x128xf32>
    %369 = vector.extract_strided_slice %366 {offsets = [0, 128], sizes = [8, 128], strides = [1, 1]} : vector<8x384xf32> to vector<8x128xf32>
    %370 = arith.mulf %369, %352 : vector<8x128xf32>
    %371 = vector.extract_strided_slice %366 {offsets = [0, 0], sizes = [8, 128], strides = [1, 1]} : vector<8x384xf32> to vector<8x128xf32>
    %372 = arith.mulf %371, %368 : vector<8x128xf32>
    %373 = arith.addf %370, %372 : vector<8x128xf32>
    %374 = vector.extract_strided_slice %366 {offsets = [0, 256], sizes = [8, 128], strides = [1, 1]} : vector<8x384xf32> to vector<8x128xf32>
    %375 = math.tanh %373 : vector<8x128xf32>
    %376 = arith.mulf %374, %375 : vector<8x128xf32>
    %c24_171 = arith.constant 24 : index
    %c0_172 = arith.constant 0 : index
    %377 = vector.load %arg12[%c24_171, %c0_172] : memref<64x128xf32, #tpu.memory_space<vmem>>, vector<8x128xf32>
    tpu.vector_store %arg12[%c24_171, %c0_172], %376 {strides = array<i32>} : memref<64x128xf32, #tpu.memory_space<vmem>>, vector<8x128xf32>,
    %c32_173 = arith.constant 32 : index
    %c0_174 = arith.constant 0 : index
    %378 = vector.load %arg11[%c32_173, %c0_174] : memref<64x512xf32, #tpu.memory_space<vmem>>, vector<8x512xf32>
    %c0_175 = arith.constant 0 : index
    %c0_176 = arith.constant 0 : index
    %379 = vector.load %arg6[%c0_175, %c0_176] : memref<128x512xf32, #tpu.memory_space<vmem>>, vector<128x512xf32>
    %cst_177 = arith.constant dense<0.000000e+00> : vector<8x512xf32>
    %380 = tpu.matmul %376, %379, %cst_177 {dimension_numbers = #tpu.dot_dimension_numbers<[1], [0], [0], [1], [0, 0, 1, 1], [], []>} : vector<8x128xf32>, vector<128x512xf32>, vector<8x512xf32> -> vector<8x512xf32>
    %381 = arith.addf %378, %380 : vector<8x512xf32>
    %382 = vector.extract_strided_slice %381 {offsets = [0, 0], sizes = [8, 384], strides = [1, 1]} : vector<8x512xf32> to vector<8x384xf32>
    %383 = arith.negf %382 : vector<8x384xf32>
    %384 = math.exp %383 : vector<8x384xf32>
    %cst_178 = arith.constant 1.000000e+00 : f32
    %385 = vector.broadcast %cst_178 : f32 to vector<8x384xf32>
    %386 = arith.addf %385, %384 : vector<8x384xf32>
    %387 = arith.divf %385, %386 : vector<8x384xf32>
    %388 = vector.extract_strided_slice %381 {offsets = [0, 384], sizes = [8, 128], strides = [1, 1]} : vector<8x512xf32> to vector<8x128xf32>
    %389 = math.tanh %388 : vector<8x128xf32>
    %390 = vector.extract_strided_slice %387 {offsets = [0, 128], sizes = [8, 128], strides = [1, 1]} : vector<8x384xf32> to vector<8x128xf32>
    %391 = arith.mulf %390, %373 : vector<8x128xf32>
    %392 = vector.extract_strided_slice %387 {offsets = [0, 0], sizes = [8, 128], strides = [1, 1]} : vector<8x384xf32> to vector<8x128xf32>
    %393 = arith.mulf %392, %389 : vector<8x128xf32>
    %394 = arith.addf %391, %393 : vector<8x128xf32>
    %395 = vector.extract_strided_slice %387 {offsets = [0, 256], sizes = [8, 128], strides = [1, 1]} : vector<8x384xf32> to vector<8x128xf32>
    %396 = math.tanh %394 : vector<8x128xf32>
    %397 = arith.mulf %395, %396 : vector<8x128xf32>
    %c32_179 = arith.constant 32 : index
    %c0_180 = arith.constant 0 : index
    %398 = vector.load %arg12[%c32_179, %c0_180] : memref<64x128xf32, #tpu.memory_space<vmem>>, vector<8x128xf32>
    tpu.vector_store %arg12[%c32_179, %c0_180], %397 {strides = array<i32>} : memref<64x128xf32, #tpu.memory_space<vmem>>, vector<8x128xf32>,
    %c40_181 = arith.constant 40 : index
    %c0_182 = arith.constant 0 : index
    %399 = vector.load %arg11[%c40_181, %c0_182] : memref<64x512xf32, #tpu.memory_space<vmem>>, vector<8x512xf32>
    %c0_183 = arith.constant 0 : index
    %c0_184 = arith.constant 0 : index
    %400 = vector.load %arg6[%c0_183, %c0_184] : memref<128x512xf32, #tpu.memory_space<vmem>>, vector<128x512xf32>
    %cst_185 = arith.constant dense<0.000000e+00> : vector<8x512xf32>
    %401 = tpu.matmul %397, %400, %cst_185 {dimension_numbers = #tpu.dot_dimension_numbers<[1], [0], [0], [1], [0, 0, 1, 1], [], []>} : vector<8x128xf32>, vector<128x512xf32>, vector<8x512xf32> -> vector<8x512xf32>
    %402 = arith.addf %399, %401 : vector<8x512xf32>
    %403 = vector.extract_strided_slice %402 {offsets = [0, 0], sizes = [8, 384], strides = [1, 1]} : vector<8x512xf32> to vector<8x384xf32>
    %404 = arith.negf %403 : vector<8x384xf32>
    %405 = math.exp %404 : vector<8x384xf32>
    %cst_186 = arith.constant 1.000000e+00 : f32
    %406 = vector.broadcast %cst_186 : f32 to vector<8x384xf32>
    %407 = arith.addf %406, %405 : vector<8x384xf32>
    %408 = arith.divf %406, %407 : vector<8x384xf32>
    %409 = vector.extract_strided_slice %402 {offsets = [0, 384], sizes = [8, 128], strides = [1, 1]} : vector<8x512xf32> to vector<8x128xf32>
    %410 = math.tanh %409 : vector<8x128xf32>
    %411 = vector.extract_strided_slice %408 {offsets = [0, 128], sizes = [8, 128], strides = [1, 1]} : vector<8x384xf32> to vector<8x128xf32>
    %412 = arith.mulf %411, %394 : vector<8x128xf32>
    %413 = vector.extract_strided_slice %408 {offsets = [0, 0], sizes = [8, 128], strides = [1, 1]} : vector<8x384xf32> to vector<8x128xf32>
    %414 = arith.mulf %413, %410 : vector<8x128xf32>
    %415 = arith.addf %412, %414 : vector<8x128xf32>
    %416 = vector.extract_strided_slice %408 {offsets = [0, 256], sizes = [8, 128], strides = [1, 1]} : vector<8x384xf32> to vector<8x128xf32>
    %417 = math.tanh %415 : vector<8x128xf32>
    %418 = arith.mulf %416, %417 : vector<8x128xf32>
    %c40_187 = arith.constant 40 : index
    %c0_188 = arith.constant 0 : index
    %419 = vector.load %arg12[%c40_187, %c0_188] : memref<64x128xf32, #tpu.memory_space<vmem>>, vector<8x128xf32>
    tpu.vector_store %arg12[%c40_187, %c0_188], %418 {strides = array<i32>} : memref<64x128xf32, #tpu.memory_space<vmem>>, vector<8x128xf32>,
    %c48_189 = arith.constant 48 : index
    %c0_190 = arith.constant 0 : index
    %420 = vector.load %arg11[%c48_189, %c0_190] : memref<64x512xf32, #tpu.memory_space<vmem>>, vector<8x512xf32>
    %c0_191 = arith.constant 0 : index
    %c0_192 = arith.constant 0 : index
    %421 = vector.load %arg6[%c0_191, %c0_192] : memref<128x512xf32, #tpu.memory_space<vmem>>, vector<128x512xf32>
    %cst_193 = arith.constant dense<0.000000e+00> : vector<8x512xf32>
    %422 = tpu.matmul %418, %421, %cst_193 {dimension_numbers = #tpu.dot_dimension_numbers<[1], [0], [0], [1], [0, 0, 1, 1], [], []>} : vector<8x128xf32>, vector<128x512xf32>, vector<8x512xf32> -> vector<8x512xf32>
    %423 = arith.addf %420, %422 : vector<8x512xf32>
    %424 = vector.extract_strided_slice %423 {offsets = [0, 0], sizes = [8, 384], strides = [1, 1]} : vector<8x512xf32> to vector<8x384xf32>
    %425 = arith.negf %424 : vector<8x384xf32>
    %426 = math.exp %425 : vector<8x384xf32>
    %cst_194 = arith.constant 1.000000e+00 : f32
    %427 = vector.broadcast %cst_194 : f32 to vector<8x384xf32>
    %428 = arith.addf %427, %426 : vector<8x384xf32>
    %429 = arith.divf %427, %428 : vector<8x384xf32>
    %430 = vector.extract_strided_slice %423 {offsets = [0, 384], sizes = [8, 128], strides = [1, 1]} : vector<8x512xf32> to vector<8x128xf32>
    %431 = math.tanh %430 : vector<8x128xf32>
    %432 = vector.extract_strided_slice %429 {offsets = [0, 128], sizes = [8, 128], strides = [1, 1]} : vector<8x384xf32> to vector<8x128xf32>
    %433 = arith.mulf %432, %415 : vector<8x128xf32>
    %434 = vector.extract_strided_slice %429 {offsets = [0, 0], sizes = [8, 128], strides = [1, 1]} : vector<8x384xf32> to vector<8x128xf32>
    %435 = arith.mulf %434, %431 : vector<8x128xf32>
    %436 = arith.addf %433, %435 : vector<8x128xf32>
    %437 = vector.extract_strided_slice %429 {offsets = [0, 256], sizes = [8, 128], strides = [1, 1]} : vector<8x384xf32> to vector<8x128xf32>
    %438 = math.tanh %436 : vector<8x128xf32>
    %439 = arith.mulf %437, %438 : vector<8x128xf32>
    %c48_195 = arith.constant 48 : index
    %c0_196 = arith.constant 0 : index
    %440 = vector.load %arg12[%c48_195, %c0_196] : memref<64x128xf32, #tpu.memory_space<vmem>>, vector<8x128xf32>
    tpu.vector_store %arg12[%c48_195, %c0_196], %439 {strides = array<i32>} : memref<64x128xf32, #tpu.memory_space<vmem>>, vector<8x128xf32>,
    %c56_197 = arith.constant 56 : index
    %c0_198 = arith.constant 0 : index
    %441 = vector.load %arg11[%c56_197, %c0_198] : memref<64x512xf32, #tpu.memory_space<vmem>>, vector<8x512xf32>
    %c0_199 = arith.constant 0 : index
    %c0_200 = arith.constant 0 : index
    %442 = vector.load %arg6[%c0_199, %c0_200] : memref<128x512xf32, #tpu.memory_space<vmem>>, vector<128x512xf32>
    %cst_201 = arith.constant dense<0.000000e+00> : vector<8x512xf32>
    %443 = tpu.matmul %439, %442, %cst_201 {dimension_numbers = #tpu.dot_dimension_numbers<[1], [0], [0], [1], [0, 0, 1, 1], [], []>} : vector<8x128xf32>, vector<128x512xf32>, vector<8x512xf32> -> vector<8x512xf32>
    %444 = arith.addf %441, %443 : vector<8x512xf32>
    %445 = vector.extract_strided_slice %444 {offsets = [0, 0], sizes = [8, 384], strides = [1, 1]} : vector<8x512xf32> to vector<8x384xf32>
    %446 = arith.negf %445 : vector<8x384xf32>
    %447 = math.exp %446 : vector<8x384xf32>
    %cst_202 = arith.constant 1.000000e+00 : f32
    %448 = vector.broadcast %cst_202 : f32 to vector<8x384xf32>
    %449 = arith.addf %448, %447 : vector<8x384xf32>
    %450 = arith.divf %448, %449 : vector<8x384xf32>
    %451 = vector.extract_strided_slice %444 {offsets = [0, 384], sizes = [8, 128], strides = [1, 1]} : vector<8x512xf32> to vector<8x128xf32>
    %452 = math.tanh %451 : vector<8x128xf32>
    %453 = vector.extract_strided_slice %450 {offsets = [0, 128], sizes = [8, 128], strides = [1, 1]} : vector<8x384xf32> to vector<8x128xf32>
    %454 = arith.mulf %453, %436 : vector<8x128xf32>
    %455 = vector.extract_strided_slice %450 {offsets = [0, 0], sizes = [8, 128], strides = [1, 1]} : vector<8x384xf32> to vector<8x128xf32>
    %456 = arith.mulf %455, %452 : vector<8x128xf32>
    %457 = arith.addf %454, %456 : vector<8x128xf32>
    %458 = vector.extract_strided_slice %450 {offsets = [0, 256], sizes = [8, 128], strides = [1, 1]} : vector<8x384xf32> to vector<8x128xf32>
    %459 = math.tanh %457 : vector<8x128xf32>
    %460 = arith.mulf %458, %459 : vector<8x128xf32>
    %c56_203 = arith.constant 56 : index
    %c0_204 = arith.constant 0 : index
    %461 = vector.load %arg12[%c56_203, %c0_204] : memref<64x128xf32, #tpu.memory_space<vmem>>, vector<8x128xf32>
    tpu.vector_store %arg12[%c56_203, %c0_204], %460 {strides = array<i32>} : memref<64x128xf32, #tpu.memory_space<vmem>>, vector<8x128xf32>,
    %c0_205 = arith.constant 0 : index
    %c0_206 = arith.constant 0 : index
    %462 = vector.load %arg12[%c0_205, %c0_206] : memref<64x128xf32, #tpu.memory_space<vmem>>, vector<8x128xf32>
    %c56_207 = arith.constant 56 : index
    %c0_208 = arith.constant 0 : index
    %463 = vector.load %arg12[%c56_207, %c0_208] : memref<64x128xf32, #tpu.memory_space<vmem>>, vector<8x128xf32>
    %464 = arith.select %21, %462, %463 : vector<8x128xi1>, vector<8x128xf32>
    %c0_209 = arith.constant 0 : index
    %c0_210 = arith.constant 0 : index
    %465 = vector.load %arg12[%c0_209, %c0_210] : memref<64x128xf32, #tpu.memory_space<vmem>>, vector<8x128xf32>
    tpu.vector_store %arg12[%c0_209, %c0_210], %464 {strides = array<i32>} : memref<64x128xf32, #tpu.memory_space<vmem>>, vector<8x128xf32>,
    %466 = arith.select %21, %463, %462 : vector<8x128xi1>, vector<8x128xf32>
    %c56_211 = arith.constant 56 : index
    %c0_212 = arith.constant 0 : index
    %467 = vector.load %arg12[%c56_211, %c0_212] : memref<64x128xf32, #tpu.memory_space<vmem>>, vector<8x128xf32>
    tpu.vector_store %arg12[%c56_211, %c0_212], %466 {strides = array<i32>} : memref<64x128xf32, #tpu.memory_space<vmem>>, vector<8x128xf32>,
    %c8_213 = arith.constant 8 : index
    %c0_214 = arith.constant 0 : index
    %468 = vector.load %arg12[%c8_213, %c0_214] : memref<64x128xf32, #tpu.memory_space<vmem>>, vector<8x128xf32>
    %c48_215 = arith.constant 48 : index
    %c0_216 = arith.constant 0 : index
    %469 = vector.load %arg12[%c48_215, %c0_216] : memref<64x128xf32, #tpu.memory_space<vmem>>, vector<8x128xf32>
    %470 = arith.select %21, %468, %469 : vector<8x128xi1>, vector<8x128xf32>
    %c8_217 = arith.constant 8 : index
    %c0_218 = arith.constant 0 : index
    %471 = vector.load %arg12[%c8_217, %c0_218] : memref<64x128xf32, #tpu.memory_space<vmem>>, vector<8x128xf32>
    tpu.vector_store %arg12[%c8_217, %c0_218], %470 {strides = array<i32>} : memref<64x128xf32, #tpu.memory_space<vmem>>, vector<8x128xf32>,
    %472 = arith.select %21, %469, %468 : vector<8x128xi1>, vector<8x128xf32>
    %c48_219 = arith.constant 48 : index
    %c0_220 = arith.constant 0 : index
    %473 = vector.load %arg12[%c48_219, %c0_220] : memref<64x128xf32, #tpu.memory_space<vmem>>, vector<8x128xf32>
    tpu.vector_store %arg12[%c48_219, %c0_220], %472 {strides = array<i32>} : memref<64x128xf32, #tpu.memory_space<vmem>>, vector<8x128xf32>,
    %c16_221 = arith.constant 16 : index
    %c0_222 = arith.constant 0 : index
    %474 = vector.load %arg12[%c16_221, %c0_222] : memref<64x128xf32, #tpu.memory_space<vmem>>, vector<8x128xf32>
    %c40_223 = arith.constant 40 : index
    %c0_224 = arith.constant 0 : index
    %475 = vector.load %arg12[%c40_223, %c0_224] : memref<64x128xf32, #tpu.memory_space<vmem>>, vector<8x128xf32>
    %476 = arith.select %21, %474, %475 : vector<8x128xi1>, vector<8x128xf32>
    %c16_225 = arith.constant 16 : index
    %c0_226 = arith.constant 0 : index
    %477 = vector.load %arg12[%c16_225, %c0_226] : memref<64x128xf32, #tpu.memory_space<vmem>>, vector<8x128xf32>
    tpu.vector_store %arg12[%c16_225, %c0_226], %476 {strides = array<i32>} : memref<64x128xf32, #tpu.memory_space<vmem>>, vector<8x128xf32>,
    %478 = arith.select %21, %475, %474 : vector<8x128xi1>, vector<8x128xf32>
    %c40_227 = arith.constant 40 : index
    %c0_228 = arith.constant 0 : index
    %479 = vector.load %arg12[%c40_227, %c0_228] : memref<64x128xf32, #tpu.memory_space<vmem>>, vector<8x128xf32>
    tpu.vector_store %arg12[%c40_227, %c0_228], %478 {strides = array<i32>} : memref<64x128xf32, #tpu.memory_space<vmem>>, vector<8x128xf32>,
    %c24_229 = arith.constant 24 : index
    %c0_230 = arith.constant 0 : index
    %480 = vector.load %arg12[%c24_229, %c0_230] : memref<64x128xf32, #tpu.memory_space<vmem>>, vector<8x128xf32>
    %c32_231 = arith.constant 32 : index
    %c0_232 = arith.constant 0 : index
    %481 = vector.load %arg12[%c32_231, %c0_232] : memref<64x128xf32, #tpu.memory_space<vmem>>, vector<8x128xf32>
    %482 = arith.select %21, %480, %481 : vector<8x128xi1>, vector<8x128xf32>
    %c24_233 = arith.constant 24 : index
    %c0_234 = arith.constant 0 : index
    %483 = vector.load %arg12[%c24_233, %c0_234] : memref<64x128xf32, #tpu.memory_space<vmem>>, vector<8x128xf32>
    tpu.vector_store %arg12[%c24_233, %c0_234], %482 {strides = array<i32>} : memref<64x128xf32, #tpu.memory_space<vmem>>, vector<8x128xf32>,
    %484 = arith.select %21, %481, %480 : vector<8x128xi1>, vector<8x128xf32>
    %c32_235 = arith.constant 32 : index
    %c0_236 = arith.constant 0 : index
    %485 = vector.load %arg12[%c32_235, %c0_236] : memref<64x128xf32, #tpu.memory_space<vmem>>, vector<8x128xf32>
    tpu.vector_store %arg12[%c32_235, %c0_236], %484 {strides = array<i32>} : memref<64x128xf32, #tpu.memory_space<vmem>>, vector<8x128xf32>,
    %c0_237 = arith.constant 0 : index
    %c0_238 = arith.constant 0 : index
    %486 = vector.load %arg12[%c0_237, %c0_238] : memref<64x128xf32, #tpu.memory_space<vmem>>, vector<64x128xf32>
    %c0_239 = arith.constant 0 : index
    %c0_240 = arith.constant 0 : index
    %487 = vector.load %arg8[%c0_239, %c0_240] : memref<128x128xf32, #tpu.memory_space<vmem>>, vector<128x128xf32>
    %cst_241 = arith.constant dense<0.000000e+00> : vector<64x128xf32>
    %488 = tpu.matmul %486, %487, %cst_241 {dimension_numbers = #tpu.dot_dimension_numbers<[1], [0], [0], [1], [0, 0, 1, 1], [], []>} : vector<64x128xf32>, vector<128x128xf32>, vector<64x128xf32> -> vector<64x128xf32>
    %c0_242 = arith.constant 0 : index
    %c0_243 = arith.constant 0 : index
    %489 = vector.load %arg9[%c0_242, %c0_243] : memref<1x128xf32, #tpu.memory_space<vmem>>, vector<1x128xf32>
    %490 = vector.broadcast %489 : vector<1x128xf32> to vector<64x128xf32>
    %491 = arith.addf %488, %490 : vector<64x128xf32>
    %c0_244 = arith.constant 0 : index
    %c0_245 = arith.constant 0 : index
    %492 = vector.load %arg10[%c0_244, %c0_245] : memref<64x128xf32, #tpu.memory_space<vmem>>, vector<64x128xf32>
    tpu.vector_store %arg10[%c0_244, %c0_245], %491 {strides = array<i32>} : memref<64x128xf32, #tpu.memory_space<vmem>>, vector<64x128xf32>,
    return
  }
  func.func @transform_0(%arg0: i32) -> (i32, i32) {
    %c0_i32 = arith.constant 0 : i32
    %c0_i32_0 = arith.constant 0 : i32
    %c0_i32_1 = arith.constant 0 : i32
    return %c0_i32, %c0_i32_0 : i32, i32
  }
  func.func @transform_1(%arg0: i32) -> (i32, i32) {
    %c0_i32 = arith.constant 0 : i32
    %c0_i32_0 = arith.constant 0 : i32
    %c0_i32_1 = arith.constant 0 : i32
    return %c0_i32, %c0_i32_0 : i32, i32
  }
  func.func @transform_2(%arg0: i32) -> (i32, i32) {
    %c0_i32 = arith.constant 0 : i32
    %c0_i32_0 = arith.constant 0 : i32
    %c0_i32_1 = arith.constant 0 : i32
    return %c0_i32, %c0_i32_0 : i32, i32
  }
  func.func @transform_3(%arg0: i32) -> (i32, i32) {
    %c0_i32 = arith.constant 0 : i32
    %c0_i32_0 = arith.constant 0 : i32
    %c0_i32_1 = arith.constant 0 : i32
    return %c0_i32, %c0_i32_0 : i32, i32
  }
  func.func @transform_4(%arg0: i32) -> (i32, i32) {
    %c0_i32 = arith.constant 0 : i32
    %c0_i32_0 = arith.constant 0 : i32
    %c0_i32_1 = arith.constant 0 : i32
    return %c0_i32, %c0_i32_0 : i32, i32
  }
  func.func @transform_5(%arg0: i32) -> (i32, i32) {
    %c0_i32 = arith.constant 0 : i32
    %c0_i32_0 = arith.constant 0 : i32
    %c0_i32_1 = arith.constant 0 : i32
    return %c0_i32, %c0_i32_0 : i32, i32
  }
  func.func @transform_6(%arg0: i32) -> (i32, i32) {
    %c0_i32 = arith.constant 0 : i32
    %c0_i32_0 = arith.constant 0 : i32
    %c0_i32_1 = arith.constant 0 : i32
    return %c0_i32, %c0_i32_0 : i32, i32
  }
  func.func @transform_7(%arg0: i32) -> (i32, i32) {
    %c0_i32 = arith.constant 0 : i32
    %c0_i32_0 = arith.constant 0 : i32
    %c0_i32_1 = arith.constant 0 : i32
    return %c0_i32, %c0_i32_0 : i32, i32
  }
  func.func @transform_8(%arg0: i32) -> (i32, i32) {
    %c0_i32 = arith.constant 0 : i32
    %c0_i32_0 = arith.constant 0 : i32
    %c0_i32_1 = arith.constant 0 : i32
    return %c0_i32, %c0_i32_0 : i32, i32
  }
  func.func @transform_9(%arg0: i32) -> (i32, i32) {
    %c0_i32 = arith.constant 0 : i32
    %c0_i32_0 = arith.constant 0 : i32
    %c0_i32_1 = arith.constant 0 : i32
    return %c0_i32, %c0_i32_0 : i32, i32
  }
}

</mosaic_0001>

<bundles_post_ra>
// kernel: model_forward.1
= control target key start
LH: loop header
LB: loop body
LE: loop exit
PB: predicated region body
PF: predicated region fallthrough
CT: control target
= control target key end

     0   :  { %v9157_v3 = vmov 0.0   ;;  %vm128_vm0 = vcmask 130048   ;;  %s9147_s1 = inlined_call_operand.vmem [shape: f32[16,512], index: 1, kind: input, shape index: {}]   ;;  %s9148_s0 = inlined_call_operand.vmem [shape: f32[64,16], index: 0, kind: input, shape index: {}]   ;;  %s9149_s2 = inlined_call_operand.vmem [shape: f32[128,512], index: 2, kind: input, shape index: {}]   ;;  %s9150_s3 = inlined_call_operand.vmem [shape: f32[1,512], index: 3, kind: input, shape index: {}]   ;;  %s9151_s4 = inlined_call_operand.vmem [shape: f32[128,512], index: 4, kind: input, shape index: {}]   ;;  %s9152_s5 = inlined_call_operand.vmem [shape: f32[128,512], index: 5, kind: input, shape index: {}]   ;;  %s9153_s6 = inlined_call_operand.vmem [shape: f32[1,512], index: 6, kind: input, shape index: {}]   ;;  %s9154_s7 = inlined_call_operand.vmem [shape: f32[128,128], index: 7, kind: input, shape index: {}]   ;;  %s9155_s8 = inlined_call_operand.vmem [shape: f32[1,128], index: 8, kind: input, shape index: {}]   ;;  %s9156_s9 = inlined_call_operand.vmem [shape: f32[64,128], index: 9, kind: output, shape index: {}]  }
   0x1   :  { %v103_v0 = vld [vmem:[%s9147_s1 + $0x28] sm:$0xff]  ;;  %v105_v1 = vld [vmem:[%s9147_s1 + $0x38] sm:$0xff]  ;;  %v102_v2 = vld [vmem:[%s9147_s1 + $0x20] sm:$0xff]  ;;  %217 = vmatprep.mubr.f32.mxu0 %v9157_v3  ;;  %330 = vmatprep.mubr.f32.mxu1 %v9157_v3 }
   0x2   :  { %181 = vmatprep.subr.mxu0 %v103_v0  ;;  %294 = vmatprep.subr.mxu1 %v105_v1  ;;  %v104_v4 = vld [vmem:[%s9147_s1 + $0x30] sm:$0xff]  ;;  %v99_v5 = vld [vmem:[%s9147_s1 + $0x8] sm:$0xff]  ;;  %v101_v6 = vld [vmem:[%s9147_s1 + $0x18] sm:$0xff] }
   0x3   :  { %182 = vmatpush1.msra.mxu0 %v102_v2  ;;  %295 = vmatpush1.msra.mxu1 %v104_v4  ;;  %v98_v7 = vld [vmem:[%s9147_s1] sm:$0xff]  ;;  %v100_v8 = vld [vmem:[%s9147_s1 + $0x10] sm:$0xff]  ;;  %v5320_v10 = vld [vmem:[%s9149_s2 + $0x1e8] sm:$0xff] }
   0x4   :  { %v90_v9 = vld [vmem:[%s9148_s0] sm:$0xff]  ;;  %183 = vmatprep.subr.mxu0 %v99_v5  ;;  %296 = vmatprep.subr.mxu1 %v101_v6  ;;  %v5332_v12 = vld [vmem:[%s9149_s2 + $0x1c8] sm:$0xff]  ;;  %v92_v19 = vld [vmem:[%s9148_s0 + $0x10] sm:$0xff] }
   0x5   :  { %184 = vmatpush1.msra.mxu0 %v98_v7  ;;  %297 = vmatpush1.msra.mxu1 %v100_v8  ;;  %v5325_v11 = vld [vmem:[%s9149_s2 + $0x1e0] sm:$0xff]  ;;  %v91_v14 = vld [vmem:[%s9148_s0 + $0x8] sm:$0xff]  ;;  %v93_v24 = vld [vmem:[%s9148_s0 + $0x18] sm:$0xff] }
   0x6   :  { %4847 = vmatmul.mubr.msk.f32.vlgmr.msra.gmra.mxu0 %vm128_vm0, %v90_v9  ;;  %4855 = vmatmul.mubr.msk.f32.vlgmr.msra.gmra.mxu1 %vm128_vm0, %v90_v9  ;;  %v5339_v13 = vld [vmem:[%s9149_s2 + $0x1c0] sm:$0xff]  ;;  %v5349_v15 = vld [vmem:[%s9149_s2 + $0x1a8] sm:$0xff]  ;;  %v96_v39 = vld [vmem:[%s9148_s0 + $0x30] sm:$0xff] }
   0x7   :  { %511 = vmatprep.subr.mxu1 %v5320_v10  ;;  %223 = vmatprep.mubr.f32.mxu0 %v9157_v3  ;;  %v5355_v16 = vld [vmem:[%s9149_s2 + $0x1a0] sm:$0xff]  ;;  %v5363_v17 = vld [vmem:[%s9149_s2 + $0x188] sm:$0xff]  ;;  %v97_v44 = vld [vmem:[%s9148_s0 + $0x38] sm:$0xff] }
   0x8   :  { %512 = vmatpush1.msra.mxu1 %v5325_v11  ;;  %336 = vmatprep.mubr.f32.mxu1 %v9157_v3  ;;  %v5370_v18 = vld [vmem:[%s9149_s2 + $0x180] sm:$0xff]  ;;  %v5380_v20 = vld [vmem:[%s9149_s2 + $0x168] sm:$0xff]  ;;  %v5563_v49 = vld [vmem:[%s9149_s2 + $0x1f8] sm:$0xff] }
   0x9   :  { %513 = vmatprep.subr.mxu1 %v5332_v12  ;;  %750 = vmatprep.subr.mxu0 %v5320_v10  ;;  %v5387_v21 = vld [vmem:[%s9149_s2 + $0x160] sm:$0xff]  ;;  %v5394_v22 = vld [vmem:[%s9149_s2 + $0x148] sm:$0xff]  ;;  %9452 = vst [vmem:[#allocation20_spill] sm:$0xff] %v5563_v49  ;;  %v5569_v50 = vld [vmem:[%s9149_s2 + $0x1f0] sm:$0xff] }
   0xa   :  { %514 = vmatpush1.msra.mxu1 %v5339_v13  ;;  %4848 = vmatmul.mubr.msk.f32.gmra.mxu0 %vm128_vm0, %v91_v14  ;;  %v5401_v23 = vld [vmem:[%s9149_s2 + $0x140] sm:$0xff]  ;;  %v5411_v25 = vld [vmem:[%s9149_s2 + $0x128] sm:$0xff]  ;;  %v5576_v51 = vld [vmem:[%s9149_s2 + $0x1d8] sm:$0xff] }
   0xb   :  { %4856 = vmatmul.mubr.msk.f32.gmra.mxu1 %vm128_vm0, %v91_v14  ;;  %515 = vmatprep.subr.mxu1 %v5349_v15  ;;  %v5418_v26 = vld [vmem:[%s9149_s2 + $0x120] sm:$0xff]  ;;  %v5425_v27 = vld [vmem:[%s9149_s2 + $0x108] sm:$0xff]  ;;  %v5584_v52 = vld [vmem:[%s9149_s2 + $0x1d0] sm:$0xff] }
   0xc   :  { %516 = vmatpush1.msra.mxu1 %v5355_v16  ;;  %229 = vmatprep.mubr.f32.mxu0 %v9157_v3  ;;  %v5432_v28 = vld [vmem:[%s9149_s2 + $0x100] sm:$0xff]  ;;  %v5442_v30 = vld [vmem:[%s9149_s2 + $0xe8] sm:$0xff]  ;;  %v5590_v53 = vld [vmem:[%s9149_s2 + $0x1b8] sm:$0xff] }
   0xd   :  { %517 = vmatprep.subr.mxu1 %v5363_v17  ;;  %342 = vmatprep.mubr.f32.mxu1 %v9157_v3  ;;  %v94_v29 = vld [vmem:[%s9148_s0 + $0x20] sm:$0xff]  ;;  %9436 = vst [vmem:[#allocation4_spill] sm:$0xff] %v5442_v30  ;;  %v5456_v32 = vld [vmem:[%s9149_s2 + $0xc8] sm:$0xff]  ;;  %v5597_v54 = vld [vmem:[%s9149_s2 + $0x1b0] sm:$0xff] }
   0xe   :  { %518 = vmatpush1.msra.mxu1 %v5370_v18  ;;  %4849 = vmatmul.mubr.msk.f32.gmra.mxu0 %vm128_vm0, %v92_v19  ;;  %v5449_v31 = vld [vmem:[%s9149_s2 + $0xe0] sm:$0xff]  ;;  %9438 = vst [vmem:[#allocation6_spill] sm:$0xff] %v5456_v32  ;;  %v95_v34 = vld [vmem:[%s9148_s0 + $0x28] sm:$0xff]  ;;  %v5604_v55 = vld [vmem:[%s9149_s2 + $0x198] sm:$0xff] }
   0xf   :  { %4857 = vmatmul.mubr.msk.f32.gmra.mxu1 %vm128_vm0, %v92_v19  ;;  %519 = vmatprep.subr.mxu1 %v5380_v20  ;;  %9437 = vst [vmem:[#allocation5_spill] sm:$0xff] %v5449_v31  ;;  %v5463_v33 = vld [vmem:[%s9149_s2 + $0xc0] sm:$0xff]  ;;  %v5473_v35 = vld [vmem:[%s9149_s2 + $0xa8] sm:$0xff]  ;;  %v5611_v56 = vld [vmem:[%s9149_s2 + $0x190] sm:$0xff] }
  0x10   :  { %520 = vmatpush1.msra.mxu1 %v5387_v21  ;;  %235 = vmatprep.mubr.f32.mxu0 %v9157_v3  ;;  %9439 = vst [vmem:[#allocation7_spill] sm:$0xff] %v5463_v33  ;;  %9440 = vst [vmem:[#allocation8_spill] sm:$0xff] %v5473_v35  ;;  %v5480_v36 = vld [vmem:[%s9149_s2 + $0xa0] sm:$0xff]  ;;  %v5487_v37 = vld [vmem:[%s9149_s2 + $0x88] sm:$0xff] }
  0x11   :  { %521 = vmatprep.subr.mxu1 %v5394_v22  ;;  %348 = vmatprep.mubr.f32.mxu1 %v9157_v3  ;;  %9441 = vst [vmem:[#allocation9_spill] sm:$0xff] %v5480_v36  ;;  %9442 = vst [vmem:[#allocation10_spill] sm:$0xff] %v5487_v37  ;;  %v5494_v38 = vld [vmem:[%s9149_s2 + $0x80] sm:$0xff]  ;;  %v5504_v40 = vld [vmem:[%s9149_s2 + $0x68] sm:$0xff] }
  0x12   :  { %522 = vmatpush1.msra.mxu1 %v5401_v23  ;;  %4850 = vmatmul.mubr.msk.f32.gmra.mxu0 %vm128_vm0, %v93_v24  ;;  %9443 = vst [vmem:[#allocation11_spill] sm:$0xff] %v5494_v38  ;;  %9444 = vst [vmem:[#allocation12_spill] sm:$0xff] %v5504_v40  ;;  %v5511_v41 = vld [vmem:[%s9149_s2 + $0x60] sm:$0xff]  ;;  %v5518_v42 = vld [vmem:[%s9149_s2 + $0x48] sm:$0xff] }
  0x13   :  { %4858 = vmatmul.mubr.msk.f32.gmra.mxu1 %vm128_vm0, %v93_v24  ;;  %523 = vmatprep.subr.mxu1 %v5411_v25  ;;  %9445 = vst [vmem:[#allocation13_spill] sm:$0xff] %v5511_v41  ;;  %9446 = vst [vmem:[#allocation14_spill] sm:$0xff] %v5518_v42  ;;  %v5525_v43 = vld [vmem:[%s9149_s2 + $0x40] sm:$0xff]  ;;  %v5535_v45 = vld [vmem:[%s9149_s2 + $0x28] sm:$0xff] }
  0x14   :  { %524 = vmatpush1.msra.mxu1 %v5418_v26  ;;  %241 = vmatprep.mubr.f32.mxu0 %v9157_v3  ;;  %9447 = vst [vmem:[#allocation15_spill] sm:$0xff] %v5525_v43  ;;  %9448 = vst [vmem:[#allocation16_spill] sm:$0xff] %v5535_v45  ;;  %v5542_v46 = vld [vmem:[%s9149_s2 + $0x20] sm:$0xff]  ;;  %v5549_v47 = vld [vmem:[%s9149_s2 + $0x8] sm:$0xff] }
  0x15   :  { %525 = vmatprep.subr.mxu1 %v5425_v27  ;;  %354 = vmatprep.mubr.f32.mxu1 %v9157_v3  ;;  %9449 = vst [vmem:[#allocation17_spill] sm:$0xff] %v5542_v46  ;;  %9450 = vst [vmem:[#allocation18_spill] sm:$0xff] %v5549_v47  ;;  %v5556_v48 = vld [vmem:[%s9149_s2] sm:$0xff]  ;;  %v5618_v57 = vld [vmem:[%s9149_s2 + $0x178] sm:$0xff] }
  0x16   :  { %526 = vmatpush1.msra.mxu1 %v5432_v28  ;;  %4851 = vmatmul.mubr.msk.f32.gmra.mxu0 %vm128_vm0, %v94_v29  ;;  %9451 = vst [vmem:[#allocation19_spill] sm:$0xff] %v5556_v48  ;;  %v5625_v58 = vld [vmem:[%s9149_s2 + $0x170] sm:$0xff]  ;;  %v5632_v59 = vld [vmem:[%s9149_s2 + $0x158] sm:$0xff] }
  0x17   :  { %4859 = vmatmul.mubr.msk.f32.gmra.mxu1 %vm128_vm0, %v94_v29  ;;  %527 = vmatprep.subr.mxu1 %v5442_v30  ;;  %v5639_v60 = vld [vmem:[%s9149_s2 + $0x150] sm:$0xff]  ;;  %v5646_v61 = vld [vmem:[%s9149_s2 + $0x138] sm:$0xff] }
  0x18   :  { %528 = vmatpush1.msra.mxu1 %v5449_v31  ;;  %247 = vmatprep.mubr.f32.mxu0 %v9157_v3  ;;  %v5653_v62 = vld [vmem:[%s9149_s2 + $0x130] sm:$0xff]  ;;  %v5660_v63 = vld [vmem:[%s9149_s2 + $0x118] sm:$0xff] }
  0x19   :  { %529 = vmatprep.subr.mxu1 %v5456_v32  ;;  %360 = vmatprep.mubr.f32.mxu1 %v9157_v3  ;;  %v5667_v0 = vld [vmem:[%s9149_s2 + $0x110] sm:$0xff]  ;;  %v5674_v1 = vld [vmem:[%s9149_s2 + $0xf8] sm:$0xff] }
  0x1a   :  { %530 = vmatpush1.msra.mxu1 %v5463_v33  ;;  %4852 = vmatmul.mubr.msk.f32.gmra.mxu0 %vm128_vm0, %v95_v34  ;;  %9453 = vst [vmem:[#allocation21_spill] sm:$0xff] %v5674_v1  ;;  %v5681_v2 = vld [vmem:[%s9149_s2 + $0xf0] sm:$0xff]  ;;  %v5688_v4 = vld [vmem:[%s9149_s2 + $0xd8] sm:$0xff] }
  0x1b   :  { %4860 = vmatmul.mubr.msk.f32.gmra.mxu1 %vm128_vm0, %v95_v34  ;;  %531 = vmatprep.subr.mxu1 %v5473_v35  ;;  %9454 = vst [vmem:[#allocation22_spill] sm:$0xff] %v5681_v2  ;;  %9455 = vst [vmem:[#allocation23_spill] sm:$0xff] %v5688_v4  ;;  %v5695_v5 = vld [vmem:[%s9149_s2 + $0xd0] sm:$0xff]  ;;  %v5702_v6 = vld [vmem:[%s9149_s2 + $0xb8] sm:$0xff] }
  0x1c   :  { %532 = vmatpush1.msra.mxu1 %v5480_v36  ;;  %253 = vmatprep.mubr.f32.mxu0 %v9157_v3  ;;  %9456 = vst [vmem:[#allocation24_spill] sm:$0xff] %v5695_v5  ;;  %9457 = vst [vmem:[#allocation25_spill] sm:$0xff] %v5702_v6  ;;  %v5709_v7 = vld [vmem:[%s9149_s2 + $0xb0] sm:$0xff]  ;;  %v5716_v8 = vld [vmem:[%s9149_s2 + $0x98] sm:$0xff] }
  0x1d   :  { %533 = vmatprep.subr.mxu1 %v5487_v37  ;;  %366 = vmatprep.mubr.f32.mxu1 %v9157_v3  ;;  %9458 = vst [vmem:[#allocation26_spill] sm:$0xff] %v5709_v7  ;;  %9459 = vst [vmem:[#allocation27_spill] sm:$0xff] %v5716_v8  ;;  %v5723_v9 = vld [vmem:[%s9149_s2 + $0x90] sm:$0xff]  ;;  %v5730_v14 = vld [vmem:[%s9149_s2 + $0x78] sm:$0xff] }
  0x1e   :  { %534 = vmatpush1.msra.mxu1 %v5494_v38  ;;  %4853 = vmatmul.mubr.msk.f32.gmra.mxu0 %vm128_vm0, %v96_v39  ;;  %9460 = vst [vmem:[#allocation28_spill] sm:$0xff] %v5723_v9  ;;  %9461 = vst [vmem:[#allocation29_spill] sm:$0xff] %v5730_v14  ;;  %v5737_v19 = vld [vmem:[%s9149_s2 + $0x70] sm:$0xff]  ;;  %v5744_v24 = vld [vmem:[%s9149_s2 + $0x58] sm:$0xff] }
  0x1f   :  { %4861 = vmatmul.mubr.msk.f32.gmra.mxu1 %vm128_vm0, %v96_v39  ;;  %535 = vmatprep.subr.mxu1 %v5504_v40  ;;  %9462 = vst [vmem:[#allocation30_spill] sm:$0xff] %v5737_v19  ;;  %9463 = vst [vmem:[#allocation31_spill] sm:$0xff] %v5744_v24  ;;  %v5751_v29 = vld [vmem:[%s9149_s2 + $0x50] sm:$0xff]  ;;  %v5758_v34 = vld [vmem:[%s9149_s2 + $0x38] sm:$0xff] }
  0x20   :  { %536 = vmatpush1.msra.mxu1 %v5511_v41  ;;  %259 = vmatprep.mubr.f32.mxu0 %v9157_v3  ;;  %9464 = vst [vmem:[#allocation32_spill] sm:$0xff] %v5751_v29  ;;  %9465 = vst [vmem:[#allocation33_spill] sm:$0xff] %v5758_v34  ;;  %v5765_v39 = vld [vmem:[%s9149_s2 + $0x30] sm:$0xff] }
  0x21   :  { %537 = vmatprep.subr.mxu1 %v5518_v42  ;;  %372 = vmatprep.mubr.f32.mxu1 %v9157_v3  ;;  %9466 = vst [vmem:[#allocation34_spill] sm:$0xff] %v5765_v39 }
  0x22   :  { %538 = vmatpush1.msra.mxu1 %v5525_v43  ;;  %4854 = vmatmul.mubr.msk.f32.gmra.mxu0 %vm128_vm0, %v97_v44 }
  0x23   :  { %4862 = vmatmul.mubr.msk.f32.gmra.mxu1 %vm128_vm0, %v97_v44  ;;  %539 = vmatprep.subr.mxu1 %v5535_v45  ;;  %v5772_v44 = vld [vmem:[%s9149_s2 + $0x18] sm:$0xff] }
  0x24   :  { %540 = vmatpush1.msra.mxu1 %v5542_v46  ;;  %575 = vmatprep.mubr.f32.mxu1 %v9157_v3  ;;  %9467 = vst [vmem:[#allocation35_spill] sm:$0xff] %v5772_v44 }
  0x25   :  { %541 = vmatprep.subr.mxu1 %v5549_v47  ;;  %751 = vmatpush1.msra.mxu0 %v5325_v11 }
  0x26   :  { %542 = vmatpush1.msra.mxu1 %v5556_v48  ;;  %752 = vmatprep.subr.mxu0 %v5332_v12 }
  0x27   :  { %576 = vmatmul.mubr.f32.vlgmr.msra.gmra.mxu1 %v9157_v3  ;;  %582 = vmatprep.subr.mxu1 %v5563_v49 }
  0x28   :  { %583 = vmatpush1.msra.mxu1 %v5569_v50  ;;  %646 = vmatprep.mubr.f32.mxu1 %v9157_v3  ;;  %v5779_v3 = vld [vmem:[%s9149_s2 + $0x10] sm:$0xff] }
  0x29   :  { %584 = vmatprep.subr.mxu1 %v5576_v51  ;;  %753 = vmatpush1.msra.mxu0 %v5339_v13  ;;  %9468 = vst [vmem:[#allocation36_spill] sm:$0xff] %v5779_v3 }
  0x2a   :  { %585 = vmatpush1.msra.mxu1 %v5584_v52  ;;  %754 = vmatprep.subr.mxu0 %v5349_v15 }
  0x2b   :  { %586 = vmatprep.subr.mxu1 %v5590_v53  ;;  %755 = vmatpush1.msra.mxu0 %v5355_v16 }
  0x2c   :  { %587 = vmatpush1.msra.mxu1 %v5597_v54  ;;  %756 = vmatprep.subr.mxu0 %v5363_v17 }
  0x2d   :  { %588 = vmatprep.subr.mxu1 %v5604_v55  ;;  %757 = vmatpush1.msra.mxu0 %v5370_v18 }
  0x2e   :  { %589 = vmatpush1.msra.mxu1 %v5611_v56  ;;  %758 = vmatprep.subr.mxu0 %v5380_v20 }
  0x2f   :  { %590 = vmatprep.subr.mxu1 %v5618_v57  ;;  %759 = vmatpush1.msra.mxu0 %v5387_v21 }
  0x30   :  { %591 = vmatpush1.msra.mxu1 %v5625_v58  ;;  %760 = vmatprep.subr.mxu0 %v5394_v22 }
  0x31   :  { %592 = vmatprep.subr.mxu1 %v5632_v59  ;;  %761 = vmatpush1.msra.mxu0 %v5401_v23 }
  0x32   :  { %593 = vmatpush1.msra.mxu1 %v5639_v60  ;;  %762 = vmatprep.subr.mxu0 %v5411_v25 }
  0x33   :  { %594 = vmatprep.subr.mxu1 %v5646_v61  ;;  %763 = vmatpush1.msra.mxu0 %v5418_v26 }
  0x34   :  { %595 = vmatpush1.msra.mxu1 %v5653_v62  ;;  %764 = vmatprep.subr.mxu0 %v5425_v27 }
  0x35   :  { %596 = vmatprep.subr.mxu1 %v5660_v63  ;;  %765 = vmatpush1.msra.mxu0 %v5432_v28 }
  0x36   :  { %597 = vmatpush1.msra.mxu1 %v5667_v0  ;;  %766 = vmatprep.subr.mxu0 %v5442_v30 }
  0x37   :  { %598 = vmatprep.subr.mxu1 %v5674_v1  ;;  %767 = vmatpush1.msra.mxu0 %v5449_v31 }
  0x38   :  { %599 = vmatpush1.msra.mxu1 %v5681_v2  ;;  %768 = vmatprep.subr.mxu0 %v5456_v32 }
  0x39   :  { %600 = vmatprep.subr.mxu1 %v5688_v4  ;;  %769 = vmatpush1.msra.mxu0 %v5463_v33 }
  0x3a   :  { %601 = vmatpush1.msra.mxu1 %v5695_v5  ;;  %770 = vmatprep.subr.mxu0 %v5473_v35 }
  0x3b   :  { %602 = vmatprep.subr.mxu1 %v5702_v6  ;;  %771 = vmatpush1.msra.mxu0 %v5480_v36 }
  0x3c   :  { %603 = vmatpush1.msra.mxu1 %v5709_v7  ;;  %772 = vmatprep.subr.mxu0 %v5487_v37 }
  0x3d   :  { %604 = vmatprep.subr.mxu1 %v5716_v8  ;;  %773 = vmatpush1.msra.mxu0 %v5494_v38 }
  0x3e   :  { %605 = vmatpush1.msra.mxu1 %v5723_v9  ;;  %774 = vmatprep.subr.mxu0 %v5504_v40 }
  0x3f   :  { %606 = vmatprep.subr.mxu1 %v5730_v14  ;;  %775 = vmatpush1.msra.mxu0 %v5511_v41 }
  0x40   :  { %607 = vmatpush1.msra.mxu1 %v5737_v19  ;;  %776 = vmatprep.subr.mxu0 %v5518_v42 }
  0x41   :  { %608 = vmatprep.subr.mxu1 %v5744_v24  ;;  %777 = vmatpush1.msra.mxu0 %v5525_v43 }
  0x42   :  { %609 = vmatpush1.msra.mxu1 %v5751_v29  ;;  %778 = vmatprep.subr.mxu0 %v5535_v45  ;;  %v9469_v45 = vmov 0.0  }
  0x43   :  { %610 = vmatprep.subr.mxu1 %v5758_v34  ;;  %779 = vmatpush1.msra.mxu0 %v5542_v46 }
  0x44   :  { %611 = vmatpush1.msra.mxu1 %v5765_v39  ;;  %780 = vmatprep.subr.mxu0 %v5549_v47 }
  0x45   :  { %612 = vmatprep.subr.mxu1 %v5772_v44  ;;  %781 = vmatpush1.msra.mxu0 %v5556_v48 }
  0x46   :  { %613 = vmatpush1.msra.mxu1 %v5779_v3  ;;  %814 = vmatprep.mubr.f32.mxu0 %v9469_v45 }
  0x47   :  { %647 = vmatmul.mubr.f32.vlgmr.msra.gmra.mxu1 %v9469_v45  ;;  %821 = vmatprep.subr.mxu1 %v5563_v49 }
  0x48   :  { %822 = vmatpush1.msra.mxu1 %v5569_v50  ;;  %885 = vmatprep.mubr.f32.mxu1 %v9469_v45 }
  0x49   :  { %823 = vmatprep.subr.mxu1 %v5576_v51  ;;  %989 = vmatprep.subr.mxu0 %v5320_v10  ;;  %v32_v10 = vlaneseq }
  0x4a   :  { %824 = vmatpush1.msra.mxu1 %v5584_v52 }
  0x4b   :  { %825 = vmatprep.subr.mxu1 %v5590_v53  ;;  %v5824_v45 = vshrl.u32 %v32_v10, 7 }
  0x4c   :  { %826 = vmatpush1.msra.mxu1 %v5597_v54 }
  0x4d   :  { %827 = vmatprep.subr.mxu1 %v5604_v55  ;;  %9470 = vst [vmem:[#allocation37_spill] sm:$0xff] %v5824_v45  ;;  %v9178_v48 = vsub.s32 0, %v5824_v45  ;;  %v9179_v46 = vsub.s32 2, %v5824_v45  ;;  %v9472_v40 = vsub.s32 3, %v5824_v45 }
  0x4e   :  { %828 = vmatpush1.msra.mxu1 %v5611_v56 }
  0x4f   :  { %829 = vmatprep.subr.mxu1 %v5618_v57 }
  0x50   :  { %830 = vmatpush1.msra.mxu1 %v5625_v58 }
  0x51   :  { %831 = vmatprep.subr.mxu1 %v5632_v59 }
  0x52   :  { %832 = vmatpush1.msra.mxu1 %v5639_v60 }
  0x53   :  { %833 = vmatprep.subr.mxu1 %v5646_v61 }
  0x54   :  { %834 = vmatpush1.msra.mxu1 %v5653_v62 }
  0x55   :  { %835 = vmatprep.subr.mxu1 %v5660_v63 }
  0x56   :  { %836 = vmatpush1.msra.mxu1 %v5667_v0 }
  0x57   :  { %837 = vmatprep.subr.mxu1 %v5674_v1  ;;  %v9482_v1 = vmov 0 }
  0x58   :  { %838 = vmatpush1.msra.mxu1 %v5681_v2 }
  0x59   :  { %839 = vmatprep.subr.mxu1 %v5688_v4 }
  0x5a   :  { %840 = vmatpush1.msra.mxu1 %v5695_v5 }
  0x5b   :  { %841 = vmatprep.subr.mxu1 %v5702_v6 }
  0x5c   :  { %842 = vmatpush1.msra.mxu1 %v5709_v7 }
  0x5d   :  { %843 = vmatprep.subr.mxu1 %v5716_v8 }
  0x5e   :  { %844 = vmatpush1.msra.mxu1 %v5723_v9 }
  0x5f   :  { %845 = vmatprep.subr.mxu1 %v5730_v14 }
  0x60   :  { %846 = vmatpush1.msra.mxu1 %v5737_v19  ;;  %v5849_v19 = vand.u32 127, %v32_v10 }
  0x61   :  { %847 = vmatprep.subr.mxu1 %v5744_v24 }
  0x62   :  { %848 = vmatpush1.msra.mxu1 %v5751_v29  ;;  %9471 = vst [vmem:[#allocation38_spill] sm:$0xff] %v5849_v19  ;;  %v34_v36 = vadd.s32 128, %v5849_v19  ;;  %vm85_vm2 = vcmp.lt.s32.totalorder %v5849_v19, 32 }
  0x63   :  { %849 = vmatprep.subr.mxu1 %v5758_v34 }
  0x64   :  { %850 = vmatpush1.msra.mxu1 %v5765_v39  ;;  %v106_v39 = vld [vmem:[%s9150_s3] sm:$0xf]  ;;  %v48_v2 = vand.u32 127, %v34_v36 }
  0x65   :  { %851 = vmatprep.subr.mxu1 %v5772_v44  ;;  %v9182_v44 = vsub.s32 1, %v5824_v45  ;;  %v5843_v43 = vrot.slane %v106_v39, %v9178_v48  ;;  %v5847_v24 = vrot.slane %v106_v39, %v9179_v46  ;;  %v5860_v9 = vrot.slane %v106_v39, %v9472_v40 }
  0x66   :  { %852 = vmatpush1.msra.mxu1 %v5779_v3  ;;  %vm5918_vm4 = vcmp.lt.s32.totalorder %v48_v2, 32 }
  0x67   :  { %1060 = vmatprep.subr.mxu1 %v5563_v49  ;;  %v5853_v41 = vrot.slane %v106_v39, %v9182_v44 }
  0xc6   :  { %v5827_v47 = vpop.f32.mrf.mxu0  ;;  %v5830_v29 = vpop.f32.mrf.mxu1 }
  0xc8   :  { %v5836_v3 = vpop.f32.mrf.mxu0  ;;  %v5839_v34 = vpop.f32.mrf.mxu1 }
  0xca   :  { %v225_v42 = vpop.f32.mrf.mxu0 }
  0xcb   :  { %v5856_v14 = vadd.f32 %v225_v42, %v5843_v43  ;;  %v338_v49 = vpop.f32.mrf.mxu1  ;;  %v35_v42 = vadd.s32 256, %v5849_v19 }
  0xcc   :  { %v5863_v48 = vadd.f32 %v338_v49, %v5847_v24  ;;  %v227_v46 = vpop.f32.mrf.mxu0  ;;  %v36_v49 = vadd.s32 384, %v5849_v19 }
  0xcd   :  { %v5866_v38 = vadd.f32 %v227_v46, %v5853_v41  ;;  %v340_v10 = vpop.f32.mrf.mxu1  ;;  %v55_v35 = vand.u32 127, %v35_v42 }
  0xce   :  { %9473 = vst [vmem:[#allocation39_spill] sm:$0xff] %v5863_v48  ;;  %v5869_v8 = vadd.f32 %v340_v10, %v5860_v9  ;;  %v231_v44 = vpop.f32.mrf.mxu0  ;;  %v62_v4 = vand.u32 127, %v36_v49  ;;  %v9486_v49 = vmov 0 }
  0xcf   :  { %9474 = vst [vmem:[#allocation40_spill] sm:$0xff] %v5866_v38  ;;  %v232_v37 = vadd.f32 %v231_v44, %v5843_v43  ;;  %v344_v7 = vpop.f32.mrf.mxu1  ;;  %vm5894_vm1 = vcmp.lt.s32.totalorder %v55_v35, 32 }
  0xd0   :  { %9475 = vst [vmem:[#allocation41_spill] sm:$0xff] %v5869_v8  ;;  %v5874_v40 = vadd.f32 %v344_v7, %v5847_v24  ;;  %v233_v39 = vpop.f32.mrf.mxu0  ;;  %v9483_v1 = vsel %vm5894_vm1, 4294967295, %v9482_v1  ;;  %vm5903_vm3 = vcmp.lt.s32.totalorder %v62_v4, 32 }
  0xd1   :  { %v5878_v45 = vadd.f32 %v233_v39, %v5853_v41  ;;  %v346_v46 = vpop.f32.mrf.mxu1  ;;  %9484 = vst [vmem:[#allocation48_spill] sm:$0xff] %v9483_v1  ;;  %v9487_v49 = vsel %vm5903_vm3, 4294967295, %v9486_v49  ;;  %v7684_v1 = vld [vmem:[%s9152_s5 + $0x38] sm:$0xff] }
  0xd2   :  { %9476 = vst [vmem:[#allocation42_spill] sm:$0xff] %v5874_v40  ;;  %v5882_v10 = vadd.f32 %v346_v46, %v5860_v9  ;;  %v237_v6 = vpop.f32.mrf.mxu0  ;;  %9488 = vst [vmem:[#allocation50_spill] sm:$0xff] %v9487_v49 }
  0xd3   :  { %9477 = vst [vmem:[#allocation43_spill] sm:$0xff] %v5878_v45  ;;  %v238_v44 = vadd.f32 %v237_v6, %v5843_v43  ;;  %v350_v5 = vpop.f32.mrf.mxu1 }
  0xd4   :  { %9478 = vst [vmem:[#allocation44_spill] sm:$0xff] %v5882_v10  ;;  %v5886_v7 = vadd.f32 %v350_v5, %v5847_v24  ;;  %v239_v33 = vpop.f32.mrf.mxu0 }
  0xd5   :  { %v5889_v32 = vadd.f32 %v239_v33, %v5853_v41  ;;  %v352_v39 = vpop.f32.mrf.mxu1 }
  0xd6   :  { %9479 = vst [vmem:[#allocation45_spill] sm:$0xff] %v5886_v7  ;;  %v5892_v31 = vadd.f32 %v352_v39, %v5860_v9  ;;  %v243_v46 = vpop.f32.mrf.mxu0 }
  0xd7   :  { %9480 = vst [vmem:[#allocation46_spill] sm:$0xff] %v5889_v32  ;;  %v244_v6 = vadd.f32 %v243_v46, %v5843_v43  ;;  %v356_v42 = vpop.f32.mrf.mxu1  ;;  %v220_v32 = vadd.f32 %v5827_v47, %v5843_v43 }
  0xd8   :  { %9481 = vst [vmem:[#allocation47_spill] sm:$0xff] %v5892_v31  ;;  %v5901_v5 = vadd.f32 %v356_v42, %v5847_v24  ;;  %v245_v33 = vpop.f32.mrf.mxu0  ;;  %v9492_v42 = vmov 0 }
  0xd9   :  { %v5908_v36 = vadd.f32 %v245_v33, %v5853_v41  ;;  %v358_v35 = vpop.f32.mrf.mxu1  ;;  %v5912_v39 = vsel %vm85_vm2, %v238_v44, %v244_v6  ;;  %v5916_v46 = vsel %vm85_vm2, %v244_v6, %v238_v44  ;;  %v9493_v42 = vsel %vm5918_vm4, 4294967295, %v9492_v42 }
  0xda   :  { %9485 = vst [vmem:[#allocation49_spill] sm:$0xff] %v5901_v5  ;;  %9490 = vst [vmem:[#allocation52_spill] sm:$0xff] %v5912_v39  ;;  %v5923_v4 = vadd.f32 %v358_v35, %v5860_v9  ;;  %v249_v30 = vpop.f32.mrf.mxu0 }
  0xdb   :  { %9489 = vst [vmem:[#allocation51_spill] sm:$0xff] %v5908_v36  ;;  %9491 = vst [vmem:[#allocation53_spill] sm:$0xff] %v5916_v46  ;;  %v250_v44 = vadd.f32 %v249_v30, %v5843_v43  ;;  %v362_v2 = vpop.f32.mrf.mxu1 }
  0xdc   :  { %9494 = vst [vmem:[#allocation54_spill] sm:$0xff] %v9493_v42  ;;  %9495 = vst [vmem:[#allocation55_spill] sm:$0xff] %v5923_v4  ;;  %v5943_v33 = vadd.f32 %v362_v2, %v5847_v24  ;;  %v251_v46 = vpop.f32.mrf.mxu0 }
  0xdd   :  { %v5954_v6 = vadd.f32 %v251_v46, %v5853_v41  ;;  %v364_v5 = vpop.f32.mrf.mxu1  ;;  %v5958_v35 = vsel %vm85_vm2, %v232_v37, %v250_v44  ;;  %v5962_v2 = vsel %vm85_vm2, %v250_v44, %v232_v37 }
  0xde   :  { %9496 = vst [vmem:[#allocation56_spill] sm:$0xff] %v5943_v33  ;;  %9498 = vst [vmem:[#allocation58_spill] sm:$0xff] %v5962_v2  ;;  %v5965_v7 = vadd.f32 %v364_v5, %v5860_v9  ;;  %v255_v30 = vpop.f32.mrf.mxu0 }
  0xdf   :  { %9497 = vst [vmem:[#allocation57_spill] sm:$0xff] %v5954_v6  ;;  %v256_v4 = vadd.f32 %v255_v30, %v5843_v43  ;;  %v368_v31 = vpop.f32.mrf.mxu1 }
  0xe0   :  { %9499 = vst [vmem:[#allocation59_spill] sm:$0xff] %v5965_v7  ;;  %v5985_v44 = vadd.f32 %v368_v31, %v5847_v24  ;;  %v257_v39 = vpop.f32.mrf.mxu0 }
  0xe1   :  { %v5996_v37 = vadd.f32 %v257_v39, %v5853_v41  ;;  %v370_v2 = vpop.f32.mrf.mxu1  ;;  %v6001_v31 = vsel %vm85_vm2, %v5856_v14, %v256_v4  ;;  %v6006_v5 = vsel %vm85_vm2, %v256_v4, %v5856_v14  ;;  %v6047_v39 = vadd.f32 %v5836_v3, %v5853_v41 }
  0xe2   :  { %9500 = vst [vmem:[#allocation60_spill] sm:$0xff] %v5985_v44  ;;  %9502 = vst [vmem:[#allocation62_spill] sm:$0xff] %v6006_v5  ;;  %v6009_v30 = vadd.f32 %v370_v2, %v5860_v9  ;;  %v261_v36 = vpop.f32.mrf.mxu0  ;;  %v6032_v5 = vadd.f32 %v5830_v29, %v5847_v24 }
  0xe3   :  { %9501 = vst [vmem:[#allocation61_spill] sm:$0xff] %v5996_v37  ;;  %v262_v14 = vadd.f32 %v261_v36, %v5843_v43  ;;  %v374_v4 = vpop.f32.mrf.mxu1  ;;  %9506 = vst [vmem:[#allocation66_spill] sm:$0xff] %v6047_v39  ;;  %v6058_v43 = vadd.f32 %v5839_v34, %v5860_v9 }
  0xe4   :  { %9503 = vst [vmem:[#allocation63_spill] sm:$0xff] %v6009_v30  ;;  %9504 = vst [vmem:[#allocation64_spill] sm:$0xff] %v6032_v5  ;;  %v6035_v46 = vadd.f32 %v374_v4, %v5847_v24  ;;  %v263_v47 = vpop.f32.mrf.mxu0 }
  0xe5   :  { %v6050_v29 = vadd.f32 %v263_v47, %v5853_v41  ;;  %v376_v24 = vpop.f32.mrf.mxu1  ;;  %v6054_v4 = vsel %vm85_vm2, %v262_v14, %v220_v32  ;;  %9509 = vst [vmem:[#allocation69_spill] sm:$0xff] %v6058_v43 }
  0xe6   :  { %9505 = vst [vmem:[#allocation65_spill] sm:$0xff] %v6035_v46  ;;  %9508 = vst [vmem:[#allocation68_spill] sm:$0xff] %v6054_v4  ;;  %v6061_v2 = vadd.f32 %v376_v24, %v5860_v9  ;;  %v379_v9 = vsel %vm85_vm2, %v220_v32, %v262_v14  ;;  %v381_v32 = vsel %vm5894_vm1, %v6032_v5, %v6035_v46  ;;  %v6470_v5 = vld [vmem:[%s9149_s2 + $0x60] sm:$0xff]  ;;  %v6475_v46 = vld [vmem:[%s9149_s2 + $0x70] sm:$0xff] }
  0xe7   :  { %9507 = vst [vmem:[#allocation67_spill] sm:$0xff] %v6050_v29  ;;  %v577_v47 = vpop.f32.mrf.mxu1  ;;  %v380_v24 = vsel %vm5918_vm4, %v6047_v39, %v6050_v29  ;;  %v6482_v39 = vld [vmem:[%s9149_s2 + $0x48] sm:$0xff]  ;;  %v6487_v29 = vld [vmem:[%s9149_s2 + $0x58] sm:$0xff] }
  0xe8   :  { %9510 = vst [vmem:[#allocation70_spill] sm:$0xff] %v6061_v2  ;;  %v653_v36 = vadd.f32 %v577_v47, %v379_v9 }
  0xe9   :  { %v579_v3 = vpop.f32.mrf.mxu1 }
  0xea   :  { %v654_v4 = vadd.f32 %v579_v3, %v380_v24  ;;  %v4863_v7 = vmul.f32 -1.442695, %v653_v36  ;;  %v382_v3 = vsel %vm5903_vm3, %v6058_v43, %v6061_v2  ;;  %v6463_v2 = vld [vmem:[%s9149_s2 + $0x78] sm:$0xff] }
  0xec   :  { %v4864_v10 = vmul.f32 -1.442695, %v654_v4  ;;  %4981 = vpow2.f32 %v4863_v7 }
  0xee   :  { %4983 = vpow2.f32 %v4864_v10 }
  0xf9   :  { %v4982_v41 = vpop.eup %4981 }
  0xfa   :  { %v666_v40 = vadd.f32 1.0, %v4982_v41 }
  0xfb   :  { %v4984_v33 = vpop.eup %4983 }
  0xfc   :  { %v667_v6 = vadd.f32 1.0, %v4984_v33  ;;  %4985 = vrcp.f32 %v666_v40 }
  0xfe   :  { %4987 = vrcp.f32 %v667_v6  ;;  %v9541_v6 = vld [vmem:[#allocation35_spill] sm:$0xff] }
 0x107   :  { %v648_v14 = vpop.f32.mrf.mxu1 }
 0x108   :  { %v655_v34 = vadd.f32 %v648_v14, %v381_v32 }
 0x109   :  { %v650_v36 = vpop.f32.mrf.mxu1  ;;  %v4986_v33 = vpop.eup %4985 }
 0x10a   :  { %v4865_v7 = vmul.f32 -1.442695, %v655_v34  ;;  %v656_v10 = vadd.f32 %v650_v36, %v382_v3  ;;  %v9543_v34 = vmov 0.0   ;;  %v9544_v3 = vld [vmem:[#allocation36_spill] sm:$0xff] }
 0x10b   :  { %v4988_v4 = vpop.eup %4987  ;;  %v9545_v36 = vld [vmem:[#allocation20_spill] sm:$0xff] }
 0x10c   :  { %4989 = vpow2.f32 %v4865_v7  ;;  %v676_v24 = vmul.f32 0.0, %v4988_v4 }
 0x10d   :  { %4991 = vtanh.f32 %v656_v10 }
 0x119   :  { %v4990_v41 = vpop.eup %4989 }
 0x11a   :  { %v4992_v47 = vpop.eup %4991  ;;  %v668_v9 = vadd.f32 1.0, %v4990_v41  ;;  %v9546_v41 = vsel %vm5918_vm4, %v5866_v38, %v5996_v37  ;;  %v6518_v38 = vld [vmem:[%s9149_s2 + $0x20] sm:$0xff]  ;;  %v6523_v37 = vld [vmem:[%s9149_s2 + $0x30] sm:$0xff] }
 0x11b   :  { %v677_v19 = vmul.f32 %v4992_v47, %v4986_v33 }
 0x11c   :  { %4993 = vrcp.f32 %v668_v9 }
 0x11d   :  { %v6089_v32 = vadd.f32 %v677_v19, %v676_v24  ;;  %v9540_v19 = vld [vmem:[#allocation18_spill] sm:$0xff] }
 0x11f   :  { %4995 = vtanh.f32 %v6089_v32 }
 0x129   :  { %v4994_v14 = vpop.eup %4993 }
 0x12c   :  { %v4996_v43 = vpop.eup %4995 }
 0x12d   :  { %v6092_v40 = vmul.f32 %v4996_v43, %v4994_v14  ;;  %v9542_v43 = vld [vmem:[#allocation19_spill] sm:$0xff]  ;;  %v9547_v14 = vsel %vm5894_vm1, %v5863_v48, %v5985_v44  ;;  %v6506_v48 = vld [vmem:[%s9149_s2 + $0x28] sm:$0xff] }
 0x12e   :  { %v6511_v44 = vld [vmem:[%s9149_s2 + $0x38] sm:$0xff] }
 0x12f   :  { %9511 = vst [vmem:[#allocation71_spill] sm:$0xff] %v6092_v40  ;;  %815 = vmatmul.mubr.f32.vlgmr.msra.gmra.mxu0 %v6092_v40  ;;  %886 = vmatmul.mubr.f32.vlgmr.msra.gmra.mxu1 %v6092_v40  ;;  %v6458_v40 = vld [vmem:[%s9149_s2 + $0x68] sm:$0xff] }
 0x130   :  { %990 = vmatpush1.msra.mxu0 %v5325_v11  ;;  %1061 = vmatpush1.msra.mxu1 %v5569_v50  ;;  %v9512_v11 = vld [vmem:[#allocation4_spill] sm:$0xff] }
 0x131   :  { %991 = vmatprep.subr.mxu0 %v5332_v12  ;;  %1062 = vmatprep.subr.mxu1 %v5576_v51  ;;  %v9513_v12 = vld [vmem:[#allocation21_spill] sm:$0xff] }
 0x132   :  { %992 = vmatpush1.msra.mxu0 %v5339_v13  ;;  %1063 = vmatpush1.msra.mxu1 %v5584_v52  ;;  %v9514_v13 = vld [vmem:[#allocation5_spill] sm:$0xff]  ;;  %v9527_v52 = vld [vmem:[#allocation28_spill] sm:$0xff] }
 0x133   :  { %993 = vmatprep.subr.mxu0 %v5349_v15  ;;  %1064 = vmatprep.subr.mxu1 %v5590_v53  ;;  %v9515_v15 = vld [vmem:[#allocation22_spill] sm:$0xff]  ;;  %v9528_v53 = vld [vmem:[#allocation12_spill] sm:$0xff]  ;;  %9564 = vst [vmem:[#allocation28_spill] sm:$0xff] %v6463_v2 }
 0x134   :  { %994 = vmatpush1.msra.mxu0 %v5355_v16  ;;  %1065 = vmatpush1.msra.mxu1 %v5597_v54  ;;  %v9516_v16 = vld [vmem:[#allocation6_spill] sm:$0xff]  ;;  %v9529_v54 = vld [vmem:[#allocation29_spill] sm:$0xff]  ;;  %9565 = vst [vmem:[#allocation12_spill] sm:$0xff] %v6470_v5 }
 0x135   :  { %995 = vmatprep.subr.mxu0 %v5363_v17  ;;  %1066 = vmatprep.subr.mxu1 %v5604_v55  ;;  %v9517_v17 = vld [vmem:[#allocation23_spill] sm:$0xff]  ;;  %v9530_v55 = vld [vmem:[#allocation13_spill] sm:$0xff]  ;;  %9566 = vst [vmem:[#allocation29_spill] sm:$0xff] %v6475_v46 }
 0x136   :  { %996 = vmatpush1.msra.mxu0 %v5370_v18  ;;  %1067 = vmatpush1.msra.mxu1 %v5611_v56  ;;  %v9518_v18 = vld [vmem:[#allocation7_spill] sm:$0xff]  ;;  %v9531_v56 = vld [vmem:[#allocation30_spill] sm:$0xff]  ;;  %9567 = vst [vmem:[#allocation13_spill] sm:$0xff] %v6482_v39 }
 0x137   :  { %997 = vmatprep.subr.mxu0 %v5380_v20  ;;  %1068 = vmatprep.subr.mxu1 %v5618_v57  ;;  %v9519_v20 = vld [vmem:[#allocation24_spill] sm:$0xff]  ;;  %v9532_v57 = vld [vmem:[#allocation14_spill] sm:$0xff]  ;;  %9568 = vst [vmem:[#allocation30_spill] sm:$0xff] %v6487_v29 }
 0x138   :  { %998 = vmatpush1.msra.mxu0 %v5387_v21  ;;  %1069 = vmatpush1.msra.mxu1 %v5625_v58  ;;  %v9520_v21 = vld [vmem:[#allocation8_spill] sm:$0xff]  ;;  %v9533_v58 = vld [vmem:[#allocation31_spill] sm:$0xff] }
 0x139   :  { %999 = vmatprep.subr.mxu0 %v5394_v22  ;;  %1070 = vmatprep.subr.mxu1 %v5632_v59  ;;  %v9521_v22 = vld [vmem:[#allocation25_spill] sm:$0xff]  ;;  %v9534_v59 = vld [vmem:[#allocation15_spill] sm:$0xff] }
 0x13a   :  { %1000 = vmatpush1.msra.mxu0 %v5401_v23  ;;  %1071 = vmatpush1.msra.mxu1 %v5639_v60  ;;  %v9522_v23 = vld [vmem:[#allocation9_spill] sm:$0xff]  ;;  %v9535_v60 = vld [vmem:[#allocation32_spill] sm:$0xff]  ;;  %9571 = vst [vmem:[#allocation15_spill] sm:$0xff] %v6506_v48 }
 0x13b   :  { %1001 = vmatprep.subr.mxu0 %v5411_v25  ;;  %1072 = vmatprep.subr.mxu1 %v5646_v61  ;;  %v9523_v25 = vld [vmem:[#allocation26_spill] sm:$0xff]  ;;  %v9536_v61 = vld [vmem:[#allocation16_spill] sm:$0xff]  ;;  %9572 = vst [vmem:[#allocation32_spill] sm:$0xff] %v6511_v44 }
 0x13c   :  { %1002 = vmatpush1.msra.mxu0 %v5418_v26  ;;  %1073 = vmatpush1.msra.mxu1 %v5653_v62  ;;  %v9524_v26 = vld [vmem:[#allocation10_spill] sm:$0xff]  ;;  %v9537_v62 = vld [vmem:[#allocation33_spill] sm:$0xff]  ;;  %9573 = vst [vmem:[#allocation16_spill] sm:$0xff] %v6518_v38 }
 0x13d   :  { %1003 = vmatprep.subr.mxu0 %v5425_v27  ;;  %1074 = vmatprep.subr.mxu1 %v5660_v63  ;;  %v9525_v27 = vld [vmem:[#allocation27_spill] sm:$0xff]  ;;  %v9538_v63 = vld [vmem:[#allocation17_spill] sm:$0xff]  ;;  %9574 = vst [vmem:[#allocation33_spill] sm:$0xff] %v6523_v37 }
 0x13e   :  { %1004 = vmatpush1.msra.mxu0 %v5432_v28  ;;  %1075 = vmatpush1.msra.mxu1 %v5667_v0  ;;  %v9526_v28 = vld [vmem:[#allocation11_spill] sm:$0xff]  ;;  %v9539_v0 = vld [vmem:[#allocation34_spill] sm:$0xff] }
 0x13f   :  { %1005 = vmatprep.subr.mxu0 %v9512_v11  ;;  %1076 = vmatprep.subr.mxu1 %v9513_v12  ;;  %9563 = vst [vmem:[#allocation11_spill] sm:$0xff] %v6458_v40 }
 0x140   :  { %1006 = vmatpush1.msra.mxu0 %v9514_v13  ;;  %1077 = vmatpush1.msra.mxu1 %v9515_v15  ;;  %v9548_v13 = vsel %vm5903_vm3, %v5869_v8, %v6009_v30  ;;  %v6494_v8 = vld [vmem:[%s9149_s2 + $0x40] sm:$0xff]  ;;  %v6499_v30 = vld [vmem:[%s9149_s2 + $0x50] sm:$0xff] }
 0x141   :  { %1007 = vmatprep.subr.mxu0 %v9516_v16  ;;  %1078 = vmatprep.subr.mxu1 %v9517_v17  ;;  %9569 = vst [vmem:[#allocation14_spill] sm:$0xff] %v6494_v8  ;;  %9570 = vst [vmem:[#allocation31_spill] sm:$0xff] %v6499_v30 }
 0x142   :  { %1008 = vmatpush1.msra.mxu0 %v9518_v18  ;;  %1079 = vmatpush1.msra.mxu1 %v9519_v20 }
 0x143   :  { %1009 = vmatprep.subr.mxu0 %v9520_v21  ;;  %1080 = vmatprep.subr.mxu1 %v9521_v22 }
 0x144   :  { %1010 = vmatpush1.msra.mxu0 %v9522_v23  ;;  %1081 = vmatpush1.msra.mxu1 %v9523_v25 }
 0x145   :  { %1011 = vmatprep.subr.mxu0 %v9524_v26  ;;  %1082 = vmatprep.subr.mxu1 %v9525_v27 }
 0x146   :  { %1012 = vmatpush1.msra.mxu0 %v9526_v28  ;;  %1083 = vmatpush1.msra.mxu1 %v9527_v52 }
 0x147   :  { %1013 = vmatprep.subr.mxu0 %v9528_v53  ;;  %1084 = vmatprep.subr.mxu1 %v9529_v54 }
 0x148   :  { %1014 = vmatpush1.msra.mxu0 %v9530_v55  ;;  %1085 = vmatpush1.msra.mxu1 %v9531_v56  ;;  %v6198_v56 = vld [vmem:[%s9149_s2 + $0x1e0] sm:$0xff] }
 0x149   :  { %1015 = vmatprep.subr.mxu0 %v9532_v57  ;;  %1086 = vmatprep.subr.mxu1 %v9533_v58  ;;  %v6215_v57 = vld [vmem:[%s9149_s2 + $0x1d0] sm:$0xff]  ;;  %v6222_v58 = vld [vmem:[%s9149_s2 + $0x1a8] sm:$0xff] }
 0x14a   :  { %1016 = vmatpush1.msra.mxu0 %v9534_v59  ;;  %1087 = vmatpush1.msra.mxu1 %v9535_v60  ;;  %v6227_v59 = vld [vmem:[%s9149_s2 + $0x1b8] sm:$0xff]  ;;  %v6234_v60 = vld [vmem:[%s9149_s2 + $0x1a0] sm:$0xff] }
 0x14b   :  { %1017 = vmatprep.subr.mxu0 %v9536_v61  ;;  %1088 = vmatprep.subr.mxu1 %v9537_v62  ;;  %v6239_v61 = vld [vmem:[%s9149_s2 + $0x1b0] sm:$0xff]  ;;  %v6246_v62 = vld [vmem:[%s9149_s2 + $0x188] sm:$0xff] }
 0x14c   :  { %1018 = vmatpush1.msra.mxu0 %v9538_v63  ;;  %1089 = vmatpush1.msra.mxu1 %v9539_v0  ;;  %v6251_v63 = vld [vmem:[%s9149_s2 + $0x198] sm:$0xff]  ;;  %v6258_v0 = vld [vmem:[%s9149_s2 + $0x180] sm:$0xff] }
 0x14d   :  { %1019 = vmatprep.subr.mxu0 %v9540_v19  ;;  %1090 = vmatprep.subr.mxu1 %v9541_v6  ;;  %v6263_v19 = vld [vmem:[%s9149_s2 + $0x190] sm:$0xff]  ;;  %v6270_v6 = vld [vmem:[%s9149_s2 + $0x168] sm:$0xff] }
 0x14e   :  { %1020 = vmatpush1.msra.mxu0 %v9542_v43  ;;  %1053 = vmatprep.mubr.f32.mxu0 %v9543_v34  ;;  %v6275_v43 = vld [vmem:[%s9149_s2 + $0x178] sm:$0xff] }
 0x14f   :  { %1091 = vmatpush1.msra.mxu1 %v9544_v3  ;;  %1124 = vmatprep.mubr.f32.mxu1 %v9543_v34  ;;  %v6282_v3 = vld [vmem:[%s9149_s2 + $0x160] sm:$0xff] }
 0x150   :  { %1299 = vmatprep.subr.mxu1 %v9545_v36  ;;  %v6287_v36 = vld [vmem:[%s9149_s2 + $0x170] sm:$0xff] }
 0x1ef   :  { %v816_v7 = vpop.f32.mrf.mxu0  ;;  %v887_v24 = vpop.f32.mrf.mxu1 }
 0x1f0   :  { %v892_v10 = vadd.f32 %v816_v7, %v6001_v31  ;;  %v894_v11 = vadd.f32 %v887_v24, %v9547_v14  ;;  %v6294_v7 = vld [vmem:[%s9149_s2 + $0x148] sm:$0xff]  ;;  %v6335_v24 = vld [vmem:[%s9149_s2 + $0x130] sm:$0xff] }
 0x1f1   :  { %v818_v33 = vpop.f32.mrf.mxu0  ;;  %v889_v12 = vpop.f32.mrf.mxu1  ;;  %9551 = vst [vmem:[#allocation5_spill] sm:$0xff] %v6335_v24  ;;  %v6342_v14 = vld [vmem:[%s9149_s2 + $0x108] sm:$0xff] }
 0x1f2   :  { %v4866_v4 = vmul.f32 -1.442695, %v892_v10  ;;  %v893_v47 = vadd.f32 %v818_v33, %v9546_v41  ;;  %v4868_v31 = vmul.f32 -1.442695, %v894_v11  ;;  %v895_v15 = vadd.f32 %v889_v12, %v9548_v13  ;;  %v6299_v10 = vld [vmem:[%s9149_s2 + $0x158] sm:$0xff]  ;;  %v6306_v33 = vld [vmem:[%s9149_s2 + $0x140] sm:$0xff] }
 0x1f3   :  { %v6318_v41 = vld [vmem:[%s9149_s2 + $0x128] sm:$0xff]  ;;  %v6347_v11 = vld [vmem:[%s9149_s2 + $0x118] sm:$0xff]  ;;  %v6352_v12 = vld [vmem:[%s9149_s2 + $0x100] sm:$0xff] }
 0x1f4   :  { %4997 = vpow2.f32 %v4866_v4  ;;  %v4867_v9 = vmul.f32 -1.442695, %v893_v47  ;;  %v6311_v4 = vld [vmem:[%s9149_s2 + $0x150] sm:$0xff]  ;;  %v6323_v47 = vld [vmem:[%s9149_s2 + $0x138] sm:$0xff]  ;;  %9552 = vst [vmem:[#allocation22_spill] sm:$0xff] %v6347_v11  ;;  %v6364_v13 = vld [vmem:[%s9149_s2 + $0xe8] sm:$0xff] }
 0x1f6   :  { %4999 = vpow2.f32 %v4867_v9  ;;  %v6330_v9 = vld [vmem:[%s9149_s2 + $0x120] sm:$0xff] }
 0x1f7   :  { %5001 = vpow2.f32 %v4868_v31  ;;  %v6359_v31 = vld [vmem:[%s9149_s2 + $0x110] sm:$0xff] }
 0x1f8   :  { %5003 = vtanh.f32 %v895_v15  ;;  %9553 = vst [vmem:[#allocation6_spill] sm:$0xff] %v6359_v31  ;;  %v6369_v15 = vld [vmem:[%s9149_s2 + $0xf8] sm:$0xff] }
 0x1f9   :  { %9554 = vst [vmem:[#allocation23_spill] sm:$0xff] %v6369_v15 }
 0x201   :  { %v4998_v16 = vpop.eup %4997 }
 0x202   :  { %v905_v17 = vadd.f32 1.0, %v4998_v16  ;;  %v6376_v16 = vld [vmem:[%s9149_s2 + $0xe0] sm:$0xff] }
 0x203   :  { %v5000_v18 = vpop.eup %4999 }
 0x204   :  { %5005 = vrcp.f32 %v905_v17  ;;  %v906_v20 = vadd.f32 1.0, %v5000_v18  ;;  %v5002_v21 = vpop.eup %5001  ;;  %v6381_v17 = vld [vmem:[%s9149_s2 + $0xf0] sm:$0xff]  ;;  %v6386_v18 = vld [vmem:[%s9149_s2 + $0xc8] sm:$0xff] }
 0x205   :  { %v5004_v22 = vpop.eup %5003  ;;  %v907_v27 = vadd.f32 1.0, %v5002_v21  ;;  %9555 = vst [vmem:[#allocation7_spill] sm:$0xff] %v6381_v17  ;;  %v6398_v21 = vld [vmem:[%s9149_s2 + $0xc0] sm:$0xff] }
 0x206   :  { %5007 = vrcp.f32 %v906_v20  ;;  %v6393_v20 = vld [vmem:[%s9149_s2 + $0xd8] sm:$0xff] }
 0x207   :  { %5009 = vrcp.f32 %v907_v27  ;;  %9556 = vst [vmem:[#allocation24_spill] sm:$0xff] %v6393_v20  ;;  %v6427_v27 = vld [vmem:[%s9149_s2 + $0xb0] sm:$0xff] }
 0x208   :  { %9559 = vst [vmem:[#allocation9_spill] sm:$0xff] %v6427_v27 }
 0x211   :  { %v5006_v23 = vpop.eup %5005 }
 0x212   :  { %v916_v25 = vmul.f32 %v5006_v23, %v5004_v22  ;;  %v6403_v22 = vld [vmem:[%s9149_s2 + $0xd0] sm:$0xff]  ;;  %v6410_v23 = vld [vmem:[%s9149_s2 + $0xa8] sm:$0xff] }
 0x213   :  { %v5008_v26 = vpop.eup %5007  ;;  %9557 = vst [vmem:[#allocation8_spill] sm:$0xff] %v6403_v22 }
 0x214   :  { %v915_v28 = vmul.f32 %v5008_v26, %v6089_v32  ;;  %v5010_v53 = vpop.eup %5009  ;;  %v6192_v32 = vld [vmem:[%s9149_s2 + $0x1e8] sm:$0xff]  ;;  %v6422_v26 = vld [vmem:[%s9149_s2 + $0xa0] sm:$0xff] }
 0x215   :  { %9550 = vst [vmem:[#allocation21_spill] sm:$0xff] %v6192_v32  ;;  %1228 = vmatprep.subr.mxu0 %v6192_v32 }
 0x216   :  { %v6178_v52 = vadd.f32 %v916_v25, %v915_v28  ;;  %v6415_v25 = vld [vmem:[%s9149_s2 + $0xb8] sm:$0xff]  ;;  %v6434_v28 = vld [vmem:[%s9149_s2 + $0x88] sm:$0xff] }
 0x217   :  { %9558 = vst [vmem:[#allocation25_spill] sm:$0xff] %v6415_v25 }
 0x218   :  { %5011 = vtanh.f32 %v6178_v52 }
 0x225   :  { %v5012_v54 = vpop.eup %5011 }
 0x226   :  { %v6181_v55 = vmul.f32 %v5012_v54, %v5010_v53  ;;  %v6439_v53 = vld [vmem:[%s9149_s2 + $0x98] sm:$0xff]  ;;  %v6446_v54 = vld [vmem:[%s9149_s2 + $0x80] sm:$0xff] }
 0x227   :  { %9560 = vst [vmem:[#allocation26_spill] sm:$0xff] %v6439_v53  ;;  %9561 = vst [vmem:[#allocation10_spill] sm:$0xff] %v6446_v54 }
 0x228   :  { %9549 = vst [vmem:[#allocation4_spill] sm:$0xff] %v6181_v55  ;;  %1054 = vmatmul.mubr.f32.vlgmr.msra.gmra.mxu0 %v6181_v55  ;;  %1125 = vmatmul.mubr.f32.vlgmr.msra.gmra.mxu1 %v6181_v55  ;;  %v6451_v55 = vld [vmem:[%s9149_s2 + $0x90] sm:$0xff] }
 0x229   :  { %1300 = vmatpush1.msra.mxu1 %v5569_v50  ;;  %1292 = vmatprep.mubr.f32.mxu0 %v9543_v34  ;;  %v6204_v50 = vld [vmem:[%s9149_s2 + $0x1c8] sm:$0xff]  ;;  %9562 = vst [vmem:[#allocation27_spill] sm:$0xff] %v6451_v55 }
 0x22a   :  { %1301 = vmatprep.subr.mxu1 %v5576_v51  ;;  %1363 = vmatprep.mubr.f32.mxu1 %v9543_v34  ;;  %v6210_v51 = vld [vmem:[%s9149_s2 + $0x1c0] sm:$0xff] }
 0x22b   :  { %1229 = vmatpush1.msra.mxu0 %v6198_v56  ;;  %1302 = vmatpush1.msra.mxu1 %v6215_v57 }
 0x22c   :  { %1230 = vmatprep.subr.mxu0 %v6204_v50  ;;  %1303 = vmatprep.subr.mxu1 %v6227_v59 }
 0x22d   :  { %1231 = vmatpush1.msra.mxu0 %v6210_v51  ;;  %1304 = vmatpush1.msra.mxu1 %v6239_v61 }
 0x22e   :  { %1232 = vmatprep.subr.mxu0 %v6222_v58  ;;  %1305 = vmatprep.subr.mxu1 %v6251_v63 }
 0x22f   :  { %1233 = vmatpush1.msra.mxu0 %v6234_v60  ;;  %1306 = vmatpush1.msra.mxu1 %v6263_v19 }
 0x230   :  { %1234 = vmatprep.subr.mxu0 %v6246_v62  ;;  %1307 = vmatprep.subr.mxu1 %v6275_v43 }
 0x231   :  { %1235 = vmatpush1.msra.mxu0 %v6258_v0  ;;  %1308 = vmatpush1.msra.mxu1 %v6287_v36 }
 0x232   :  { %1236 = vmatprep.subr.mxu0 %v6270_v6  ;;  %1309 = vmatprep.subr.mxu1 %v6299_v10 }
 0x233   :  { %1237 = vmatpush1.msra.mxu0 %v6282_v3  ;;  %1310 = vmatpush1.msra.mxu1 %v6311_v4 }
 0x234   :  { %1238 = vmatprep.subr.mxu0 %v6294_v7  ;;  %1311 = vmatprep.subr.mxu1 %v6323_v47 }
 0x235   :  { %1239 = vmatpush1.msra.mxu0 %v6306_v33  ;;  %1312 = vmatpush1.msra.mxu1 %v6335_v24 }
 0x236   :  { %1240 = vmatprep.subr.mxu0 %v6318_v41  ;;  %1313 = vmatprep.subr.mxu1 %v6347_v11 }
 0x237   :  { %1241 = vmatpush1.msra.mxu0 %v6330_v9  ;;  %1314 = vmatpush1.msra.mxu1 %v6359_v31 }
 0x238   :  { %1242 = vmatprep.subr.mxu0 %v6342_v14  ;;  %1315 = vmatprep.subr.mxu1 %v6369_v15 }
 0x239   :  { %1243 = vmatpush1.msra.mxu0 %v6352_v12  ;;  %1316 = vmatpush1.msra.mxu1 %v6381_v17  ;;  %v9582_v17 = vld [vmem:[#allocation56_spill] sm:$0xff] }
 0x23a   :  { %1244 = vmatprep.subr.mxu0 %v6364_v13  ;;  %1317 = vmatprep.subr.mxu1 %v6393_v20 }
 0x23b   :  { %1245 = vmatpush1.msra.mxu0 %v6376_v16  ;;  %1318 = vmatpush1.msra.mxu1 %v6403_v22 }
 0x23c   :  { %1246 = vmatprep.subr.mxu0 %v6386_v18  ;;  %1319 = vmatprep.subr.mxu1 %v6415_v25  ;;  %v9579_v25 = vld [vmem:[#allocation57_spill] sm:$0xff] }
 0x23d   :  { %1247 = vmatpush1.msra.mxu0 %v6398_v21  ;;  %1320 = vmatpush1.msra.mxu1 %v6427_v27 }
 0x23e   :  { %1248 = vmatprep.subr.mxu0 %v6410_v23  ;;  %1321 = vmatprep.subr.mxu1 %v6439_v53 }
 0x23f   :  { %1249 = vmatpush1.msra.mxu0 %v6422_v26  ;;  %1322 = vmatpush1.msra.mxu1 %v6451_v55 }
 0x240   :  { %1250 = vmatprep.subr.mxu0 %v6434_v28  ;;  %1323 = vmatprep.subr.mxu1 %v6463_v2  ;;  %v6542_v2 = vld [vmem:[%s9149_s2] sm:$0xff] }
 0x241   :  { %1251 = vmatpush1.msra.mxu0 %v6446_v54  ;;  %1324 = vmatpush1.msra.mxu1 %v6475_v46  ;;  %v6530_v46 = vld [vmem:[%s9149_s2 + $0x8] sm:$0xff]  ;;  %9577 = vst [vmem:[#allocation18_spill] sm:$0xff] %v6542_v2 }
 0x242   :  { %1252 = vmatprep.subr.mxu0 %v6458_v40  ;;  %1325 = vmatprep.subr.mxu1 %v6487_v29  ;;  %9575 = vst [vmem:[#allocation17_spill] sm:$0xff] %v6530_v46  ;;  %v6535_v29 = vld [vmem:[%s9149_s2 + $0x18] sm:$0xff] }
 0x243   :  { %1253 = vmatpush1.msra.mxu0 %v6470_v5  ;;  %1326 = vmatpush1.msra.mxu1 %v6499_v30  ;;  %9576 = vst [vmem:[#allocation34_spill] sm:$0xff] %v6535_v29  ;;  %v6547_v30 = vld [vmem:[%s9149_s2 + $0x10] sm:$0xff] }
 0x244   :  { %1254 = vmatprep.subr.mxu0 %v6482_v39  ;;  %1327 = vmatprep.subr.mxu1 %v6511_v44  ;;  %9578 = vst [vmem:[#allocation35_spill] sm:$0xff] %v6547_v30 }
 0x245   :  { %1255 = vmatpush1.msra.mxu0 %v6494_v8  ;;  %1328 = vmatpush1.msra.mxu1 %v6523_v37  ;;  %v9580_v37 = vsel %vm5918_vm4, %v5878_v45, %v9579_v25 }
 0x246   :  { %1256 = vmatprep.subr.mxu0 %v6506_v48  ;;  %1329 = vmatprep.subr.mxu1 %v6535_v29 }
 0x247   :  { %1257 = vmatpush1.msra.mxu0 %v6518_v38  ;;  %1330 = vmatpush1.msra.mxu1 %v6547_v30  ;;  %v9581_v30 = vld [vmem:[#allocation42_spill] sm:$0xff] }
 0x248   :  { %1258 = vmatprep.subr.mxu0 %v6530_v46  ;;  %v9583_v15 = vsel %vm5894_vm1, %v9581_v30, %v9582_v17 }
 0x249   :  { %1259 = vmatpush1.msra.mxu0 %v6542_v2 }
 0x24a   :  { %1467 = vmatprep.subr.mxu0 %v6192_v32 }
 0x2e8   :  { %v1055_v44 = vpop.f32.mrf.mxu0  ;;  %v1126_v29 = vpop.f32.mrf.mxu1 }
 0x2e9   :  { %v1131_v55 = vadd.f32 %v1055_v44, %v5958_v35  ;;  %v1133_v31 = vadd.f32 %v1126_v29, %v9583_v15  ;;  %v9584_v44 = vld [vmem:[#allocation44_spill] sm:$0xff] }
 0x2ea   :  { %v1057_v53 = vpop.f32.mrf.mxu0  ;;  %v1128_v11 = vpop.f32.mrf.mxu1 }
 0x2eb   :  { %v4869_v27 = vmul.f32 -1.442695, %v1131_v55  ;;  %v1132_v22 = vadd.f32 %v1057_v53, %v9580_v37  ;;  %v4871_v35 = vmul.f32 -1.442695, %v1133_v31  ;;  %v9585_v55 = vld [vmem:[#allocation59_spill] sm:$0xff] }
 0x2ec   :  { %v9586_v42 = vsel %vm5903_vm3, %v9584_v44, %v9585_v55  ;;  %v9602_v44 = vld [vmem:[#allocation30_spill] sm:$0xff]  ;;  %v9603_v55 = vld [vmem:[#allocation31_spill] sm:$0xff] }
 0x2ed   :  { %5013 = vpow2.f32 %v4869_v27  ;;  %v4870_v20 = vmul.f32 -1.442695, %v1132_v22  ;;  %v1134_v24 = vadd.f32 %v1128_v11, %v9586_v42 }
 0x2ef   :  { %5015 = vpow2.f32 %v4870_v20 }
 0x2f0   :  { %5017 = vpow2.f32 %v4871_v35  ;;  %v9590_v35 = vld [vmem:[#allocation22_spill] sm:$0xff] }
 0x2f1   :  { %5019 = vtanh.f32 %v1134_v24  ;;  %v6629_v24 = vld [vmem:[%s9149_s2 + $0x1d8] sm:$0xff] }
 0x2fa   :  { %v5014_v45 = vpop.eup %5013 }
 0x2fb   :  { %v1144_v37 = vadd.f32 1.0, %v5014_v45 }
 0x2fc   :  { %v5016_v22 = vpop.eup %5015 }
 0x2fd   :  { %5021 = vrcp.f32 %v1144_v37  ;;  %v1145_v20 = vadd.f32 1.0, %v5016_v22  ;;  %v5018_v27 = vpop.eup %5017  ;;  %v9591_v37 = vld [vmem:[#allocation6_spill] sm:$0xff]  ;;  %v9592_v22 = vld [vmem:[#allocation23_spill] sm:$0xff] }
 0x2fe   :  { %v5020_v53 = vpop.eup %5019  ;;  %v1146_v31 = vadd.f32 1.0, %v5018_v27  ;;  %v9594_v27 = vld [vmem:[#allocation24_spill] sm:$0xff] }
 0x2ff   :  { %5023 = vrcp.f32 %v1145_v20  ;;  %v9593_v20 = vld [vmem:[#allocation7_spill] sm:$0xff] }
 0x300   :  { %5025 = vrcp.f32 %v1146_v31  ;;  %v9598_v31 = vld [vmem:[#allocation26_spill] sm:$0xff] }
 0x30a   :  { %v5022_v30 = vpop.eup %5021 }
 0x30b   :  { %v1155_v29 = vmul.f32 %v5022_v30, %v5020_v53  ;;  %v6617_v30 = vld [vmem:[%s9149_s2 + $0x1f8] sm:$0xff]  ;;  %v9595_v53 = vld [vmem:[#allocation8_spill] sm:$0xff] }
 0x30c   :  { %v5024_v15 = vpop.eup %5023  ;;  %9588 = vst [vmem:[#allocation36_spill] sm:$0xff] %v6617_v30  ;;  %1538 = vmatprep.subr.mxu1 %v6617_v30 }
 0x30d   :  { %v1154_v17 = vmul.f32 %v5024_v15, %v6178_v52  ;;  %v5026_v45 = vpop.eup %5025  ;;  %v6623_v52 = vld [vmem:[%s9149_s2 + $0x1f0] sm:$0xff]  ;;  %v9597_v15 = vld [vmem:[#allocation9_spill] sm:$0xff] }
 0x30f   :  { %v6573_v25 = vadd.f32 %v1155_v29, %v1154_v17  ;;  %v9589_v17 = vld [vmem:[#allocation5_spill] sm:$0xff] }
 0x310   :  { %v9596_v29 = vld [vmem:[#allocation25_spill] sm:$0xff] }
 0x311   :  { %5027 = vtanh.f32 %v6573_v25 }
 0x31e   :  { %v5028_v42 = vpop.eup %5027 }
 0x31f   :  { %v6576_v11 = vmul.f32 %v5028_v42, %v5026_v45  ;;  %v9599_v45 = vld [vmem:[#allocation27_spill] sm:$0xff]  ;;  %v9600_v42 = vld [vmem:[#allocation28_spill] sm:$0xff] }
 0x321   :  { %9587 = vst [vmem:[#allocation19_spill] sm:$0xff] %v6576_v11  ;;  %1293 = vmatmul.mubr.f32.vlgmr.msra.gmra.mxu0 %v6576_v11  ;;  %1364 = vmatmul.mubr.f32.vlgmr.msra.gmra.mxu1 %v6576_v11  ;;  %v9601_v11 = vld [vmem:[#allocation29_spill] sm:$0xff] }
 0x322   :  { %1468 = vmatpush1.msra.mxu0 %v6198_v56  ;;  %1531 = vmatprep.mubr.f32.mxu0 %v9543_v34 }
 0x323   :  { %1469 = vmatprep.subr.mxu0 %v6204_v50  ;;  %1602 = vmatprep.mubr.f32.mxu1 %v9543_v34  ;;  %v9605_v34 = vld [vmem:[#allocation33_spill] sm:$0xff] }
 0x324   :  { %1470 = vmatpush1.msra.mxu0 %v6210_v51  ;;  %1539 = vmatpush1.msra.mxu1 %v6623_v52 }
 0x325   :  { %1471 = vmatprep.subr.mxu0 %v6222_v58  ;;  %1540 = vmatprep.subr.mxu1 %v6629_v24 }
 0x326   :  { %1472 = vmatpush1.msra.mxu0 %v6234_v60  ;;  %1541 = vmatpush1.msra.mxu1 %v6215_v57 }
 0x327   :  { %1473 = vmatprep.subr.mxu0 %v6246_v62  ;;  %1542 = vmatprep.subr.mxu1 %v6227_v59 }
 0x328   :  { %1474 = vmatpush1.msra.mxu0 %v6258_v0  ;;  %1543 = vmatpush1.msra.mxu1 %v6239_v61 }
 0x329   :  { %1475 = vmatprep.subr.mxu0 %v6270_v6  ;;  %1544 = vmatprep.subr.mxu1 %v6251_v63 }
 0x32a   :  { %1476 = vmatpush1.msra.mxu0 %v6282_v3  ;;  %1545 = vmatpush1.msra.mxu1 %v6263_v19 }
 0x32b   :  { %1477 = vmatprep.subr.mxu0 %v6294_v7  ;;  %1546 = vmatprep.subr.mxu1 %v6275_v43 }
 0x32c   :  { %1478 = vmatpush1.msra.mxu0 %v6306_v33  ;;  %1547 = vmatpush1.msra.mxu1 %v6287_v36 }
 0x32d   :  { %1479 = vmatprep.subr.mxu0 %v6318_v41  ;;  %1548 = vmatprep.subr.mxu1 %v6299_v10 }
 0x32e   :  { %1480 = vmatpush1.msra.mxu0 %v6330_v9  ;;  %1549 = vmatpush1.msra.mxu1 %v6311_v4 }
 0x32f   :  { %1481 = vmatprep.subr.mxu0 %v6342_v14  ;;  %1550 = vmatprep.subr.mxu1 %v6323_v47 }
 0x330   :  { %1482 = vmatpush1.msra.mxu0 %v6352_v12  ;;  %1551 = vmatpush1.msra.mxu1 %v9589_v17 }
 0x331   :  { %1483 = vmatprep.subr.mxu0 %v6364_v13  ;;  %1552 = vmatprep.subr.mxu1 %v9590_v35 }
 0x332   :  { %1484 = vmatpush1.msra.mxu0 %v6376_v16  ;;  %1553 = vmatpush1.msra.mxu1 %v9591_v37 }
 0x333   :  { %1485 = vmatprep.subr.mxu0 %v6386_v18  ;;  %1554 = vmatprep.subr.mxu1 %v9592_v22 }
 0x334   :  { %1486 = vmatpush1.msra.mxu0 %v6398_v21  ;;  %1555 = vmatpush1.msra.mxu1 %v9593_v20 }
 0x335   :  { %1487 = vmatprep.subr.mxu0 %v6410_v23  ;;  %1556 = vmatprep.subr.mxu1 %v9594_v27 }
 0x336   :  { %1488 = vmatpush1.msra.mxu0 %v6422_v26  ;;  %1557 = vmatpush1.msra.mxu1 %v9595_v53 }
 0x337   :  { %1489 = vmatprep.subr.mxu0 %v6434_v28  ;;  %1558 = vmatprep.subr.mxu1 %v9596_v29 }
 0x338   :  { %1490 = vmatpush1.msra.mxu0 %v6446_v54  ;;  %1559 = vmatpush1.msra.mxu1 %v9597_v15 }
 0x339   :  { %1491 = vmatprep.subr.mxu0 %v6458_v40  ;;  %1560 = vmatprep.subr.mxu1 %v9598_v31 }
 0x33a   :  { %1492 = vmatpush1.msra.mxu0 %v6470_v5  ;;  %1561 = vmatpush1.msra.mxu1 %v9599_v45 }
 0x33b   :  { %1493 = vmatprep.subr.mxu0 %v6482_v39  ;;  %1562 = vmatprep.subr.mxu1 %v9600_v42  ;;  %v9611_v42 = vld [vmem:[#allocation51_spill] sm:$0xff] }
 0x33c   :  { %1494 = vmatpush1.msra.mxu0 %v6494_v8  ;;  %1563 = vmatpush1.msra.mxu1 %v9601_v11 }
 0x33d   :  { %1495 = vmatprep.subr.mxu0 %v6506_v48  ;;  %1564 = vmatprep.subr.mxu1 %v9602_v44  ;;  %v9608_v48 = vld [vmem:[#allocation52_spill] sm:$0xff]  ;;  %v9610_v44 = vld [vmem:[#allocation46_spill] sm:$0xff] }
 0x33e   :  { %1496 = vmatpush1.msra.mxu0 %v6518_v38  ;;  %1565 = vmatpush1.msra.mxu1 %v9603_v55  ;;  %v9612_v55 = vsel %vm5918_vm4, %v9610_v44, %v9611_v42 }
 0x33f   :  { %1497 = vmatprep.subr.mxu0 %v6530_v46  ;;  %v9607_v46 = vld [vmem:[#allocation35_spill] sm:$0xff] }
 0x340   :  { %1498 = vmatpush1.msra.mxu0 %v6542_v2  ;;  %v9606_v2 = vld [vmem:[#allocation34_spill] sm:$0xff] }
 0x341   :  { %1706 = vmatprep.subr.mxu0 %v6192_v32  ;;  %v9604_v32 = vld [vmem:[#allocation32_spill] sm:$0xff] }
 0x342   :  { %1566 = vmatprep.subr.mxu1 %v9604_v32 }
 0x343   :  { %1567 = vmatpush1.msra.mxu1 %v9605_v34 }
 0x344   :  { %1568 = vmatprep.subr.mxu1 %v9606_v2  ;;  %v9614_v2 = vld [vmem:[#allocation49_spill] sm:$0xff] }
 0x345   :  { %1569 = vmatpush1.msra.mxu1 %v9607_v46  ;;  %v9613_v46 = vld [vmem:[#allocation45_spill] sm:$0xff] }
 0x346   :  { %1777 = vmatprep.subr.mxu1 %v6617_v30  ;;  %v9615_v30 = vsel %vm5894_vm1, %v9613_v46, %v9614_v2 }
 0x3e1   :  { %v1294_v38 = vpop.f32.mrf.mxu0  ;;  %v1365_v34 = vpop.f32.mrf.mxu1 }
 0x3e2   :  { %v1370_v8 = vadd.f32 %v1294_v38, %v9608_v48  ;;  %v1372_v45 = vadd.f32 %v1365_v34, %v9615_v30  ;;  %v9616_v48 = vld [vmem:[#allocation47_spill] sm:$0xff] }
 0x3e3   :  { %v1296_v39 = vpop.f32.mrf.mxu0  ;;  %v1367_v54 = vpop.f32.mrf.mxu1 }
 0x3e4   :  { %v4872_v5 = vmul.f32 -1.442695, %v1370_v8  ;;  %v1371_v40 = vadd.f32 %v1296_v39, %v9612_v55  ;;  %v4874_v38 = vmul.f32 -1.442695, %v1372_v45  ;;  %v9617_v8 = vld [vmem:[#allocation55_spill] sm:$0xff] }
 0x3e5   :  { %v9618_v11 = vsel %vm5903_vm3, %v9616_v48, %v9617_v8 }
 0x3e6   :  { %5029 = vpow2.f32 %v4872_v5  ;;  %v4873_v32 = vmul.f32 -1.442695, %v1371_v40  ;;  %v1373_v31 = vadd.f32 %v1367_v54, %v9618_v11 }
 0x3e8   :  { %5031 = vpow2.f32 %v4873_v32 }
 0x3e9   :  { %5033 = vpow2.f32 %v4874_v38  ;;  %v9624_v38 = vld [vmem:[#allocation28_spill] sm:$0xff] }
 0x3ea   :  { %5035 = vtanh.f32 %v1373_v31  ;;  %v9623_v31 = vld [vmem:[#allocation11_spill] sm:$0xff] }
 0x3f3   :  { %v5030_v44 = vpop.eup %5029 }
 0x3f4   :  { %v1383_v39 = vadd.f32 1.0, %v5030_v44 }
 0x3f5   :  { %v5032_v5 = vpop.eup %5031 }
 0x3f6   :  { %5037 = vrcp.f32 %v1383_v39  ;;  %v1384_v40 = vadd.f32 1.0, %v5032_v5  ;;  %v5034_v32 = vpop.eup %5033  ;;  %v9625_v39 = vld [vmem:[#allocation12_spill] sm:$0xff]  ;;  %v9626_v5 = vld [vmem:[#allocation29_spill] sm:$0xff] }
 0x3f7   :  { %v5036_v55 = vpop.eup %5035  ;;  %v1385_v45 = vadd.f32 1.0, %v5034_v32  ;;  %v9628_v32 = vld [vmem:[#allocation30_spill] sm:$0xff] }
 0x3f8   :  { %5039 = vrcp.f32 %v1384_v40  ;;  %v9627_v40 = vld [vmem:[#allocation13_spill] sm:$0xff] }
 0x3f9   :  { %5041 = vrcp.f32 %v1385_v45  ;;  %v9632_v45 = vld [vmem:[#allocation32_spill] sm:$0xff] }
 0x403   :  { %v5038_v46 = vpop.eup %5037 }
 0x404   :  { %v1394_v34 = vmul.f32 %v5038_v46, %v5036_v55  ;;  %v9621_v46 = vld [vmem:[#allocation10_spill] sm:$0xff] }
 0x405   :  { %v5040_v30 = vpop.eup %5039  ;;  %v9629_v55 = vld [vmem:[#allocation14_spill] sm:$0xff] }
 0x406   :  { %v1393_v49 = vmul.f32 %v5040_v30, %v6573_v25  ;;  %v5042_v54 = vpop.eup %5041  ;;  %v9622_v25 = vld [vmem:[#allocation27_spill] sm:$0xff] }
 0x407   :  { %v9631_v30 = vld [vmem:[#allocation15_spill] sm:$0xff] }
 0x408   :  { %v6679_v2 = vadd.f32 %v1394_v34, %v1393_v49  ;;  %v9620_v49 = vld [vmem:[#allocation26_spill] sm:$0xff]  ;;  %v9630_v34 = vld [vmem:[#allocation31_spill] sm:$0xff] }
 0x40a   :  { %5043 = vtanh.f32 %v6679_v2 }
 0x417   :  { %v5044_v44 = vpop.eup %5043 }
 0x418   :  { %v6682_v11 = vmul.f32 %v5044_v44, %v5042_v54  ;;  %v9633_v54 = vld [vmem:[#allocation16_spill] sm:$0xff]  ;;  %v9634_v44 = vld [vmem:[#allocation33_spill] sm:$0xff] }
 0x41a   :  { %9619 = vst [vmem:[#allocation20_spill] sm:$0xff] %v6682_v11  ;;  %1532 = vmatmul.mubr.f32.vlgmr.msra.gmra.mxu0 %v6682_v11  ;;  %1603 = vmatmul.mubr.f32.vlgmr.msra.gmra.mxu1 %v6682_v11  ;;  %v9635_v11 = vld [vmem:[#allocation17_spill] sm:$0xff] }
 0x41b   :  { %1707 = vmatpush1.msra.mxu0 %v6198_v56  ;;  %1778 = vmatpush1.msra.mxu1 %v6623_v52 }
 0x41c   :  { %1708 = vmatprep.subr.mxu0 %v6204_v50  ;;  %1779 = vmatprep.subr.mxu1 %v6629_v24 }
 0x41d   :  { %1709 = vmatpush1.msra.mxu0 %v6210_v51  ;;  %1780 = vmatpush1.msra.mxu1 %v6215_v57 }
 0x41e   :  { %1710 = vmatprep.subr.mxu0 %v6222_v58  ;;  %1781 = vmatprep.subr.mxu1 %v6227_v59 }
 0x41f   :  { %1711 = vmatpush1.msra.mxu0 %v6234_v60  ;;  %1782 = vmatpush1.msra.mxu1 %v6239_v61 }
 0x420   :  { %1712 = vmatprep.subr.mxu0 %v6246_v62  ;;  %1783 = vmatprep.subr.mxu1 %v6251_v63 }
 0x421   :  { %1713 = vmatpush1.msra.mxu0 %v6258_v0  ;;  %1784 = vmatpush1.msra.mxu1 %v6263_v19 }
 0x422   :  { %1714 = vmatprep.subr.mxu0 %v6270_v6  ;;  %1785 = vmatprep.subr.mxu1 %v6275_v43 }
 0x423   :  { %1715 = vmatpush1.msra.mxu0 %v6282_v3  ;;  %1786 = vmatpush1.msra.mxu1 %v6287_v36 }
 0x424   :  { %1716 = vmatprep.subr.mxu0 %v6294_v7  ;;  %1787 = vmatprep.subr.mxu1 %v6299_v10 }
 0x425   :  { %1717 = vmatpush1.msra.mxu0 %v6306_v33  ;;  %1788 = vmatpush1.msra.mxu1 %v6311_v4 }
 0x426   :  { %1718 = vmatprep.subr.mxu0 %v6318_v41  ;;  %1789 = vmatprep.subr.mxu1 %v6323_v47 }
 0x427   :  { %1719 = vmatpush1.msra.mxu0 %v6330_v9  ;;  %1790 = vmatpush1.msra.mxu1 %v9589_v17 }
 0x428   :  { %1720 = vmatprep.subr.mxu0 %v6342_v14  ;;  %1791 = vmatprep.subr.mxu1 %v9590_v35 }
 0x429   :  { %1721 = vmatpush1.msra.mxu0 %v6352_v12  ;;  %1792 = vmatpush1.msra.mxu1 %v9591_v37 }
 0x42a   :  { %1722 = vmatprep.subr.mxu0 %v6364_v13  ;;  %1793 = vmatprep.subr.mxu1 %v9592_v22 }
 0x42b   :  { %1723 = vmatpush1.msra.mxu0 %v6376_v16  ;;  %1794 = vmatpush1.msra.mxu1 %v9593_v20 }
 0x42c   :  { %1724 = vmatprep.subr.mxu0 %v6386_v18  ;;  %1795 = vmatprep.subr.mxu1 %v9594_v27 }
 0x42d   :  { %1725 = vmatpush1.msra.mxu0 %v6398_v21  ;;  %1796 = vmatpush1.msra.mxu1 %v9595_v53 }
 0x42e   :  { %1726 = vmatprep.subr.mxu0 %v6410_v23  ;;  %1797 = vmatprep.subr.mxu1 %v9596_v29 }
 0x42f   :  { %1727 = vmatpush1.msra.mxu0 %v6422_v26  ;;  %1798 = vmatpush1.msra.mxu1 %v9597_v15 }
 0x430   :  { %1728 = vmatprep.subr.mxu0 %v6434_v28  ;;  %1799 = vmatprep.subr.mxu1 %v9620_v49 }
 0x431   :  { %1729 = vmatpush1.msra.mxu0 %v9621_v46  ;;  %1800 = vmatpush1.msra.mxu1 %v9622_v25 }
 0x432   :  { %1730 = vmatprep.subr.mxu0 %v9623_v31  ;;  %1801 = vmatprep.subr.mxu1 %v9624_v38 }
 0x433   :  { %1731 = vmatpush1.msra.mxu0 %v9625_v39  ;;  %1802 = vmatpush1.msra.mxu1 %v9626_v5  ;;  %v9636_v39 = vld [vmem:[#allocation34_spill] sm:$0xff] }
 0x434   :  { %1732 = vmatprep.subr.mxu0 %v9627_v40  ;;  %1803 = vmatprep.subr.mxu1 %v9628_v32  ;;  %v9637_v5 = vld [vmem:[#allocation18_spill] sm:$0xff]  ;;  %v9638_v40 = vmov 0.0   ;;  %v9639_v32 = vld [vmem:[#allocation35_spill] sm:$0xff] }
 0x435   :  { %1733 = vmatpush1.msra.mxu0 %v9629_v55  ;;  %1804 = vmatpush1.msra.mxu1 %v9630_v34  ;;  %v9640_v34 = vld [vmem:[#allocation21_spill] sm:$0xff] }
 0x436   :  { %1734 = vmatprep.subr.mxu0 %v9631_v30  ;;  %1805 = vmatprep.subr.mxu1 %v9632_v45  ;;  %v9641_v30 = vld [vmem:[#allocation36_spill] sm:$0xff] }
 0x437   :  { %1735 = vmatpush1.msra.mxu0 %v9633_v54  ;;  %1806 = vmatpush1.msra.mxu1 %v9634_v44  ;;  %v9642_v54 = vld [vmem:[#allocation53_spill] sm:$0xff] }
 0x438   :  { %1736 = vmatprep.subr.mxu0 %v9635_v11  ;;  %1807 = vmatprep.subr.mxu1 %v9636_v39  ;;  %v9644_v39 = vld [vmem:[#allocation46_spill] sm:$0xff] }
 0x439   :  { %1737 = vmatpush1.msra.mxu0 %v9637_v5  ;;  %1770 = vmatprep.mubr.f32.mxu0 %v9638_v40  ;;  %v9645_v5 = vsel %vm5918_vm4, %v9611_v42, %v9644_v39 }
 0x43a   :  { %1808 = vmatpush1.msra.mxu1 %v9639_v32  ;;  %1841 = vmatprep.mubr.f32.mxu1 %v9638_v40  ;;  %v9647_v40 = vld [vmem:[#allocation45_spill] sm:$0xff] }
 0x43b   :  { %1945 = vmatprep.subr.mxu0 %v9640_v34  ;;  %2016 = vmatprep.subr.mxu1 %v9641_v30  ;;  %v9646_v34 = vld [vmem:[#allocation49_spill] sm:$0xff] }
 0x43c   :  { %v9648_v30 = vsel %vm5894_vm1, %v9646_v34, %v9647_v40 }
 0x4da   :  { %v1533_v45 = vpop.f32.mrf.mxu0  ;;  %v1604_v32 = vpop.f32.mrf.mxu1 }
 0x4db   :  { %v1609_v55 = vadd.f32 %v1533_v45, %v9642_v54  ;;  %v1611_v46 = vadd.f32 %v1604_v32, %v9648_v30  ;;  %v7673_v54 = vld [vmem:[%s9152_s5 + $0x20] sm:$0xff] }
 0x4dc   :  { %v1535_v44 = vpop.f32.mrf.mxu0  ;;  %v1606_v49 = vpop.f32.mrf.mxu1 }
 0x4dd   :  { %v4875_v38 = vmul.f32 -1.442695, %v1609_v55  ;;  %v1610_v31 = vadd.f32 %v1535_v44, %v9645_v5  ;;  %v4877_v45 = vmul.f32 -1.442695, %v1611_v46  ;;  %v9650_v55 = vsel %vm5903_vm3, %v9617_v8, %v9616_v48 }
 0x4de   :  { %v1612_v11 = vadd.f32 %v1606_v49, %v9650_v55 }
 0x4df   :  { %5045 = vpow2.f32 %v4875_v38  ;;  %v4876_v25 = vmul.f32 -1.442695, %v1610_v31 }
 0x4e1   :  { %5047 = vpow2.f32 %v4876_v25 }
 0x4e2   :  { %5049 = vpow2.f32 %v4877_v45 }
 0x4e3   :  { %5051 = vtanh.f32 %v1612_v11 }
 0x4ec   :  { %v5046_v42 = vpop.eup %5045 }
 0x4ed   :  { %v1622_v39 = vadd.f32 1.0, %v5046_v42 }
 0x4ee   :  { %v5048_v31 = vpop.eup %5047 }
 0x4ef   :  { %5053 = vrcp.f32 %v1622_v39  ;;  %v1623_v25 = vadd.f32 1.0, %v5048_v31  ;;  %v5050_v38 = vpop.eup %5049 }
 0x4f0   :  { %v5052_v5 = vpop.eup %5051  ;;  %v1624_v46 = vadd.f32 1.0, %v5050_v38 }
 0x4f1   :  { %5055 = vrcp.f32 %v1623_v25 }
 0x4f2   :  { %5057 = vrcp.f32 %v1624_v46 }
 0x4fc   :  { %v5054_v40 = vpop.eup %5053 }
 0x4fd   :  { %v1633_v32 = vmul.f32 %v5054_v40, %v5052_v5 }
 0x4fe   :  { %v5056_v30 = vpop.eup %5055 }
 0x4ff   :  { %v1632_v44 = vmul.f32 %v5056_v30, %v6679_v2  ;;  %v5058_v48 = vpop.eup %5057  ;;  %v9651_v2 = vld [vmem:[#allocation26_spill] sm:$0xff] }
 0x501   :  { %v6769_v34 = vadd.f32 %v1633_v32, %v1632_v44 }
 0x503   :  { %5059 = vtanh.f32 %v6769_v34 }
 0x510   :  { %v5060_v8 = vpop.eup %5059 }
 0x511   :  { %v6772_v49 = vmul.f32 %v5060_v8, %v5058_v48 }
 0x513   :  { %1771 = vmatmul.mubr.f32.vlgmr.msra.gmra.mxu0 %v6772_v49  ;;  %1842 = vmatmul.mubr.f32.vlgmr.msra.gmra.mxu1 %v6772_v49 }
 0x514   :  { %1946 = vmatpush1.msra.mxu0 %v6198_v56  ;;  %2017 = vmatpush1.msra.mxu1 %v6623_v52  ;;  %v9652_v56 = vld [vmem:[#allocation10_spill] sm:$0xff] }
 0x515   :  { %1947 = vmatprep.subr.mxu0 %v6204_v50  ;;  %2018 = vmatprep.subr.mxu1 %v6629_v24  ;;  %v9653_v50 = vld [vmem:[#allocation27_spill] sm:$0xff] }
 0x516   :  { %1948 = vmatpush1.msra.mxu0 %v6210_v51  ;;  %2019 = vmatpush1.msra.mxu1 %v6215_v57  ;;  %v9654_v51 = vld [vmem:[#allocation11_spill] sm:$0xff]  ;;  %v9655_v57 = vld [vmem:[#allocation28_spill] sm:$0xff] }
 0x517   :  { %1949 = vmatprep.subr.mxu0 %v6222_v58  ;;  %2020 = vmatprep.subr.mxu1 %v6227_v59  ;;  %v9656_v58 = vld [vmem:[#allocation12_spill] sm:$0xff]  ;;  %v9657_v59 = vld [vmem:[#allocation29_spill] sm:$0xff] }
 0x518   :  { %1950 = vmatpush1.msra.mxu0 %v6234_v60  ;;  %2021 = vmatpush1.msra.mxu1 %v6239_v61  ;;  %v9658_v60 = vld [vmem:[#allocation13_spill] sm:$0xff]  ;;  %v9659_v61 = vld [vmem:[#allocation30_spill] sm:$0xff]  ;;  %9731 = vst [vmem:[#allocation12_spill] sm:$0xff] %v7673_v54  ;;  %9732 = vst [vmem:[#allocation29_spill] sm:$0xff] %v7684_v1 }
 0x519   :  { %1951 = vmatprep.subr.mxu0 %v6246_v62  ;;  %2022 = vmatprep.subr.mxu1 %v6251_v63  ;;  %v9660_v62 = vld [vmem:[#allocation14_spill] sm:$0xff]  ;;  %v9661_v63 = vld [vmem:[#allocation31_spill] sm:$0xff] }
 0x51a   :  { %1952 = vmatpush1.msra.mxu0 %v6258_v0  ;;  %2023 = vmatpush1.msra.mxu1 %v6263_v19  ;;  %v9662_v0 = vld [vmem:[#allocation15_spill] sm:$0xff]  ;;  %v9663_v19 = vld [vmem:[#allocation32_spill] sm:$0xff] }
 0x51b   :  { %1953 = vmatprep.subr.mxu0 %v6270_v6  ;;  %2024 = vmatprep.subr.mxu1 %v6275_v43  ;;  %v9664_v6 = vld [vmem:[#allocation16_spill] sm:$0xff]  ;;  %v9665_v43 = vld [vmem:[#allocation33_spill] sm:$0xff] }
 0x51c   :  { %1954 = vmatpush1.msra.mxu0 %v6282_v3  ;;  %2025 = vmatpush1.msra.mxu1 %v6287_v36  ;;  %v9666_v3 = vld [vmem:[#allocation17_spill] sm:$0xff]  ;;  %v9667_v36 = vld [vmem:[#allocation34_spill] sm:$0xff] }
 0x51d   :  { %1955 = vmatprep.subr.mxu0 %v6294_v7  ;;  %2026 = vmatprep.subr.mxu1 %v6299_v10  ;;  %v9668_v7 = vld [vmem:[#allocation18_spill] sm:$0xff]  ;;  %v9669_v10 = vmov 0.0  }
 0x51e   :  { %1956 = vmatpush1.msra.mxu0 %v6306_v33  ;;  %2027 = vmatpush1.msra.mxu1 %v6311_v4  ;;  %v9670_v33 = vld [vmem:[#allocation35_spill] sm:$0xff]  ;;  %v9671_v4 = vld [vmem:[#allocation36_spill] sm:$0xff] }
 0x51f   :  { %1957 = vmatprep.subr.mxu0 %v6318_v41  ;;  %2028 = vmatprep.subr.mxu1 %v6323_v47  ;;  %v9672_v47 = vld [vmem:[#allocation58_spill] sm:$0xff] }
 0x520   :  { %1958 = vmatpush1.msra.mxu0 %v6330_v9  ;;  %2029 = vmatpush1.msra.mxu1 %v9589_v17  ;;  %v9677_v17 = vld [vmem:[#allocation56_spill] sm:$0xff] }
 0x521   :  { %1959 = vmatprep.subr.mxu0 %v6342_v14  ;;  %2030 = vmatprep.subr.mxu1 %v9590_v35  ;;  %v9678_v35 = vld [vmem:[#allocation42_spill] sm:$0xff] }
 0x522   :  { %1960 = vmatpush1.msra.mxu0 %v6352_v12  ;;  %2031 = vmatpush1.msra.mxu1 %v9591_v37  ;;  %v9679_v37 = vsel %vm5894_vm1, %v9677_v17, %v9678_v35  ;;  %v2147_v17 = vld [vmem:[%s9149_s2 + $0xd8] sm:$0xff]  ;;  %v2144_v35 = vld [vmem:[%s9149_s2 + $0xc0] sm:$0xff] }
 0x523   :  { %1961 = vmatprep.subr.mxu0 %v6364_v13  ;;  %2032 = vmatprep.subr.mxu1 %v9592_v22 }
 0x524   :  { %1962 = vmatpush1.msra.mxu0 %v6376_v16  ;;  %2033 = vmatpush1.msra.mxu1 %v9593_v20  ;;  %v9674_v16 = vld [vmem:[#allocation57_spill] sm:$0xff] }
 0x525   :  { %1963 = vmatprep.subr.mxu0 %v6386_v18  ;;  %2034 = vmatprep.subr.mxu1 %v9594_v27  ;;  %v9675_v18 = vld [vmem:[#allocation43_spill] sm:$0xff] }
 0x526   :  { %1964 = vmatpush1.msra.mxu0 %v6398_v21  ;;  %2035 = vmatpush1.msra.mxu1 %v9595_v53  ;;  %v9676_v21 = vsel %vm5918_vm4, %v9674_v16, %v9675_v18  ;;  %v9680_v53 = vld [vmem:[#allocation59_spill] sm:$0xff]  ;;  %v2154_v16 = vld [vmem:[%s9149_s2 + $0x110] sm:$0xff]  ;;  %v2149_v18 = vld [vmem:[%s9149_s2 + $0xe8] sm:$0xff] }
 0x527   :  { %1965 = vmatprep.subr.mxu0 %v6410_v23  ;;  %2036 = vmatprep.subr.mxu1 %v9596_v29  ;;  %v9681_v29 = vld [vmem:[#allocation44_spill] sm:$0xff] }
 0x528   :  { %1966 = vmatpush1.msra.mxu0 %v6422_v26  ;;  %2037 = vmatpush1.msra.mxu1 %v9597_v15  ;;  %v9682_v15 = vsel %vm5903_vm3, %v9680_v53, %v9681_v29  ;;  %v2142_v53 = vld [vmem:[%s9149_s2 + $0xb0] sm:$0xff]  ;;  %v2137_v29 = vld [vmem:[%s9149_s2 + $0x88] sm:$0xff] }
 0x529   :  { %1967 = vmatprep.subr.mxu0 %v6434_v28  ;;  %2038 = vmatprep.subr.mxu1 %v9651_v2  ;;  %v2180_v2 = vld [vmem:[%s9149_s2 + $0x1e0] sm:$0xff] }
 0x52a   :  { %1968 = vmatpush1.msra.mxu0 %v9652_v56  ;;  %2039 = vmatpush1.msra.mxu1 %v9653_v50  ;;  %v2178_v56 = vld [vmem:[%s9149_s2 + $0x1d0] sm:$0xff]  ;;  %v2173_v50 = vld [vmem:[%s9149_s2 + $0x1a8] sm:$0xff] }
 0x52b   :  { %1969 = vmatprep.subr.mxu0 %v9654_v51  ;;  %2040 = vmatprep.subr.mxu1 %v9655_v57  ;;  %v2175_v51 = vld [vmem:[%s9149_s2 + $0x1b8] sm:$0xff]  ;;  %v2172_v57 = vld [vmem:[%s9149_s2 + $0x1a0] sm:$0xff] }
 0x52c   :  { %1970 = vmatpush1.msra.mxu0 %v9656_v58  ;;  %2041 = vmatpush1.msra.mxu1 %v9657_v59  ;;  %v2174_v58 = vld [vmem:[%s9149_s2 + $0x1b0] sm:$0xff]  ;;  %v2169_v59 = vld [vmem:[%s9149_s2 + $0x188] sm:$0xff] }
 0x52d   :  { %1971 = vmatprep.subr.mxu0 %v9658_v60  ;;  %2042 = vmatprep.subr.mxu1 %v9659_v61  ;;  %v2171_v60 = vld [vmem:[%s9149_s2 + $0x198] sm:$0xff]  ;;  %v2168_v61 = vld [vmem:[%s9149_s2 + $0x180] sm:$0xff] }
 0x52e   :  { %1972 = vmatpush1.msra.mxu0 %v9660_v62  ;;  %2043 = vmatpush1.msra.mxu1 %v9661_v63  ;;  %v2170_v62 = vld [vmem:[%s9149_s2 + $0x190] sm:$0xff]  ;;  %v2165_v63 = vld [vmem:[%s9149_s2 + $0x168] sm:$0xff] }
 0x52f   :  { %1973 = vmatprep.subr.mxu0 %v9662_v0  ;;  %2044 = vmatprep.subr.mxu1 %v9663_v19  ;;  %v2167_v0 = vld [vmem:[%s9149_s2 + $0x178] sm:$0xff]  ;;  %v2164_v19 = vld [vmem:[%s9149_s2 + $0x160] sm:$0xff] }
 0x530   :  { %1974 = vmatpush1.msra.mxu0 %v9664_v6  ;;  %2045 = vmatpush1.msra.mxu1 %v9665_v43  ;;  %v2166_v6 = vld [vmem:[%s9149_s2 + $0x170] sm:$0xff]  ;;  %v2161_v43 = vld [vmem:[%s9149_s2 + $0x148] sm:$0xff] }
 0x531   :  { %1975 = vmatprep.subr.mxu0 %v9666_v3  ;;  %2046 = vmatprep.subr.mxu1 %v9667_v36  ;;  %v2163_v3 = vld [vmem:[%s9149_s2 + $0x158] sm:$0xff]  ;;  %v2160_v36 = vld [vmem:[%s9149_s2 + $0x140] sm:$0xff] }
 0x532   :  { %1976 = vmatpush1.msra.mxu0 %v9668_v7  ;;  %2009 = vmatprep.mubr.f32.mxu0 %v9669_v10  ;;  %v2162_v7 = vld [vmem:[%s9149_s2 + $0x150] sm:$0xff] }
 0x533   :  { %2047 = vmatpush1.msra.mxu1 %v9670_v33  ;;  %2080 = vmatprep.mubr.f32.mxu1 %v9669_v10  ;;  %v2157_v33 = vld [vmem:[%s9149_s2 + $0x128] sm:$0xff] }
 0x534   :  { %2255 = vmatprep.subr.mxu1 %v9671_v4  ;;  %v2159_v4 = vld [vmem:[%s9149_s2 + $0x138] sm:$0xff] }
 0x5d3   :  { %v1772_v41 = vpop.f32.mrf.mxu0  ;;  %v1843_v28 = vpop.f32.mrf.mxu1 }
 0x5d4   :  { %v1848_v9 = vadd.f32 %v1772_v41, %v9672_v47  ;;  %v1850_v22 = vadd.f32 %v1843_v28, %v9679_v37  ;;  %v2156_v41 = vld [vmem:[%s9149_s2 + $0x120] sm:$0xff]  ;;  %v2158_v47 = vld [vmem:[%s9149_s2 + $0x130] sm:$0xff]  ;;  %v2145_v28 = vld [vmem:[%s9149_s2 + $0xc8] sm:$0xff] }
 0x5d5   :  { %v1774_v14 = vpop.f32.mrf.mxu0  ;;  %v1845_v20 = vpop.f32.mrf.mxu1  ;;  %v2146_v37 = vld [vmem:[%s9149_s2 + $0xd0] sm:$0xff] }
 0x5d6   :  { %v4878_v12 = vmul.f32 -1.442695, %v1848_v9  ;;  %v1849_v23 = vadd.f32 %v1774_v14, %v9676_v21  ;;  %v4880_v27 = vmul.f32 -1.442695, %v1850_v22  ;;  %v1851_v11 = vadd.f32 %v1845_v20, %v9682_v15  ;;  %v2153_v9 = vld [vmem:[%s9149_s2 + $0x108] sm:$0xff]  ;;  %v2155_v14 = vld [vmem:[%s9149_s2 + $0x118] sm:$0xff] }
 0x5d7   :  { %v2151_v21 = vld [vmem:[%s9149_s2 + $0xf8] sm:$0xff]  ;;  %v2141_v22 = vld [vmem:[%s9149_s2 + $0xa8] sm:$0xff] }
 0x5d8   :  { %5061 = vpow2.f32 %v4878_v12  ;;  %v4879_v26 = vmul.f32 -1.442695, %v1849_v23  ;;  %v2152_v12 = vld [vmem:[%s9149_s2 + $0x100] sm:$0xff]  ;;  %v2143_v20 = vld [vmem:[%s9149_s2 + $0xb8] sm:$0xff] }
 0x5d9   :  { %v2148_v23 = vld [vmem:[%s9149_s2 + $0xe0] sm:$0xff]  ;;  %v2139_v15 = vld [vmem:[%s9149_s2 + $0x98] sm:$0xff] }
 0x5da   :  { %5063 = vpow2.f32 %v4879_v26  ;;  %v2150_v26 = vld [vmem:[%s9149_s2 + $0xf0] sm:$0xff] }
 0x5db   :  { %5065 = vpow2.f32 %v4880_v27  ;;  %v2140_v27 = vld [vmem:[%s9149_s2 + $0xa0] sm:$0xff] }
 0x5dc   :  { %5067 = vtanh.f32 %v1851_v11  ;;  %v2136_v11 = vld [vmem:[%s9149_s2 + $0x80] sm:$0xff] }
 0x5e5   :  { %v5062_v45 = vpop.eup %5061 }
 0x5e6   :  { %v1861_v55 = vadd.f32 1.0, %v5062_v45  ;;  %v2138_v45 = vld [vmem:[%s9149_s2 + $0x90] sm:$0xff] }
 0x5e7   :  { %v5064_v42 = vpop.eup %5063 }
 0x5e8   :  { %5069 = vrcp.f32 %v1861_v55  ;;  %v1862_v39 = vadd.f32 1.0, %v5064_v42  ;;  %v5066_v31 = vpop.eup %5065  ;;  %v2133_v55 = vld [vmem:[%s9149_s2 + $0x68] sm:$0xff]  ;;  %v2135_v42 = vld [vmem:[%s9149_s2 + $0x78] sm:$0xff] }
 0x5e9   :  { %v5068_v25 = vpop.eup %5067  ;;  %v1863_v32 = vadd.f32 1.0, %v5066_v31  ;;  %v2134_v31 = vld [vmem:[%s9149_s2 + $0x70] sm:$0xff] }
 0x5ea   :  { %5071 = vrcp.f32 %v1862_v39  ;;  %v2132_v39 = vld [vmem:[%s9149_s2 + $0x60] sm:$0xff] }
 0x5eb   :  { %5073 = vrcp.f32 %v1863_v32  ;;  %v2125_v32 = vld [vmem:[%s9149_s2 + $0x28] sm:$0xff] }
 0x5f5   :  { %v5070_v38 = vpop.eup %5069 }
 0x5f6   :  { %v1872_v5 = vmul.f32 %v5070_v38, %v5068_v25  ;;  %v2129_v25 = vld [vmem:[%s9149_s2 + $0x48] sm:$0xff]  ;;  %v2131_v38 = vld [vmem:[%s9149_s2 + $0x58] sm:$0xff] }
 0x5f7   :  { %v5072_v40 = vpop.eup %5071 }
 0x5f8   :  { %v1871_v30 = vmul.f32 %v5072_v40, %v6769_v34  ;;  %v5074_v44 = vpop.eup %5073  ;;  %v2181_v34 = vld [vmem:[%s9149_s2 + $0x1e8] sm:$0xff]  ;;  %v2130_v40 = vld [vmem:[%s9149_s2 + $0x50] sm:$0xff] }
 0x5f9   :  { %2184 = vmatprep.subr.mxu0 %v2181_v34  ;;  %v2121_v34 = vld [vmem:[%s9149_s2 + $0x8] sm:$0xff] }
 0x5fa   :  { %v6858_v46 = vadd.f32 %v1872_v5, %v1871_v30  ;;  %v2128_v5 = vld [vmem:[%s9149_s2 + $0x40] sm:$0xff]  ;;  %v2127_v30 = vld [vmem:[%s9149_s2 + $0x38] sm:$0xff] }
 0x5fc   :  { %5075 = vtanh.f32 %v6858_v46 }
 0x609   :  { %v5076_v48 = vpop.eup %5075 }
 0x60a   :  { %v6861_v8 = vmul.f32 %v5076_v48, %v5074_v44  ;;  %v2124_v44 = vld [vmem:[%s9149_s2 + $0x20] sm:$0xff]  ;;  %v2126_v48 = vld [vmem:[%s9149_s2 + $0x30] sm:$0xff] }
 0x60c   :  { %2010 = vmatmul.mubr.f32.vlgmr.msra.gmra.mxu0 %v6861_v8  ;;  %2081 = vmatmul.mubr.f32.vlgmr.msra.gmra.mxu1 %v6861_v8 }
 0x60d   :  { %2256 = vmatpush1.msra.mxu1 %v6623_v52  ;;  %2248 = vmatprep.mubr.f32.mxu0 %v9669_v10  ;;  %v2177_v52 = vld [vmem:[%s9149_s2 + $0x1c8] sm:$0xff] }
 0x60e   :  { %2257 = vmatprep.subr.mxu1 %v6629_v24  ;;  %2319 = vmatprep.mubr.f32.mxu1 %v9669_v10  ;;  %v2176_v24 = vld [vmem:[%s9149_s2 + $0x1c0] sm:$0xff] }
 0x60f   :  { %2185 = vmatpush1.msra.mxu0 %v2180_v2  ;;  %2258 = vmatpush1.msra.mxu1 %v2178_v56  ;;  %v2123_v2 = vld [vmem:[%s9149_s2 + $0x18] sm:$0xff] }
 0x610   :  { %2186 = vmatprep.subr.mxu0 %v2177_v52  ;;  %2259 = vmatprep.subr.mxu1 %v2175_v51  ;;  %v2120_v52 = vld [vmem:[%s9149_s2] sm:$0xff] }
 0x611   :  { %2187 = vmatpush1.msra.mxu0 %v2176_v24  ;;  %2260 = vmatpush1.msra.mxu1 %v2174_v58  ;;  %v2122_v24 = vld [vmem:[%s9149_s2 + $0x10] sm:$0xff] }
 0x612   :  { %2188 = vmatprep.subr.mxu0 %v2173_v50  ;;  %2261 = vmatprep.subr.mxu1 %v2171_v60  ;;  %v9683_v50 = vld [vmem:[#allocation62_spill] sm:$0xff]  ;;  %v9685_v60 = vld [vmem:[#allocation40_spill] sm:$0xff] }
 0x613   :  { %2189 = vmatpush1.msra.mxu0 %v2172_v57  ;;  %2262 = vmatpush1.msra.mxu1 %v2170_v62 }
 0x614   :  { %2190 = vmatprep.subr.mxu0 %v2169_v59  ;;  %2263 = vmatprep.subr.mxu1 %v2167_v0  ;;  %v9684_v59 = vld [vmem:[#allocation61_spill] sm:$0xff] }
 0x615   :  { %2191 = vmatpush1.msra.mxu0 %v2168_v61  ;;  %2264 = vmatpush1.msra.mxu1 %v2166_v6  ;;  %v9686_v61 = vsel %vm5918_vm4, %v9684_v59, %v9685_v60  ;;  %v9688_v6 = vld [vmem:[#allocation39_spill] sm:$0xff]  ;;  %v2420_v59 = vld [vmem:[%s9151_s4 + $0x108] sm:$0xff]  ;;  %v2425_v60 = vld [vmem:[%s9151_s4 + $0x130] sm:$0xff] }
 0x616   :  { %2192 = vmatprep.subr.mxu0 %v2165_v63  ;;  %2265 = vmatprep.subr.mxu1 %v2163_v3 }
 0x617   :  { %2193 = vmatpush1.msra.mxu0 %v2164_v19  ;;  %2266 = vmatpush1.msra.mxu1 %v2162_v7  ;;  %v9687_v19 = vld [vmem:[#allocation60_spill] sm:$0xff] }
 0x618   :  { %2194 = vmatprep.subr.mxu0 %v2161_v43  ;;  %2267 = vmatprep.subr.mxu1 %v2159_v4  ;;  %v9689_v43 = vsel %vm5894_vm1, %v9687_v19, %v9688_v6  ;;  %v9691_v4 = vld [vmem:[#allocation41_spill] sm:$0xff]  ;;  %v2415_v19 = vld [vmem:[%s9151_s4 + $0xe0] sm:$0xff]  ;;  %v2418_v6 = vld [vmem:[%s9151_s4 + $0xf8] sm:$0xff] }
 0x619   :  { %2195 = vmatpush1.msra.mxu0 %v2160_v36  ;;  %2268 = vmatpush1.msra.mxu1 %v2158_v47 }
 0x61a   :  { %2196 = vmatprep.subr.mxu0 %v2157_v33  ;;  %2269 = vmatprep.subr.mxu1 %v2155_v14  ;;  %v9690_v33 = vld [vmem:[#allocation63_spill] sm:$0xff] }
 0x61b   :  { %2197 = vmatpush1.msra.mxu0 %v2156_v41  ;;  %2270 = vmatpush1.msra.mxu1 %v2154_v16  ;;  %v9692_v41 = vsel %vm5903_vm3, %v9690_v33, %v9691_v4  ;;  %v2413_v33 = vld [vmem:[%s9151_s4 + $0xd0] sm:$0xff]  ;;  %v2408_v4 = vld [vmem:[%s9151_s4 + $0xa8] sm:$0xff] }
 0x61c   :  { %2198 = vmatprep.subr.mxu0 %v2153_v9  ;;  %2271 = vmatprep.subr.mxu1 %v2151_v21 }
 0x61d   :  { %2199 = vmatpush1.msra.mxu0 %v2152_v12  ;;  %2272 = vmatpush1.msra.mxu1 %v2150_v26 }
 0x61e   :  { %2200 = vmatprep.subr.mxu0 %v2149_v18  ;;  %2273 = vmatprep.subr.mxu1 %v2147_v17 }
 0x61f   :  { %2201 = vmatpush1.msra.mxu0 %v2148_v23  ;;  %2274 = vmatpush1.msra.mxu1 %v2146_v37 }
 0x620   :  { %2202 = vmatprep.subr.mxu0 %v2145_v28  ;;  %2275 = vmatprep.subr.mxu1 %v2143_v20 }
 0x621   :  { %2203 = vmatpush1.msra.mxu0 %v2144_v35  ;;  %2276 = vmatpush1.msra.mxu1 %v2142_v53  ;;  %v2450_v53 = vld [vmem:[%s9151_s4 + $0x1f8] sm:$0xff] }
 0x622   :  { %2204 = vmatprep.subr.mxu0 %v2141_v22  ;;  %2277 = vmatprep.subr.mxu1 %v2139_v15  ;;  %v2449_v15 = vld [vmem:[%s9151_s4 + $0x1f0] sm:$0xff] }
 0x623   :  { %2205 = vmatpush1.msra.mxu0 %v2140_v27  ;;  %2278 = vmatpush1.msra.mxu1 %v2138_v45  ;;  %v2446_v45 = vld [vmem:[%s9151_s4 + $0x1d8] sm:$0xff] }
 0x624   :  { %2206 = vmatprep.subr.mxu0 %v2137_v29  ;;  %2279 = vmatprep.subr.mxu1 %v2135_v42  ;;  %v2447_v29 = vld [vmem:[%s9151_s4 + $0x1e0] sm:$0xff]  ;;  %v2445_v42 = vld [vmem:[%s9151_s4 + $0x1d0] sm:$0xff] }
 0x625   :  { %2207 = vmatpush1.msra.mxu0 %v2136_v11  ;;  %2280 = vmatpush1.msra.mxu1 %v2134_v31  ;;  %v2444_v11 = vld [vmem:[%s9151_s4 + $0x1c8] sm:$0xff]  ;;  %v2442_v31 = vld [vmem:[%s9151_s4 + $0x1b8] sm:$0xff] }
 0x626   :  { %2208 = vmatprep.subr.mxu0 %v2133_v55  ;;  %2281 = vmatprep.subr.mxu1 %v2131_v38  ;;  %v2443_v55 = vld [vmem:[%s9151_s4 + $0x1c0] sm:$0xff]  ;;  %v2441_v38 = vld [vmem:[%s9151_s4 + $0x1b0] sm:$0xff] }
 0x627   :  { %2209 = vmatpush1.msra.mxu0 %v2132_v39  ;;  %2282 = vmatpush1.msra.mxu1 %v2130_v40  ;;  %v2440_v39 = vld [vmem:[%s9151_s4 + $0x1a8] sm:$0xff]  ;;  %v2438_v40 = vld [vmem:[%s9151_s4 + $0x198] sm:$0xff] }
 0x628   :  { %2210 = vmatprep.subr.mxu0 %v2129_v25  ;;  %2283 = vmatprep.subr.mxu1 %v2127_v30  ;;  %v2439_v25 = vld [vmem:[%s9151_s4 + $0x1a0] sm:$0xff]  ;;  %v2437_v30 = vld [vmem:[%s9151_s4 + $0x190] sm:$0xff] }
 0x629   :  { %2211 = vmatpush1.msra.mxu0 %v2128_v5  ;;  %2284 = vmatpush1.msra.mxu1 %v2126_v48  ;;  %v2436_v5 = vld [vmem:[%s9151_s4 + $0x188] sm:$0xff]  ;;  %v2434_v48 = vld [vmem:[%s9151_s4 + $0x178] sm:$0xff] }
 0x62a   :  { %2212 = vmatprep.subr.mxu0 %v2125_v32  ;;  %2285 = vmatprep.subr.mxu1 %v2123_v2  ;;  %v2435_v32 = vld [vmem:[%s9151_s4 + $0x180] sm:$0xff]  ;;  %v2433_v2 = vld [vmem:[%s9151_s4 + $0x170] sm:$0xff] }
 0x62b   :  { %2213 = vmatpush1.msra.mxu0 %v2124_v44  ;;  %2286 = vmatpush1.msra.mxu1 %v2122_v24  ;;  %v2432_v44 = vld [vmem:[%s9151_s4 + $0x168] sm:$0xff]  ;;  %v2430_v24 = vld [vmem:[%s9151_s4 + $0x158] sm:$0xff] }
 0x62c   :  { %2214 = vmatprep.subr.mxu0 %v2121_v34  ;;  %2586 = vmatprep.subr.mxu1 %v2450_v53  ;;  %v2431_v34 = vld [vmem:[%s9151_s4 + $0x160] sm:$0xff]  ;;  %v2394_v53 = vld [vmem:[%s9151_s4 + $0x38] sm:$0xff] }
 0x62d   :  { %2215 = vmatpush1.msra.mxu0 %v2120_v52  ;;  %v2428_v52 = vld [vmem:[%s9151_s4 + $0x148] sm:$0xff] }
 0x6cc   :  { %v2011_v56 = vpop.f32.mrf.mxu0  ;;  %v2082_v0 = vpop.f32.mrf.mxu1 }
 0x6cd   :  { %v2087_v51 = vadd.f32 %v2011_v56, %v9683_v50  ;;  %v2089_v3 = vadd.f32 %v2082_v0, %v9689_v43  ;;  %v2427_v56 = vld [vmem:[%s9151_s4 + $0x140] sm:$0xff]  ;;  %v2429_v50 = vld [vmem:[%s9151_s4 + $0x150] sm:$0xff]  ;;  %v2412_v43 = vld [vmem:[%s9151_s4 + $0xc8] sm:$0xff] }
 0x6ce   :  { %v2013_v57 = vpop.f32.mrf.mxu0  ;;  %v2084_v36 = vpop.f32.mrf.mxu1  ;;  %v2421_v0 = vld [vmem:[%s9151_s4 + $0x110] sm:$0xff] }
 0x6cf   :  { %v4881_v58 = vmul.f32 -1.442695, %v2087_v51  ;;  %v2088_v62 = vadd.f32 %v2013_v57, %v9686_v61  ;;  %v4883_v7 = vmul.f32 -1.442695, %v2089_v3  ;;  %v2090_v47 = vadd.f32 %v2084_v36, %v9692_v41  ;;  %v2424_v51 = vld [vmem:[%s9151_s4 + $0x128] sm:$0xff]  ;;  %v2426_v57 = vld [vmem:[%s9151_s4 + $0x138] sm:$0xff] }
 0x6d0   :  { %v2419_v61 = vld [vmem:[%s9151_s4 + $0x100] sm:$0xff]  ;;  %v2417_v3 = vld [vmem:[%s9151_s4 + $0xf0] sm:$0xff]  ;;  %v2410_v41 = vld [vmem:[%s9151_s4 + $0xb8] sm:$0xff] }
 0x6d1   :  { %5077 = vpow2.f32 %v4881_v58  ;;  %v4882_v63 = vmul.f32 -1.442695, %v2088_v62  ;;  %v2423_v58 = vld [vmem:[%s9151_s4 + $0x120] sm:$0xff]  ;;  %v2422_v62 = vld [vmem:[%s9151_s4 + $0x118] sm:$0xff] }
 0x6d2   :  { %v2411_v36 = vld [vmem:[%s9151_s4 + $0xc0] sm:$0xff] }
 0x6d3   :  { %5079 = vpow2.f32 %v4882_v63  ;;  %v2416_v63 = vld [vmem:[%s9151_s4 + $0xe8] sm:$0xff] }
 0x6d4   :  { %5081 = vpow2.f32 %v4883_v7  ;;  %v2414_v7 = vld [vmem:[%s9151_s4 + $0xd8] sm:$0xff] }
 0x6d5   :  { %5083 = vtanh.f32 %v2090_v47  ;;  %v2407_v47 = vld [vmem:[%s9151_s4 + $0xa0] sm:$0xff] }
 0x6de   :  { %v5078_v9 = vpop.eup %5077 }
 0x6df   :  { %v2100_v14 = vadd.f32 1.0, %v5078_v9  ;;  %v2409_v9 = vld [vmem:[%s9151_s4 + $0xb0] sm:$0xff] }
 0x6e0   :  { %v5080_v12 = vpop.eup %5079 }
 0x6e1   :  { %5085 = vrcp.f32 %v2100_v14  ;;  %v2101_v16 = vadd.f32 1.0, %v5080_v12  ;;  %v5082_v18 = vpop.eup %5081  ;;  %v2404_v14 = vld [vmem:[%s9151_s4 + $0x88] sm:$0xff]  ;;  %v2406_v12 = vld [vmem:[%s9151_s4 + $0x98] sm:$0xff] }
 0x6e2   :  { %v5084_v21 = vpop.eup %5083  ;;  %v2102_v17 = vadd.f32 1.0, %v5082_v18  ;;  %v2405_v18 = vld [vmem:[%s9151_s4 + $0x90] sm:$0xff] }
 0x6e3   :  { %5087 = vrcp.f32 %v2101_v16  ;;  %v2403_v16 = vld [vmem:[%s9151_s4 + $0x80] sm:$0xff] }
 0x6e4   :  { %5089 = vrcp.f32 %v2102_v17  ;;  %v2396_v17 = vld [vmem:[%s9151_s4 + $0x48] sm:$0xff] }
 0x6ee   :  { %v5086_v23 = vpop.eup %5085 }
 0x6ef   :  { %v2111_v26 = vmul.f32 %v5086_v23, %v5084_v21  ;;  %v2400_v21 = vld [vmem:[%s9151_s4 + $0x68] sm:$0xff]  ;;  %v2402_v23 = vld [vmem:[%s9151_s4 + $0x78] sm:$0xff] }
 0x6f0   :  { %v5088_v28 = vpop.eup %5087 }
 0x6f1   :  { %v2110_v35 = vmul.f32 %v5088_v28, %v6858_v46  ;;  %v5090_v22 = vpop.eup %5089  ;;  %v2448_v46 = vld [vmem:[%s9151_s4 + $0x1e8] sm:$0xff]  ;;  %v2401_v28 = vld [vmem:[%s9151_s4 + $0x70] sm:$0xff] }
 0x6f2   :  { %2473 = vmatprep.subr.mxu0 %v2448_v46  ;;  %v2392_v46 = vld [vmem:[%s9151_s4 + $0x28] sm:$0xff] }
 0x6f3   :  { %v7069_v37 = vadd.f32 %v2111_v26, %v2110_v35  ;;  %v2399_v26 = vld [vmem:[%s9151_s4 + $0x60] sm:$0xff]  ;;  %v2398_v35 = vld [vmem:[%s9151_s4 + $0x58] sm:$0xff] }
 0x6f5   :  { %5091 = vtanh.f32 %v7069_v37 }
 0x702   :  { %v5092_v20 = vpop.eup %5091 }
 0x703   :  { %v7072_v27 = vmul.f32 %v5092_v20, %v5090_v22  ;;  %v2395_v22 = vld [vmem:[%s9151_s4 + $0x40] sm:$0xff]  ;;  %v2397_v20 = vld [vmem:[%s9151_s4 + $0x50] sm:$0xff] }
 0x705   :  { %2249 = vmatmul.mubr.f32.vlgmr.msra.gmra.mxu0 %v7072_v27  ;;  %2320 = vmatmul.mubr.f32.vlgmr.msra.gmra.mxu1 %v7072_v27 }
 0x706   :  { %2537 = vmatprep.mubr.f32.mxu0 %v9669_v10  ;;  %2650 = vmatprep.mubr.f32.mxu1 %v9669_v10 }
 0x707   :  { %2474 = vmatpush1.msra.mxu0 %v2447_v29  ;;  %2587 = vmatpush1.msra.mxu1 %v2449_v15  ;;  %v2391_v29 = vld [vmem:[%s9151_s4 + $0x20] sm:$0xff]  ;;  %v2393_v15 = vld [vmem:[%s9151_s4 + $0x30] sm:$0xff] }
 0x708   :  { %2475 = vmatprep.subr.mxu0 %v2444_v11  ;;  %2588 = vmatprep.subr.mxu1 %v2446_v45  ;;  %v2388_v11 = vld [vmem:[%s9151_s4 + $0x8] sm:$0xff]  ;;  %v2390_v45 = vld [vmem:[%s9151_s4 + $0x18] sm:$0xff] }
 0x709   :  { %2476 = vmatpush1.msra.mxu0 %v2443_v55  ;;  %2589 = vmatpush1.msra.mxu1 %v2445_v42  ;;  %v2387_v55 = vld [vmem:[%s9151_s4] sm:$0xff]  ;;  %v2389_v42 = vld [vmem:[%s9151_s4 + $0x10] sm:$0xff] }
 0x70a   :  { %2477 = vmatprep.subr.mxu0 %v2440_v39  ;;  %2590 = vmatprep.subr.mxu1 %v2442_v31  ;;  %v7273_v39 = vld [vmem:[%s9152_s5 + $0x1e8] sm:$0xff]  ;;  %v7278_v31 = vld [vmem:[%s9152_s5 + $0x1f8] sm:$0xff] }
 0x70b   :  { %2478 = vmatpush1.msra.mxu0 %v2439_v25  ;;  %2591 = vmatpush1.msra.mxu1 %v2441_v38  ;;  %v9693_v38 = vld [vmem:[#allocation68_spill] sm:$0xff] }
 0x70c   :  { %2479 = vmatprep.subr.mxu0 %v2436_v5  ;;  %2592 = vmatprep.subr.mxu1 %v2438_v40 }
 0x70d   :  { %2480 = vmatpush1.msra.mxu0 %v2435_v32  ;;  %2593 = vmatpush1.msra.mxu1 %v2437_v30  ;;  %v9694_v30 = vld [vmem:[#allocation67_spill] sm:$0xff] }
 0x70e   :  { %2481 = vmatprep.subr.mxu0 %v2432_v44  ;;  %2594 = vmatprep.subr.mxu1 %v2434_v48  ;;  %v9695_v44 = vld [vmem:[#allocation66_spill] sm:$0xff] }
 0x70f   :  { %2482 = vmatpush1.msra.mxu0 %v2431_v34  ;;  %2595 = vmatpush1.msra.mxu1 %v2433_v2  ;;  %v9696_v48 = vsel %vm5918_vm4, %v9694_v30, %v9695_v44  ;;  %v7419_v30 = vld [vmem:[%s9152_s5 + $0x148] sm:$0xff]  ;;  %v7425_v44 = vld [vmem:[%s9152_s5 + $0x170] sm:$0xff] }
 0x710   :  { %2483 = vmatprep.subr.mxu0 %v2428_v52  ;;  %2596 = vmatprep.subr.mxu1 %v2430_v24  ;;  %v9697_v24 = vld [vmem:[#allocation65_spill] sm:$0xff] }
 0x711   :  { %2484 = vmatpush1.msra.mxu0 %v2427_v56  ;;  %2597 = vmatpush1.msra.mxu1 %v2429_v50  ;;  %v9698_v56 = vld [vmem:[#allocation64_spill] sm:$0xff] }
 0x712   :  { %2485 = vmatprep.subr.mxu0 %v2424_v51  ;;  %2598 = vmatprep.subr.mxu1 %v2426_v57  ;;  %v9699_v50 = vsel %vm5894_vm1, %v9697_v24, %v9698_v56  ;;  %v7457_v24 = vld [vmem:[%s9152_s5 + $0x120] sm:$0xff] }
 0x713   :  { %2486 = vmatpush1.msra.mxu0 %v2423_v58  ;;  %2599 = vmatpush1.msra.mxu1 %v2425_v60  ;;  %v9701_v60 = vld [vmem:[#allocation69_spill] sm:$0xff]  ;;  %v9707_v56 = vld [vmem:[#allocation20_spill] sm:$0xff] }
 0x714   :  { %2487 = vmatprep.subr.mxu0 %v2420_v59  ;;  %2600 = vmatprep.subr.mxu1 %v2422_v62  ;;  %v9700_v59 = vld [vmem:[#allocation70_spill] sm:$0xff] }
 0x715   :  { %2488 = vmatpush1.msra.mxu0 %v2419_v61  ;;  %2601 = vmatpush1.msra.mxu1 %v2421_v0  ;;  %v9702_v61 = vsel %vm5903_vm3, %v9700_v59, %v9701_v60  ;;  %v7484_v59 = vld [vmem:[%s9152_s5 + $0x100] sm:$0xff]  ;;  %v7490_v60 = vld [vmem:[%s9152_s5 + $0x118] sm:$0xff] }
 0x716   :  { %2489 = vmatprep.subr.mxu0 %v2416_v63  ;;  %2602 = vmatprep.subr.mxu1 %v2418_v6 }
 0x717   :  { %2490 = vmatpush1.msra.mxu0 %v2415_v19  ;;  %2603 = vmatpush1.msra.mxu1 %v2417_v3 }
 0x718   :  { %2491 = vmatprep.subr.mxu0 %v2412_v43  ;;  %2604 = vmatprep.subr.mxu1 %v2414_v7 }
 0x719   :  { %2492 = vmatpush1.msra.mxu0 %v2411_v36  ;;  %2605 = vmatpush1.msra.mxu1 %v2413_v33 }
 0x71a   :  { %2493 = vmatprep.subr.mxu0 %v2408_v4  ;;  %2606 = vmatprep.subr.mxu1 %v2410_v41 }
 0x71b   :  { %2494 = vmatpush1.msra.mxu0 %v2407_v47  ;;  %2607 = vmatpush1.msra.mxu1 %v2409_v9 }
 0x71c   :  { %2495 = vmatprep.subr.mxu0 %v2404_v14  ;;  %2608 = vmatprep.subr.mxu1 %v2406_v12 }
 0x71d   :  { %2496 = vmatpush1.msra.mxu0 %v2403_v16  ;;  %2609 = vmatpush1.msra.mxu1 %v2405_v18  ;;  %v7304_v16 = vld [vmem:[%s9152_s5 + $0x1e0] sm:$0xff]  ;;  %v7309_v18 = vld [vmem:[%s9152_s5 + $0x1f0] sm:$0xff] }
 0x71e   :  { %2497 = vmatprep.subr.mxu0 %v2400_v21  ;;  %2610 = vmatprep.subr.mxu1 %v2402_v23  ;;  %v9703_v21 = vld [vmem:[#allocation71_spill] sm:$0xff] }
 0x71f   :  { %2498 = vmatpush1.msra.mxu0 %v2399_v26  ;;  %2611 = vmatpush1.msra.mxu1 %v2401_v28  ;;  %v7318_v26 = vld [vmem:[%s9152_s5 + $0x1c8] sm:$0xff]  ;;  %v7323_v28 = vld [vmem:[%s9152_s5 + $0x1d8] sm:$0xff] }
 0x720   :  { %2499 = vmatprep.subr.mxu0 %v2396_v17  ;;  %2612 = vmatprep.subr.mxu1 %v2398_v35  ;;  %v7328_v17 = vld [vmem:[%s9152_s5 + $0x1c0] sm:$0xff]  ;;  %v7335_v35 = vld [vmem:[%s9152_s5 + $0x1a8] sm:$0xff] }
 0x721   :  { %2500 = vmatpush1.msra.mxu0 %v2395_v22  ;;  %2613 = vmatpush1.msra.mxu1 %v2397_v20  ;;  %v7342_v22 = vld [vmem:[%s9152_s5 + $0x1d0] sm:$0xff]  ;;  %v7349_v20 = vld [vmem:[%s9152_s5 + $0x1a0] sm:$0xff] }
 0x722   :  { %2501 = vmatprep.subr.mxu0 %v2392_v46  ;;  %2614 = vmatprep.subr.mxu1 %v2394_v53  ;;  %v9705_v46 = vld [vmem:[#allocation4_spill] sm:$0xff] }
 0x723   :  { %2502 = vmatpush1.msra.mxu0 %v2391_v29  ;;  %2615 = vmatpush1.msra.mxu1 %v2393_v15  ;;  %v2363_v53 = vsel %vm85_vm2, %v9705_v46, %v7072_v27  ;;  %v7360_v29 = vld [vmem:[%s9152_s5 + $0x1b8] sm:$0xff]  ;;  %v7365_v15 = vld [vmem:[%s9152_s5 + $0x188] sm:$0xff] }
 0x724   :  { %2503 = vmatprep.subr.mxu0 %v2388_v11  ;;  %2616 = vmatprep.subr.mxu1 %v2390_v45  ;;  %v7371_v11 = vld [vmem:[%s9152_s5 + $0x1b0] sm:$0xff]  ;;  %v7376_v45 = vld [vmem:[%s9152_s5 + $0x180] sm:$0xff] }
 0x725   :  { %2504 = vmatpush1.msra.mxu0 %v2387_v55  ;;  %2617 = vmatpush1.msra.mxu1 %v2389_v42  ;;  %v7382_v55 = vld [vmem:[%s9152_s5 + $0x198] sm:$0xff]  ;;  %v7389_v42 = vld [vmem:[%s9152_s5 + $0x168] sm:$0xff] }
 0x726   :  { %2831 = vmatprep.subr.mxu0 %v7273_v39  ;;  %2902 = vmatprep.subr.mxu1 %v7278_v31 }
 0x7c5   :  { %v2250_v25 = vpop.f32.mrf.mxu0  ;;  %v2321_v52 = vpop.f32.mrf.mxu1 }
 0x7c6   :  { %v2326_v5 = vadd.f32 %v2250_v25, %v9693_v38  ;;  %v2328_v51 = vadd.f32 %v2321_v52, %v9699_v50  ;;  %v7396_v25 = vld [vmem:[%s9152_s5 + $0x190] sm:$0xff]  ;;  %v7403_v38 = vld [vmem:[%s9152_s5 + $0x160] sm:$0xff]  ;;  %v2375_v50 = vsel %vm85_vm2, %v9707_v56, %v6772_v49 }
 0x7c7   :  { %v2252_v40 = vpop.f32.mrf.mxu0  ;;  %v2323_v57 = vpop.f32.mrf.mxu1  ;;  %v7450_v52 = vld [vmem:[%s9152_s5 + $0x150] sm:$0xff] }
 0x7c8   :  { %v4884_v32 = vmul.f32 -1.442695, %v2326_v5  ;;  %v2327_v34 = vadd.f32 %v2252_v40, %v9696_v48  ;;  %v4886_v58 = vmul.f32 -1.442695, %v2328_v51  ;;  %v2329_v62 = vadd.f32 %v2323_v57, %v9702_v61  ;;  %v9706_v5 = vld [vmem:[#allocation19_spill] sm:$0xff]  ;;  %v7430_v48 = vld [vmem:[%s9152_s5 + $0x140] sm:$0xff] }
 0x7c9   :  { %v2369_v40 = vsel %vm85_vm2, %v9706_v5, %v6861_v8  ;;  %v7468_v51 = vld [vmem:[%s9152_s5 + $0x138] sm:$0xff]  ;;  %v7473_v57 = vld [vmem:[%s9152_s5 + $0x108] sm:$0xff] }
 0x7ca   :  { %5093 = vpow2.f32 %v4884_v32  ;;  %v4885_v2 = vmul.f32 -1.442695, %v2327_v34  ;;  %v7414_v32 = vld [vmem:[%s9152_s5 + $0x178] sm:$0xff]  ;;  %v7497_v61 = vld [vmem:[%s9152_s5 + $0xe8] sm:$0xff] }
 0x7cb   :  { %v7436_v34 = vld [vmem:[%s9152_s5 + $0x158] sm:$0xff] }
 0x7cc   :  { %5095 = vpow2.f32 %v4885_v2  ;;  %v7443_v2 = vld [vmem:[%s9152_s5 + $0x128] sm:$0xff] }
 0x7cd   :  { %5097 = vpow2.f32 %v4886_v58  ;;  %v7479_v58 = vld [vmem:[%s9152_s5 + $0x130] sm:$0xff] }
 0x7ce   :  { %5099 = vtanh.f32 %v2329_v62  ;;  %v7504_v62 = vld [vmem:[%s9152_s5 + $0x110] sm:$0xff] }
 0x7d7   :  { %v5094_v63 = vpop.eup %5093 }
 0x7d8   :  { %v2339_v0 = vadd.f32 1.0, %v5094_v63  ;;  %v7511_v63 = vld [vmem:[%s9152_s5 + $0xe0] sm:$0xff] }
 0x7d9   :  { %v5096_v19 = vpop.eup %5095  ;;  %9708 = vst [vmem:[#allocation5_spill] sm:$0xff] %v7511_v63 }
 0x7da   :  { %5101 = vrcp.f32 %v2339_v0  ;;  %v2340_v6 = vadd.f32 1.0, %v5096_v19  ;;  %v5098_v43 = vpop.eup %5097  ;;  %v2377_v0 = vsel %vm85_vm2, %v6772_v49, %v9707_v56  ;;  %v7522_v19 = vld [vmem:[%s9152_s5 + $0xf8] sm:$0xff]  ;;  %v7538_v49 = vld [vmem:[%s9152_s5 + $0xc0] sm:$0xff] }
 0x7db   :  { %v5100_v3 = vpop.eup %5099  ;;  %v2341_v4 = vadd.f32 1.0, %v5098_v43  ;;  %v7533_v43 = vld [vmem:[%s9152_s5 + $0xf0] sm:$0xff]  ;;  %9711 = vst [vmem:[#allocation23_spill] sm:$0xff] %v7538_v49  ;;  %v7630_v56 = vld [vmem:[%s9152_s5 + $0x78] sm:$0xff] }
 0x7dc   :  { %5103 = vrcp.f32 %v2340_v6  ;;  %v7527_v6 = vld [vmem:[%s9152_s5 + $0xc8] sm:$0xff]  ;;  %9710 = vst [vmem:[#allocation6_spill] sm:$0xff] %v7533_v43  ;;  %9724 = vst [vmem:[#allocation49_spill] sm:$0xff] %v7630_v56 }
 0x7dd   :  { %5105 = vrcp.f32 %v2341_v4  ;;  %9709 = vst [vmem:[#allocation22_spill] sm:$0xff] %v7527_v6  ;;  %v2371_v4 = vsel %vm85_vm2, %v6861_v8, %v9706_v5  ;;  %v7592_v8 = vld [vmem:[%s9152_s5 + $0x80] sm:$0xff] }
 0x7de   :  { %9719 = vst [vmem:[#allocation47_spill] sm:$0xff] %v7592_v8  ;;  %v7619_v5 = vld [vmem:[%s9152_s5 + $0x60] sm:$0xff] }
 0x7df   :  { %9723 = vst [vmem:[#allocation46_spill] sm:$0xff] %v7619_v5 }
 0x7e7   :  { %v5102_v36 = vpop.eup %5101 }
 0x7e8   :  { %v2350_v7 = vmul.f32 %v5102_v36, %v5100_v3  ;;  %v7544_v3 = vld [vmem:[%s9152_s5 + $0xd8] sm:$0xff]  ;;  %v7551_v36 = vld [vmem:[%s9152_s5 + $0xa8] sm:$0xff] }
 0x7e9   :  { %v5104_v33 = vpop.eup %5103  ;;  %9712 = vst [vmem:[#allocation7_spill] sm:$0xff] %v7544_v3  ;;  %9713 = vst [vmem:[#allocation24_spill] sm:$0xff] %v7551_v36 }
 0x7ea   :  { %v2349_v41 = vmul.f32 %v5104_v33, %v7069_v37  ;;  %v5106_v9 = vpop.eup %5105  ;;  %v7565_v33 = vld [vmem:[%s9152_s5 + $0xa0] sm:$0xff]  ;;  %v7713_v37 = vld [vmem:[%s9152_s5 + $0x10] sm:$0xff] }
 0x7eb   :  { %9715 = vst [vmem:[#allocation25_spill] sm:$0xff] %v7565_v33  ;;  %9737 = vst [vmem:[#allocation15_spill] sm:$0xff] %v7713_v37 }
 0x7ec   :  { %v2351_v47 = vadd.f32 %v2350_v7, %v2349_v41  ;;  %v7558_v7 = vld [vmem:[%s9152_s5 + $0xd0] sm:$0xff]  ;;  %v7576_v41 = vld [vmem:[%s9152_s5 + $0xb8] sm:$0xff] }
 0x7ed   :  { %9714 = vst [vmem:[#allocation8_spill] sm:$0xff] %v7558_v7  ;;  %9716 = vst [vmem:[#allocation9_spill] sm:$0xff] %v7576_v41 }
 0x7ee   :  { %5107 = vtanh.f32 %v2351_v47  ;;  %v7581_v47 = vld [vmem:[%s9152_s5 + $0x88] sm:$0xff] }
 0x7ef   :  { %9717 = vst [vmem:[#allocation52_spill] sm:$0xff] %v7581_v47 }
 0x7fb   :  { %v5108_v14 = vpop.eup %5107 }
 0x7fc   :  { %v7299_v12 = vmul.f32 %v5108_v14, %v5106_v9  ;;  %v7587_v9 = vld [vmem:[%s9152_s5 + $0xb0] sm:$0xff]  ;;  %v7598_v14 = vld [vmem:[%s9152_s5 + $0x98] sm:$0xff] }
 0x7fd   :  { %9718 = vst [vmem:[#allocation51_spill] sm:$0xff] %v7587_v9  ;;  %9720 = vst [vmem:[#allocation55_spill] sm:$0xff] %v7598_v14 }
 0x7fe   :  { %v2357_v23 = vsel %vm85_vm2, %v9703_v21, %v7299_v12  ;;  %v2359_v13 = vsel %vm85_vm2, %v7299_v12, %v9703_v21  ;;  %v7700_v12 = vld [vmem:[%s9152_s5] sm:$0xff]  ;;  %v7706_v21 = vld [vmem:[%s9152_s5 + $0x18] sm:$0xff] }
 0x7ff   :  { %2538 = vmatmul.mubr.f32.vlgmr.msra.gmra.mxu0 %v2357_v23  ;;  %2651 = vmatmul.mubr.f32.vlgmr.msra.gmra.mxu1 %v2357_v23  ;;  %v7605_v23 = vld [vmem:[%s9152_s5 + $0x68] sm:$0xff]  ;;  %9735 = vst [vmem:[#allocation14_spill] sm:$0xff] %v7700_v12  ;;  %9736 = vst [vmem:[#allocation31_spill] sm:$0xff] %v7706_v21 }
 0x800   :  { %2832 = vmatpush1.msra.mxu0 %v7304_v16  ;;  %2903 = vmatpush1.msra.mxu1 %v7309_v18  ;;  %9721 = vst [vmem:[#allocation21_spill] sm:$0xff] %v7605_v23 }
 0x801   :  { %2833 = vmatprep.subr.mxu0 %v7318_v26  ;;  %2904 = vmatprep.subr.mxu1 %v7323_v28 }
 0x802   :  { %2834 = vmatpush1.msra.mxu0 %v7328_v17  ;;  %2543 = vmatprep.mubr.f32.mxu0 %v9669_v10 }
 0x803   :  { %2656 = vmatprep.mubr.f32.mxu1 %v9669_v10  ;;  %2835 = vmatprep.subr.mxu0 %v7335_v35 }
 0x804   :  { %2905 = vmatpush1.msra.mxu1 %v7342_v22  ;;  %2544 = vmatmul.mubr.f32.gmra.mxu0 %v2363_v53 }
 0x805   :  { %2657 = vmatmul.mubr.f32.gmra.mxu1 %v2363_v53  ;;  %2836 = vmatpush1.msra.mxu0 %v7349_v20  ;;  %v7612_v53 = vld [vmem:[%s9152_s5 + $0x90] sm:$0xff] }
 0x806   :  { %2906 = vmatprep.subr.mxu1 %v7360_v29  ;;  %2837 = vmatprep.subr.mxu0 %v7365_v15  ;;  %9722 = vst [vmem:[#allocation53_spill] sm:$0xff] %v7612_v53 }
 0x807   :  { %2907 = vmatpush1.msra.mxu1 %v7371_v11  ;;  %2838 = vmatpush1.msra.mxu0 %v7376_v45 }
 0x808   :  { %2908 = vmatprep.subr.mxu1 %v7382_v55  ;;  %2549 = vmatprep.mubr.f32.mxu0 %v9669_v10 }
 0x809   :  { %2662 = vmatprep.mubr.f32.mxu1 %v9669_v10  ;;  %2839 = vmatprep.subr.mxu0 %v7389_v42 }
 0x80a   :  { %2909 = vmatpush1.msra.mxu1 %v7396_v25  ;;  %2550 = vmatmul.mubr.f32.gmra.mxu0 %v2369_v40 }
 0x80b   :  { %2663 = vmatmul.mubr.f32.gmra.mxu1 %v2369_v40  ;;  %2840 = vmatpush1.msra.mxu0 %v7403_v38  ;;  %v2365_v40 = vsel %vm85_vm2, %v7072_v27, %v9705_v46  ;;  %v7646_v27 = vld [vmem:[%s9152_s5 + $0x40] sm:$0xff]  ;;  %v7652_v46 = vld [vmem:[%s9152_s5 + $0x58] sm:$0xff] }
 0x80c   :  { %2910 = vmatprep.subr.mxu1 %v7414_v32  ;;  %2841 = vmatprep.subr.mxu0 %v7419_v30  ;;  %9727 = vst [vmem:[#allocation10_spill] sm:$0xff] %v7646_v27  ;;  %9728 = vst [vmem:[#allocation27_spill] sm:$0xff] %v7652_v46 }
 0x80d   :  { %2911 = vmatpush1.msra.mxu1 %v7425_v44  ;;  %2842 = vmatpush1.msra.mxu0 %v7430_v48 }
 0x80e   :  { %2912 = vmatprep.subr.mxu1 %v7436_v34  ;;  %2555 = vmatprep.mubr.f32.mxu0 %v9669_v10 }
 0x80f   :  { %2668 = vmatprep.mubr.f32.mxu1 %v9669_v10  ;;  %2843 = vmatprep.subr.mxu0 %v7443_v2 }
 0x810   :  { %2913 = vmatpush1.msra.mxu1 %v7450_v52  ;;  %2556 = vmatmul.mubr.f32.gmra.mxu0 %v2375_v50 }
 0x811   :  { %2669 = vmatmul.mubr.f32.gmra.mxu1 %v2375_v50  ;;  %2844 = vmatpush1.msra.mxu0 %v7457_v24  ;;  %v7635_v50 = vld [vmem:[%s9152_s5 + $0x48] sm:$0xff] }
 0x812   :  { %2914 = vmatprep.subr.mxu1 %v7468_v51  ;;  %2845 = vmatprep.subr.mxu0 %v7473_v57  ;;  %9725 = vst [vmem:[#allocation45_spill] sm:$0xff] %v7635_v50 }
 0x813   :  { %2915 = vmatpush1.msra.mxu1 %v7479_v58  ;;  %2846 = vmatpush1.msra.mxu0 %v7484_v59 }
 0x814   :  { %2916 = vmatprep.subr.mxu1 %v7490_v60  ;;  %2561 = vmatprep.mubr.f32.mxu0 %v9669_v10 }
 0x815   :  { %2674 = vmatprep.mubr.f32.mxu1 %v9669_v10  ;;  %2847 = vmatprep.subr.mxu0 %v7497_v61 }
 0x816   :  { %2917 = vmatpush1.msra.mxu1 %v7504_v62  ;;  %2562 = vmatmul.mubr.f32.gmra.mxu0 %v2377_v0 }
 0x817   :  { %2675 = vmatmul.mubr.f32.gmra.mxu1 %v2377_v0  ;;  %2848 = vmatpush1.msra.mxu0 %v7511_v63  ;;  %v7641_v0 = vld [vmem:[%s9152_s5 + $0x70] sm:$0xff] }
 0x818   :  { %2918 = vmatprep.subr.mxu1 %v7522_v19  ;;  %2849 = vmatprep.subr.mxu0 %v7527_v6  ;;  %9726 = vst [vmem:[#allocation26_spill] sm:$0xff] %v7641_v0 }
 0x819   :  { %2919 = vmatpush1.msra.mxu1 %v7533_v43  ;;  %2850 = vmatpush1.msra.mxu0 %v7538_v49 }
 0x81a   :  { %2920 = vmatprep.subr.mxu1 %v7544_v3  ;;  %2567 = vmatprep.mubr.f32.mxu0 %v9669_v10 }
 0x81b   :  { %2680 = vmatprep.mubr.f32.mxu1 %v9669_v10  ;;  %2851 = vmatprep.subr.mxu0 %v7551_v36 }
 0x81c   :  { %2921 = vmatpush1.msra.mxu1 %v7558_v7  ;;  %2568 = vmatmul.mubr.f32.gmra.mxu0 %v2371_v4 }
 0x81d   :  { %2681 = vmatmul.mubr.f32.gmra.mxu1 %v2371_v4  ;;  %2852 = vmatpush1.msra.mxu0 %v7565_v33  ;;  %v7659_v4 = vld [vmem:[%s9152_s5 + $0x28] sm:$0xff] }
 0x81e   :  { %2922 = vmatprep.subr.mxu1 %v7576_v41  ;;  %2853 = vmatprep.subr.mxu0 %v7581_v47  ;;  %9729 = vst [vmem:[#allocation11_spill] sm:$0xff] %v7659_v4 }
 0x81f   :  { %2923 = vmatpush1.msra.mxu1 %v7587_v9  ;;  %2854 = vmatpush1.msra.mxu0 %v7592_v8 }
 0x820   :  { %2924 = vmatprep.subr.mxu1 %v7598_v14  ;;  %2573 = vmatprep.mubr.f32.mxu0 %v9669_v10 }
 0x821   :  { %2686 = vmatprep.mubr.f32.mxu1 %v9669_v10  ;;  %2855 = vmatprep.subr.mxu0 %v7605_v23 }
 0x822   :  { %2925 = vmatpush1.msra.mxu1 %v7612_v53  ;;  %2574 = vmatmul.mubr.f32.gmra.mxu0 %v2365_v40 }
 0x823   :  { %2687 = vmatmul.mubr.f32.gmra.mxu1 %v2365_v40  ;;  %2856 = vmatpush1.msra.mxu0 %v7619_v5  ;;  %v7666_v40 = vld [vmem:[%s9152_s5 + $0x50] sm:$0xff] }
 0x824   :  { %2926 = vmatprep.subr.mxu1 %v7630_v56  ;;  %2857 = vmatprep.subr.mxu0 %v7635_v50  ;;  %9730 = vst [vmem:[#allocation28_spill] sm:$0xff] %v7666_v40 }
 0x825   :  { %2927 = vmatpush1.msra.mxu1 %v7641_v0  ;;  %2858 = vmatpush1.msra.mxu0 %v7646_v27  ;;  %v7689_v27 = vld [vmem:[%s9152_s5 + $0x8] sm:$0xff] }
 0x826   :  { %2928 = vmatprep.subr.mxu1 %v7652_v46  ;;  %2579 = vmatprep.mubr.f32.mxu0 %v9669_v10  ;;  %9733 = vst [vmem:[#allocation13_spill] sm:$0xff] %v7689_v27 }
 0x827   :  { %2692 = vmatprep.mubr.f32.mxu1 %v9669_v10  ;;  %2859 = vmatprep.subr.mxu0 %v7659_v4  ;;  %v7695_v4 = vld [vmem:[%s9152_s5 + $0x30] sm:$0xff] }
 0x828   :  { %2929 = vmatpush1.msra.mxu1 %v7666_v40  ;;  %2580 = vmatmul.mubr.f32.gmra.mxu0 %v2359_v13  ;;  %9734 = vst [vmem:[#allocation30_spill] sm:$0xff] %v7695_v4 }
 0x829   :  { %2693 = vmatmul.mubr.f32.gmra.mxu1 %v2359_v13  ;;  %2860 = vmatpush1.msra.mxu0 %v7673_v54  ;;  %v9738_v13 = vld [vmem:[#allocation10_spill] sm:$0xff] }
 0x82a   :  { %2930 = vmatprep.subr.mxu1 %v7684_v1  ;;  %2861 = vmatprep.subr.mxu0 %v7689_v27 }
 0x82b   :  { %2931 = vmatpush1.msra.mxu1 %v7695_v4  ;;  %2862 = vmatpush1.msra.mxu0 %v7700_v12 }
 0x82c   :  { %2932 = vmatprep.subr.mxu1 %v7706_v21  ;;  %2895 = vmatprep.mubr.f32.mxu0 %v9669_v10 }
 0x82d   :  { %2933 = vmatpush1.msra.mxu1 %v7713_v37  ;;  %2966 = vmatprep.mubr.f32.mxu1 %v9669_v10 }
 0x82e   :  { %2896 = vmatmul.mubr.f32.vlgmr.msra.gmra.mxu0 %v9669_v10  ;;  %2967 = vmatmul.mubr.f32.vlgmr.msra.gmra.mxu1 %v9669_v10 }
 0x82f   :  { %3070 = vmatprep.subr.mxu0 %v7273_v39  ;;  %3141 = vmatprep.subr.mxu1 %v7278_v31 }
 0x830   :  { %3071 = vmatpush1.msra.mxu0 %v7304_v16  ;;  %3142 = vmatpush1.msra.mxu1 %v7309_v18 }
 0x831   :  { %3072 = vmatprep.subr.mxu0 %v7318_v26  ;;  %3143 = vmatprep.subr.mxu1 %v7323_v28 }
 0x832   :  { %3073 = vmatpush1.msra.mxu0 %v7328_v17  ;;  %3144 = vmatpush1.msra.mxu1 %v7342_v22 }
 0x833   :  { %3074 = vmatprep.subr.mxu0 %v7335_v35  ;;  %3145 = vmatprep.subr.mxu1 %v7360_v29 }
 0x834   :  { %3075 = vmatpush1.msra.mxu0 %v7349_v20  ;;  %3146 = vmatpush1.msra.mxu1 %v7371_v11 }
 0x835   :  { %3076 = vmatprep.subr.mxu0 %v7365_v15  ;;  %3147 = vmatprep.subr.mxu1 %v7382_v55 }
 0x836   :  { %3077 = vmatpush1.msra.mxu0 %v7376_v45  ;;  %3148 = vmatpush1.msra.mxu1 %v7396_v25 }
 0x837   :  { %3078 = vmatprep.subr.mxu0 %v7389_v42  ;;  %3149 = vmatprep.subr.mxu1 %v7414_v32 }
 0x838   :  { %3079 = vmatpush1.msra.mxu0 %v7403_v38  ;;  %3150 = vmatpush1.msra.mxu1 %v7425_v44 }
 0x839   :  { %3080 = vmatprep.subr.mxu0 %v7419_v30  ;;  %3151 = vmatprep.subr.mxu1 %v7436_v34 }
 0x83a   :  { %3081 = vmatpush1.msra.mxu0 %v7430_v48  ;;  %3152 = vmatpush1.msra.mxu1 %v7450_v52 }
 0x83b   :  { %3082 = vmatprep.subr.mxu0 %v7443_v2  ;;  %3153 = vmatprep.subr.mxu1 %v7468_v51 }
 0x83c   :  { %3083 = vmatpush1.msra.mxu0 %v7457_v24  ;;  %3154 = vmatpush1.msra.mxu1 %v7479_v58 }
 0x83d   :  { %3084 = vmatprep.subr.mxu0 %v7473_v57  ;;  %3155 = vmatprep.subr.mxu1 %v7490_v60 }
 0x83e   :  { %3085 = vmatpush1.msra.mxu0 %v7484_v59  ;;  %3156 = vmatpush1.msra.mxu1 %v7504_v62 }
 0x83f   :  { %3086 = vmatprep.subr.mxu0 %v7497_v61  ;;  %3157 = vmatprep.subr.mxu1 %v7522_v19 }
 0x840   :  { %3087 = vmatpush1.msra.mxu0 %v7511_v63  ;;  %3158 = vmatpush1.msra.mxu1 %v7533_v43 }
 0x841   :  { %3088 = vmatprep.subr.mxu0 %v7527_v6  ;;  %3159 = vmatprep.subr.mxu1 %v7544_v3 }
 0x842   :  { %3089 = vmatpush1.msra.mxu0 %v7538_v49  ;;  %3160 = vmatpush1.msra.mxu1 %v7558_v7 }
 0x843   :  { %3090 = vmatprep.subr.mxu0 %v7551_v36  ;;  %3161 = vmatprep.subr.mxu1 %v7576_v41 }
 0x844   :  { %3091 = vmatpush1.msra.mxu0 %v7565_v33  ;;  %3162 = vmatpush1.msra.mxu1 %v7587_v9 }
 0x845   :  { %3092 = vmatprep.subr.mxu0 %v7581_v47  ;;  %3163 = vmatprep.subr.mxu1 %v7598_v14  ;;  %v9739_v14 = vld [vmem:[#allocation11_spill] sm:$0xff] }
 0x846   :  { %3093 = vmatpush1.msra.mxu0 %v7592_v8  ;;  %3164 = vmatpush1.msra.mxu1 %v7612_v53 }
 0x847   :  { %3094 = vmatprep.subr.mxu0 %v7605_v23  ;;  %3165 = vmatprep.subr.mxu1 %v7630_v56 }
 0x848   :  { %3095 = vmatpush1.msra.mxu0 %v7619_v5  ;;  %3166 = vmatpush1.msra.mxu1 %v7641_v0 }
 0x849   :  { %3096 = vmatprep.subr.mxu0 %v7635_v50  ;;  %3167 = vmatprep.subr.mxu1 %v7652_v46 }
 0x84a   :  { %3097 = vmatpush1.msra.mxu0 %v9738_v13  ;;  %3168 = vmatpush1.msra.mxu1 %v7666_v40 }
 0x84b   :  { %3098 = vmatprep.subr.mxu0 %v9739_v14  ;;  %3169 = vmatprep.subr.mxu1 %v7684_v1 }
 0x84c   :  { %3099 = vmatpush1.msra.mxu0 %v7673_v54  ;;  %3170 = vmatpush1.msra.mxu1 %v7695_v4  ;;  %v9740_v4 = vld [vmem:[#allocation37_spill] sm:$0xff] }
 0x84d   :  { %3100 = vmatprep.subr.mxu0 %v7689_v27  ;;  %3171 = vmatprep.subr.mxu1 %v7706_v21  ;;  %v2451_v21 = vld [vmem:[%s9153_s6] sm:$0xf]  ;;  %v9743_v40 = vsub.s32 1, %v9740_v4  ;;  %v9744_v0 = vsub.s32 3, %v9740_v4 }
 0x84e   :  { %3101 = vmatpush1.msra.mxu0 %v7700_v12  ;;  %3134 = vmatprep.mubr.f32.mxu0 %v9669_v10 }
 0x84f   :  { %3172 = vmatpush1.msra.mxu1 %v7713_v37  ;;  %3205 = vmatprep.mubr.f32.mxu1 %v9669_v10  ;;  %v9741_v37 = vsub.s32 0, %v9740_v4  ;;  %v7812_v13 = vrot.slane %v2451_v21, %v9743_v40  ;;  %v7819_v5 = vrot.slane %v2451_v21, %v9744_v0 }
 0x850   :  { %3309 = vmatprep.subr.mxu0 %v7273_v39  ;;  %3380 = vmatprep.subr.mxu1 %v7278_v31  ;;  %v9742_v39 = vsub.s32 2, %v9740_v4 }
 0x851   :  { %v7804_v14 = vrot.slane %v2451_v21, %v9741_v37 }
 0x852   :  { %v7808_v10 = vrot.slane %v2451_v21, %v9742_v39 }
 0x8bf   :  { %v7791_v1 = vpop.f32.mrf.mxu0  ;;  %v7793_v54 = vpop.f32.mrf.mxu1 }
 0x8c1   :  { %v7798_v27 = vpop.f32.mrf.mxu0  ;;  %v7800_v12 = vpop.f32.mrf.mxu1 }
 0x8c4   :  { %v2545_v31 = vpop.f32.mrf.mxu0 }
 0x8c5   :  { %v7815_v46 = vadd.f32 %v2545_v31, %v7804_v14  ;;  %v2658_v50 = vpop.f32.mrf.mxu1 }
 0x8c6   :  { %v7822_v37 = vadd.f32 %v2658_v50, %v7808_v10  ;;  %v2547_v56 = vpop.f32.mrf.mxu0 }
 0x8c7   :  { %v7825_v39 = vadd.f32 %v2547_v56, %v7812_v13  ;;  %v2660_v23 = vpop.f32.mrf.mxu1 }
 0x8c8   :  { %9745 = vst [vmem:[#allocation32_spill] sm:$0xff] %v7822_v37  ;;  %v7828_v53 = vadd.f32 %v2660_v23, %v7819_v5 }
 0x8c9   :  { %9746 = vst [vmem:[#allocation16_spill] sm:$0xff] %v7825_v39 }
 0x8ca   :  { %9747 = vst [vmem:[#allocation33_spill] sm:$0xff] %v7828_v53  ;;  %v2551_v40 = vpop.f32.mrf.mxu0 }
 0x8cb   :  { %v2552_v31 = vadd.f32 %v2551_v40, %v7804_v14  ;;  %v2664_v8 = vpop.f32.mrf.mxu1 }
 0x8cc   :  { %v7832_v47 = vadd.f32 %v2664_v8, %v7808_v10  ;;  %v2553_v0 = vpop.f32.mrf.mxu0 }
 0x8cd   :  { %v7835_v4 = vadd.f32 %v2553_v0, %v7812_v13  ;;  %v2666_v50 = vpop.f32.mrf.mxu1 }
 0x8ce   :  { %9748 = vst [vmem:[#allocation17_spill] sm:$0xff] %v7832_v47  ;;  %v7838_v21 = vadd.f32 %v2666_v50, %v7819_v5 }
 0x8cf   :  { %9749 = vst [vmem:[#allocation34_spill] sm:$0xff] %v7835_v4 }
 0x8d0   :  { %9750 = vst [vmem:[#allocation18_spill] sm:$0xff] %v7838_v21  ;;  %v2557_v56 = vpop.f32.mrf.mxu0 }
 0x8d1   :  { %v2558_v9 = vadd.f32 %v2557_v56, %v7804_v14  ;;  %v2670_v23 = vpop.f32.mrf.mxu1 }
 0x8d2   :  { %v7842_v33 = vadd.f32 %v2670_v23, %v7808_v10  ;;  %v2559_v40 = vpop.f32.mrf.mxu0 }
 0x8d3   :  { %v7845_v41 = vadd.f32 %v2559_v40, %v7812_v13  ;;  %v2672_v8 = vpop.f32.mrf.mxu1 }
 0x8d4   :  { %9751 = vst [vmem:[#allocation35_spill] sm:$0xff] %v7842_v33  ;;  %v7848_v36 = vadd.f32 %v2672_v8, %v7819_v5 }
 0x8d5   :  { %9752 = vst [vmem:[#allocation36_spill] sm:$0xff] %v7845_v41 }
 0x8d6   :  { %9753 = vst [vmem:[#allocation58_spill] sm:$0xff] %v7848_v36  ;;  %v2563_v0 = vpop.f32.mrf.mxu0 }
 0x8d7   :  { %v2564_v7 = vadd.f32 %v2563_v0, %v7804_v14  ;;  %v2676_v50 = vpop.f32.mrf.mxu1 }
 0x8d8   :  { %v7852_v49 = vadd.f32 %v2676_v50, %v7808_v10  ;;  %v2565_v56 = vpop.f32.mrf.mxu0 }
 0x8d9   :  { %v7855_v3 = vadd.f32 %v2565_v56, %v7812_v13  ;;  %v2678_v23 = vpop.f32.mrf.mxu1  ;;  %v7859_v40 = vsel %vm85_vm2, %v2558_v9, %v2564_v7  ;;  %v7863_v8 = vsel %vm85_vm2, %v2564_v7, %v2558_v9 }
 0x8da   :  { %9754 = vst [vmem:[#allocation57_spill] sm:$0xff] %v7852_v49  ;;  %9757 = vst [vmem:[#allocation56_spill] sm:$0xff] %v7859_v40  ;;  %v7866_v43 = vadd.f32 %v2678_v23, %v7819_v5 }
 0x8db   :  { %9755 = vst [vmem:[#allocation43_spill] sm:$0xff] %v7855_v3  ;;  %9758 = vst [vmem:[#allocation42_spill] sm:$0xff] %v7863_v8 }
 0x8dc   :  { %9759 = vst [vmem:[#allocation59_spill] sm:$0xff] %v7866_v43  ;;  %v2569_v9 = vpop.f32.mrf.mxu0 }
 0x8dd   :  { %v2570_v8 = vadd.f32 %v2569_v9, %v7804_v14  ;;  %v2682_v49 = vpop.f32.mrf.mxu1 }
 0x8de   :  { %v7894_v63 = vadd.f32 %v2682_v49, %v7808_v10  ;;  %v2571_v33 = vpop.f32.mrf.mxu0 }
 0x8df   :  { %v7897_v7 = vadd.f32 %v2571_v33, %v7812_v13  ;;  %v2684_v3 = vpop.f32.mrf.mxu1  ;;  %v7901_v41 = vsel %vm85_vm2, %v2552_v31, %v2570_v8  ;;  %v7905_v50 = vsel %vm85_vm2, %v2570_v8, %v2552_v31 }
 0x8e0   :  { %9763 = vst [vmem:[#allocation44_spill] sm:$0xff] %v7894_v63  ;;  %9765 = vst [vmem:[#allocation61_spill] sm:$0xff] %v7905_v50  ;;  %v7908_v56 = vadd.f32 %v2684_v3, %v7819_v5 }
 0x8e1   :  { %9764 = vst [vmem:[#allocation62_spill] sm:$0xff] %v7897_v7 }
 0x8e2   :  { %9766 = vst [vmem:[#allocation40_spill] sm:$0xff] %v7908_v56  ;;  %v2575_v31 = vpop.f32.mrf.mxu0 }
 0x8e3   :  { %v2576_v49 = vadd.f32 %v2575_v31, %v7804_v14  ;;  %v2688_v50 = vpop.f32.mrf.mxu1 }
 0x8e4   :  { %v7936_v9 = vadd.f32 %v2688_v50, %v7808_v10  ;;  %v2577_v43 = vpop.f32.mrf.mxu0 }
 0x8e5   :  { %v7939_v3 = vadd.f32 %v2577_v43, %v7812_v13  ;;  %v2690_v36 = vpop.f32.mrf.mxu1  ;;  %v7944_v8 = vsel %vm85_vm2, %v7815_v46, %v2576_v49  ;;  %v7949_v33 = vsel %vm85_vm2, %v2576_v49, %v7815_v46  ;;  %v2540_v43 = vadd.f32 %v7791_v1, %v7804_v14 }
 0x8e6   :  { %9767 = vst [vmem:[#allocation60_spill] sm:$0xff] %v7936_v9  ;;  %9769 = vst [vmem:[#allocation63_spill] sm:$0xff] %v7949_v33  ;;  %v7952_v31 = vadd.f32 %v2690_v36, %v7819_v5  ;;  %v7983_v36 = vadd.f32 %v7793_v54, %v7808_v10  ;;  %v7990_v49 = vadd.f32 %v7798_v27, %v7812_v13 }
 0x8e7   :  { %9768 = vst [vmem:[#allocation39_spill] sm:$0xff] %v7939_v3  ;;  %v8001_v54 = vadd.f32 %v7800_v12, %v7819_v5 }
 0x8e8   :  { %9770 = vst [vmem:[#allocation41_spill] sm:$0xff] %v7952_v31  ;;  %v2581_v46 = vpop.f32.mrf.mxu0  ;;  %9771 = vst [vmem:[#allocation68_spill] sm:$0xff] %v7983_v36 }
 0x8e9   :  { %v2582_v56 = vadd.f32 %v2581_v46, %v7804_v14  ;;  %v2694_v33 = vpop.f32.mrf.mxu1  ;;  %9773 = vst [vmem:[#allocation66_spill] sm:$0xff] %v7990_v49  ;;  %9776 = vst [vmem:[#allocation70_spill] sm:$0xff] %v8001_v54 }
 0x8ea   :  { %v7986_v21 = vadd.f32 %v2694_v33, %v7808_v10  ;;  %v2583_v63 = vpop.f32.mrf.mxu0 }
 0x8eb   :  { %v7993_v50 = vadd.f32 %v2583_v63, %v7812_v13  ;;  %v2696_v47 = vpop.f32.mrf.mxu1  ;;  %v7997_v1 = vsel %vm85_vm2, %v2582_v56, %v2540_v43  ;;  %v2699_v14 = vsel %vm85_vm2, %v2540_v43, %v2582_v56 }
 0x8ec   :  { %9772 = vst [vmem:[#allocation67_spill] sm:$0xff] %v7986_v21  ;;  %9775 = vst [vmem:[#allocation64_spill] sm:$0xff] %v7997_v1  ;;  %v8004_v10 = vadd.f32 %v2696_v47, %v7819_v5  ;;  %v2701_v63 = vsel %vm5894_vm1, %v7983_v36, %v7986_v21 }
 0x8ed   :  { %9774 = vst [vmem:[#allocation65_spill] sm:$0xff] %v7993_v50  ;;  %v2700_v47 = vsel %vm5918_vm4, %v7990_v49, %v7993_v50 }
 0x8ee   :  { %9777 = vst [vmem:[#allocation69_spill] sm:$0xff] %v8004_v10  ;;  %v2897_v13 = vpop.f32.mrf.mxu0  ;;  %v2968_v27 = vpop.f32.mrf.mxu1  ;;  %v2702_v49 = vsel %vm5903_vm3, %v8001_v54, %v8004_v10  ;;  %v8416_v54 = vld [vmem:[%s9152_s5 + $0x68] sm:$0xff]  ;;  %v8421_v10 = vld [vmem:[%s9152_s5 + $0x78] sm:$0xff] }
 0x8ef   :  { %v2973_v12 = vadd.f32 %v2897_v13, %v2699_v14  ;;  %v2975_v6 = vadd.f32 %v2968_v27, %v2701_v63 }
 0x8f0   :  { %v2899_v56 = vpop.f32.mrf.mxu0  ;;  %v2970_v5 = vpop.f32.mrf.mxu1 }
 0x8f1   :  { %v4887_v33 = vmul.f32 -1.442695, %v2973_v12  ;;  %v2974_v43 = vadd.f32 %v2899_v56, %v2700_v47  ;;  %v4889_v14 = vmul.f32 -1.442695, %v2975_v6  ;;  %v2976_v12 = vadd.f32 %v2970_v5, %v2702_v49 }
 0x8f3   :  { %5109 = vpow2.f32 %v4887_v33  ;;  %v4888_v46 = vmul.f32 -1.442695, %v2974_v43 }
 0x8f5   :  { %5111 = vpow2.f32 %v4888_v46 }
 0x8f6   :  { %5113 = vpow2.f32 %v4889_v14  ;;  %v9810_v14 = vsel %vm5918_vm4, %v7825_v39, %v7939_v3  ;;  %v8452_v39 = vld [vmem:[%s9152_s5 + $0x40] sm:$0xff]  ;;  %v8457_v3 = vld [vmem:[%s9152_s5 + $0x50] sm:$0xff] }
 0x900   :  { %v5110_v13 = vpop.eup %5109 }
 0x901   :  { %v2986_v47 = vadd.f32 1.0, %v5110_v13 }
 0x902   :  { %v5112_v56 = vpop.eup %5111 }
 0x903   :  { %5115 = vrcp.f32 %v2986_v47  ;;  %v2987_v33 = vadd.f32 1.0, %v5112_v56  ;;  %v5114_v43 = vpop.eup %5113  ;;  %v9811_v56 = vsel %vm5894_vm1, %v7822_v37, %v7936_v9  ;;  %v8440_v37 = vld [vmem:[%s9152_s5 + $0x48] sm:$0xff]  ;;  %v8445_v9 = vld [vmem:[%s9152_s5 + $0x58] sm:$0xff] }
 0x904   :  { %5117 = vtanh.f32 %v2976_v12  ;;  %v2988_v27 = vadd.f32 1.0, %v5114_v43 }
 0x905   :  { %5119 = vrcp.f32 %v2987_v33 }
 0x906   :  { %5121 = vrcp.f32 %v2988_v27 }
 0x910   :  { %v5116_v46 = vpop.eup %5115 }
 0x911   :  { %v5118_v36 = vpop.eup %5117 }
 0x912   :  { %v5120_v63 = vpop.eup %5119  ;;  %v2997_v50 = vmul.f32 %v5118_v36, %v5116_v46  ;;  %v9812_v46 = vsel %vm5903_vm3, %v7828_v53, %v7952_v31  ;;  %v8428_v53 = vld [vmem:[%s9152_s5 + $0x60] sm:$0xff]  ;;  %v8433_v31 = vld [vmem:[%s9152_s5 + $0x70] sm:$0xff] }
 0x913   :  { %v2996_v21 = vmul.f32 0.0, %v5120_v63  ;;  %v5122_v6 = vpop.eup %5121 }
 0x915   :  { %v8032_v1 = vadd.f32 %v2997_v50, %v2996_v21 }
 0x917   :  { %5123 = vtanh.f32 %v8032_v1 }
 0x924   :  { %v5124_v49 = vpop.eup %5123 }
 0x925   :  { %v8035_v5 = vmul.f32 %v5124_v49, %v5122_v6 }
 0x927   :  { %9778 = vst [vmem:[#allocation71_spill] sm:$0xff] %v8035_v5  ;;  %3135 = vmatmul.mubr.f32.vlgmr.msra.gmra.mxu0 %v8035_v5  ;;  %3206 = vmatmul.mubr.f32.vlgmr.msra.gmra.mxu1 %v8035_v5  ;;  %v8409_v5 = vld [vmem:[%s9152_s5 + $0x90] sm:$0xff] }
 0x928   :  { %3310 = vmatpush1.msra.mxu0 %v7304_v16  ;;  %3381 = vmatpush1.msra.mxu1 %v7309_v18  ;;  %v9779_v16 = vld [vmem:[#allocation5_spill] sm:$0xff]  ;;  %v9780_v18 = vld [vmem:[#allocation6_spill] sm:$0xff] }
 0x929   :  { %3311 = vmatprep.subr.mxu0 %v7318_v26  ;;  %3382 = vmatprep.subr.mxu1 %v7323_v28  ;;  %v9781_v26 = vld [vmem:[#allocation22_spill] sm:$0xff]  ;;  %v9782_v28 = vld [vmem:[#allocation7_spill] sm:$0xff]  ;;  %9818 = vst [vmem:[#allocation5_spill] sm:$0xff] %v8409_v5  ;;  %9819 = vst [vmem:[#allocation6_spill] sm:$0xff] %v8416_v54 }
 0x92a   :  { %3312 = vmatpush1.msra.mxu0 %v7328_v17  ;;  %3383 = vmatpush1.msra.mxu1 %v7342_v22  ;;  %v9783_v17 = vld [vmem:[#allocation23_spill] sm:$0xff]  ;;  %v9785_v22 = vld [vmem:[#allocation24_spill] sm:$0xff]  ;;  %9820 = vst [vmem:[#allocation22_spill] sm:$0xff] %v8421_v10  ;;  %9821 = vst [vmem:[#allocation7_spill] sm:$0xff] %v8428_v53 }
 0x92b   :  { %3313 = vmatprep.subr.mxu0 %v7335_v35  ;;  %3384 = vmatprep.subr.mxu1 %v7360_v29  ;;  %v9784_v35 = vld [vmem:[#allocation8_spill] sm:$0xff]  ;;  %v9787_v29 = vld [vmem:[#allocation25_spill] sm:$0xff]  ;;  %9822 = vst [vmem:[#allocation23_spill] sm:$0xff] %v8433_v31  ;;  %9824 = vst [vmem:[#allocation24_spill] sm:$0xff] %v8445_v9 }
 0x92c   :  { %3314 = vmatpush1.msra.mxu0 %v7349_v20  ;;  %3385 = vmatpush1.msra.mxu1 %v7371_v11  ;;  %v9786_v20 = vld [vmem:[#allocation9_spill] sm:$0xff]  ;;  %v9789_v11 = vld [vmem:[#allocation52_spill] sm:$0xff]  ;;  %9823 = vst [vmem:[#allocation8_spill] sm:$0xff] %v8440_v37  ;;  %9826 = vst [vmem:[#allocation25_spill] sm:$0xff] %v8457_v3 }
 0x92d   :  { %3315 = vmatprep.subr.mxu0 %v7365_v15  ;;  %3386 = vmatprep.subr.mxu1 %v7382_v55  ;;  %v9788_v15 = vld [vmem:[#allocation51_spill] sm:$0xff]  ;;  %9825 = vst [vmem:[#allocation9_spill] sm:$0xff] %v8452_v39 }
 0x92e   :  { %3316 = vmatpush1.msra.mxu0 %v7376_v45  ;;  %3387 = vmatpush1.msra.mxu1 %v7396_v25  ;;  %v9790_v45 = vld [vmem:[#allocation55_spill] sm:$0xff]  ;;  %v9793_v25 = vld [vmem:[#allocation21_spill] sm:$0xff] }
 0x92f   :  { %3317 = vmatprep.subr.mxu0 %v7389_v42  ;;  %3388 = vmatprep.subr.mxu1 %v7414_v32  ;;  %v9791_v55 = vld [vmem:[#allocation47_spill] sm:$0xff]  ;;  %v9792_v42 = vld [vmem:[#allocation53_spill] sm:$0xff]  ;;  %v9795_v32 = vld [vmem:[#allocation46_spill] sm:$0xff] }
 0x930   :  { %3318 = vmatpush1.msra.mxu0 %v7403_v38  ;;  %3389 = vmatpush1.msra.mxu1 %v7425_v44  ;;  %v9794_v38 = vld [vmem:[#allocation49_spill] sm:$0xff] }
 0x931   :  { %3319 = vmatprep.subr.mxu0 %v7419_v30  ;;  %3390 = vmatprep.subr.mxu1 %v7436_v34  ;;  %v9796_v30 = vld [vmem:[#allocation26_spill] sm:$0xff]  ;;  %v9797_v44 = vld [vmem:[#allocation45_spill] sm:$0xff] }
 0x932   :  { %3320 = vmatpush1.msra.mxu0 %v7430_v48  ;;  %3391 = vmatpush1.msra.mxu1 %v7450_v52  ;;  %v9798_v48 = vld [vmem:[#allocation27_spill] sm:$0xff]  ;;  %v9799_v34 = vld [vmem:[#allocation10_spill] sm:$0xff] }
 0x933   :  { %3321 = vmatprep.subr.mxu0 %v7443_v2  ;;  %3392 = vmatprep.subr.mxu1 %v7468_v51  ;;  %v9800_v2 = vld [vmem:[#allocation28_spill] sm:$0xff]  ;;  %v9801_v52 = vld [vmem:[#allocation11_spill] sm:$0xff] }
 0x934   :  { %3322 = vmatpush1.msra.mxu0 %v7457_v24  ;;  %3393 = vmatpush1.msra.mxu1 %v7479_v58  ;;  %v9802_v24 = vld [vmem:[#allocation29_spill] sm:$0xff]  ;;  %v9803_v51 = vld [vmem:[#allocation12_spill] sm:$0xff] }
 0x935   :  { %3323 = vmatprep.subr.mxu0 %v7473_v57  ;;  %3394 = vmatprep.subr.mxu1 %v7490_v60  ;;  %v9804_v57 = vld [vmem:[#allocation30_spill] sm:$0xff]  ;;  %v9805_v58 = vld [vmem:[#allocation13_spill] sm:$0xff] }
 0x936   :  { %3324 = vmatpush1.msra.mxu0 %v7484_v59  ;;  %3395 = vmatpush1.msra.mxu1 %v7504_v62  ;;  %v9806_v59 = vld [vmem:[#allocation31_spill] sm:$0xff]  ;;  %v9807_v60 = vld [vmem:[#allocation14_spill] sm:$0xff] }
 0x937   :  { %3325 = vmatprep.subr.mxu0 %v7497_v61  ;;  %3396 = vmatprep.subr.mxu1 %v7522_v19  ;;  %v9808_v61 = vmov 0.0   ;;  %v9809_v62 = vld [vmem:[#allocation15_spill] sm:$0xff] }
 0x938   :  { %3326 = vmatpush1.msra.mxu0 %v9779_v16  ;;  %3397 = vmatpush1.msra.mxu1 %v9780_v18 }
 0x939   :  { %3327 = vmatprep.subr.mxu0 %v9781_v26  ;;  %3398 = vmatprep.subr.mxu1 %v9782_v28 }
 0x93a   :  { %3328 = vmatpush1.msra.mxu0 %v9783_v17  ;;  %3399 = vmatpush1.msra.mxu1 %v9784_v35 }
 0x93b   :  { %3329 = vmatprep.subr.mxu0 %v9785_v22  ;;  %3400 = vmatprep.subr.mxu1 %v9786_v20 }
 0x93c   :  { %3330 = vmatpush1.msra.mxu0 %v9787_v29  ;;  %3401 = vmatpush1.msra.mxu1 %v9788_v15 }
 0x93d   :  { %3331 = vmatprep.subr.mxu0 %v9789_v11  ;;  %3402 = vmatprep.subr.mxu1 %v9790_v45 }
 0x93e   :  { %3332 = vmatpush1.msra.mxu0 %v9791_v55  ;;  %3403 = vmatpush1.msra.mxu1 %v9792_v42  ;;  %v8137_v55 = vld [vmem:[%s9152_s5 + $0x1f8] sm:$0xff]  ;;  %v8144_v42 = vld [vmem:[%s9152_s5 + $0x1e0] sm:$0xff] }
 0x93f   :  { %3333 = vmatprep.subr.mxu0 %v9793_v25  ;;  %3404 = vmatprep.subr.mxu1 %v9794_v38  ;;  %9815 = vst [vmem:[#allocation20_spill] sm:$0xff] %v8137_v55  ;;  %v8149_v25 = vld [vmem:[%s9152_s5 + $0x1f0] sm:$0xff]  ;;  %v8156_v38 = vld [vmem:[%s9152_s5 + $0x1c8] sm:$0xff] }
 0x940   :  { %3334 = vmatpush1.msra.mxu0 %v9795_v32  ;;  %3405 = vmatpush1.msra.mxu1 %v9796_v30  ;;  %v8161_v32 = vld [vmem:[%s9152_s5 + $0x1d8] sm:$0xff]  ;;  %v8168_v30 = vld [vmem:[%s9152_s5 + $0x1c0] sm:$0xff] }
 0x941   :  { %3335 = vmatprep.subr.mxu0 %v9797_v44  ;;  %3406 = vmatprep.subr.mxu1 %v9798_v48  ;;  %v8173_v44 = vld [vmem:[%s9152_s5 + $0x1d0] sm:$0xff]  ;;  %v8180_v48 = vld [vmem:[%s9152_s5 + $0x1a8] sm:$0xff] }
 0x942   :  { %3336 = vmatpush1.msra.mxu0 %v9799_v34  ;;  %3407 = vmatpush1.msra.mxu1 %v9800_v2  ;;  %v8185_v34 = vld [vmem:[%s9152_s5 + $0x1b8] sm:$0xff]  ;;  %v8192_v2 = vld [vmem:[%s9152_s5 + $0x1a0] sm:$0xff] }
 0x943   :  { %3337 = vmatprep.subr.mxu0 %v9801_v52  ;;  %3408 = vmatprep.subr.mxu1 %v9802_v24  ;;  %v8197_v52 = vld [vmem:[%s9152_s5 + $0x1b0] sm:$0xff]  ;;  %v8204_v24 = vld [vmem:[%s9152_s5 + $0x188] sm:$0xff] }
 0x944   :  { %3338 = vmatpush1.msra.mxu0 %v9803_v51  ;;  %3409 = vmatpush1.msra.mxu1 %v9804_v57  ;;  %v8209_v51 = vld [vmem:[%s9152_s5 + $0x198] sm:$0xff]  ;;  %v8216_v57 = vld [vmem:[%s9152_s5 + $0x180] sm:$0xff] }
 0x945   :  { %3339 = vmatprep.subr.mxu0 %v9805_v58  ;;  %3410 = vmatprep.subr.mxu1 %v9806_v59  ;;  %v8221_v58 = vld [vmem:[%s9152_s5 + $0x190] sm:$0xff]  ;;  %v8228_v59 = vld [vmem:[%s9152_s5 + $0x168] sm:$0xff] }
 0x946   :  { %3340 = vmatpush1.msra.mxu0 %v9807_v60  ;;  %3373 = vmatprep.mubr.f32.mxu0 %v9808_v61  ;;  %v8233_v60 = vld [vmem:[%s9152_s5 + $0x178] sm:$0xff] }
 0x947   :  { %3411 = vmatpush1.msra.mxu1 %v9809_v62  ;;  %3444 = vmatprep.mubr.f32.mxu1 %v9808_v61  ;;  %v8240_v62 = vld [vmem:[%s9152_s5 + $0x160] sm:$0xff] }
 0x948   :  { %3619 = vmatprep.subr.mxu1 %v8137_v55 }
 0x9e7   :  { %v3136_v19 = vpop.f32.mrf.mxu0  ;;  %v3207_v47 = vpop.f32.mrf.mxu1 }
 0x9e8   :  { %v3212_v21 = vadd.f32 %v3136_v19, %v7944_v8  ;;  %v3214_v33 = vadd.f32 %v3207_v47, %v9811_v56  ;;  %v8245_v19 = vld [vmem:[%s9152_s5 + $0x170] sm:$0xff]  ;;  %v8288_v47 = vld [vmem:[%s9152_s5 + $0x120] sm:$0xff] }
 0x9e9   :  { %v3138_v50 = vpop.f32.mrf.mxu0  ;;  %v3209_v43 = vpop.f32.mrf.mxu1  ;;  %v8293_v56 = vld [vmem:[%s9152_s5 + $0x130] sm:$0xff] }
 0x9ea   :  { %v4890_v36 = vmul.f32 -1.442695, %v3212_v21  ;;  %v3213_v13 = vadd.f32 %v3138_v50, %v9810_v14  ;;  %v4892_v8 = vmul.f32 -1.442695, %v3214_v33  ;;  %v3215_v63 = vadd.f32 %v3209_v43, %v9812_v46  ;;  %v8252_v21 = vld [vmem:[%s9152_s5 + $0x148] sm:$0xff]  ;;  %v8257_v50 = vld [vmem:[%s9152_s5 + $0x158] sm:$0xff] }
 0x9eb   :  { %v8269_v14 = vld [vmem:[%s9152_s5 + $0x150] sm:$0xff]  ;;  %v8300_v33 = vld [vmem:[%s9152_s5 + $0x108] sm:$0xff]  ;;  %v8305_v43 = vld [vmem:[%s9152_s5 + $0x118] sm:$0xff] }
 0x9ec   :  { %5125 = vpow2.f32 %v4890_v36  ;;  %v4891_v12 = vmul.f32 -1.442695, %v3213_v13  ;;  %v8264_v36 = vld [vmem:[%s9152_s5 + $0x140] sm:$0xff]  ;;  %v8276_v13 = vld [vmem:[%s9152_s5 + $0x128] sm:$0xff]  ;;  %v8317_v46 = vld [vmem:[%s9152_s5 + $0x110] sm:$0xff] }
 0x9ee   :  { %5127 = vpow2.f32 %v4891_v12  ;;  %v8281_v12 = vld [vmem:[%s9152_s5 + $0x138] sm:$0xff] }
 0x9ef   :  { %5129 = vpow2.f32 %v4892_v8  ;;  %v8310_v8 = vld [vmem:[%s9152_s5 + $0x100] sm:$0xff] }
 0x9f0   :  { %5131 = vtanh.f32 %v3215_v63  ;;  %v8322_v63 = vld [vmem:[%s9152_s5 + $0xe8] sm:$0xff] }
 0x9f9   :  { %v5126_v27 = vpop.eup %5125 }
 0x9fa   :  { %v3225_v6 = vadd.f32 1.0, %v5126_v27  ;;  %v8327_v27 = vld [vmem:[%s9152_s5 + $0xf8] sm:$0xff] }
 0x9fb   :  { %v5128_v49 = vpop.eup %5127 }
 0x9fc   :  { %5133 = vrcp.f32 %v3225_v6  ;;  %v3226_v16 = vadd.f32 1.0, %v5128_v49  ;;  %v5130_v18 = vpop.eup %5129  ;;  %v8334_v6 = vld [vmem:[%s9152_s5 + $0xe0] sm:$0xff]  ;;  %v8339_v49 = vld [vmem:[%s9152_s5 + $0xf0] sm:$0xff] }
 0x9fd   :  { %v5132_v26 = vpop.eup %5131  ;;  %v3227_v22 = vadd.f32 1.0, %v5130_v18  ;;  %v8351_v18 = vld [vmem:[%s9152_s5 + $0xd8] sm:$0xff] }
 0x9fe   :  { %5135 = vrcp.f32 %v3226_v16  ;;  %v8344_v16 = vld [vmem:[%s9152_s5 + $0xc8] sm:$0xff] }
 0x9ff   :  { %5137 = vrcp.f32 %v3227_v22  ;;  %v8380_v22 = vld [vmem:[%s9152_s5 + $0xa0] sm:$0xff] }
 0xa09   :  { %v5134_v28 = vpop.eup %5133 }
 0xa0a   :  { %v3236_v17 = vmul.f32 %v5134_v28, %v5132_v26  ;;  %v8356_v26 = vld [vmem:[%s9152_s5 + $0xc0] sm:$0xff]  ;;  %v8361_v28 = vld [vmem:[%s9152_s5 + $0xd0] sm:$0xff] }
 0xa0b   :  { %v5136_v35 = vpop.eup %5135 }
 0xa0c   :  { %v3235_v20 = vmul.f32 %v5136_v35, %v8032_v1  ;;  %v5138_v15 = vpop.eup %5137  ;;  %v8132_v1 = vld [vmem:[%s9152_s5 + $0x1e8] sm:$0xff]  ;;  %v8373_v35 = vld [vmem:[%s9152_s5 + $0xb8] sm:$0xff] }
 0xa0d   :  { %9814 = vst [vmem:[#allocation19_spill] sm:$0xff] %v8132_v1  ;;  %3548 = vmatprep.subr.mxu0 %v8132_v1 }
 0xa0e   :  { %v8120_v29 = vadd.f32 %v3236_v17, %v3235_v20  ;;  %v8368_v17 = vld [vmem:[%s9152_s5 + $0xa8] sm:$0xff]  ;;  %v8385_v20 = vld [vmem:[%s9152_s5 + $0xb0] sm:$0xff] }
 0xa10   :  { %5139 = vtanh.f32 %v8120_v29 }
 0xa1d   :  { %v5140_v11 = vpop.eup %5139 }
 0xa1e   :  { %v8123_v45 = vmul.f32 %v5140_v11, %v5138_v15  ;;  %v8392_v15 = vld [vmem:[%s9152_s5 + $0x88] sm:$0xff]  ;;  %v8397_v11 = vld [vmem:[%s9152_s5 + $0x98] sm:$0xff] }
 0xa1f   :  { %9816 = vst [vmem:[#allocation37_spill] sm:$0xff] %v8397_v11 }
 0xa20   :  { %9813 = vst [vmem:[#allocation4_spill] sm:$0xff] %v8123_v45  ;;  %3374 = vmatmul.mubr.f32.vlgmr.msra.gmra.mxu0 %v8123_v45  ;;  %3445 = vmatmul.mubr.f32.vlgmr.msra.gmra.mxu1 %v8123_v45  ;;  %v8404_v45 = vld [vmem:[%s9152_s5 + $0x80] sm:$0xff] }
 0xa21   :  { %3612 = vmatprep.mubr.f32.mxu0 %v9808_v61  ;;  %3683 = vmatprep.mubr.f32.mxu1 %v9808_v61  ;;  %9817 = vst [vmem:[#allocation48_spill] sm:$0xff] %v8404_v45  ;;  %v8464_v61 = vld [vmem:[%s9152_s5 + $0x28] sm:$0xff] }
 0xa22   :  { %3549 = vmatpush1.msra.mxu0 %v8144_v42  ;;  %3620 = vmatpush1.msra.mxu1 %v8149_v25  ;;  %9827 = vst [vmem:[#allocation51_spill] sm:$0xff] %v8464_v61 }
 0xa23   :  { %3550 = vmatprep.subr.mxu0 %v8156_v38  ;;  %3621 = vmatprep.subr.mxu1 %v8161_v32 }
 0xa24   :  { %3551 = vmatpush1.msra.mxu0 %v8168_v30  ;;  %3622 = vmatpush1.msra.mxu1 %v8173_v44 }
 0xa25   :  { %3552 = vmatprep.subr.mxu0 %v8180_v48  ;;  %3623 = vmatprep.subr.mxu1 %v8185_v34 }
 0xa26   :  { %3553 = vmatpush1.msra.mxu0 %v8192_v2  ;;  %3624 = vmatpush1.msra.mxu1 %v8197_v52 }
 0xa27   :  { %3554 = vmatprep.subr.mxu0 %v8204_v24  ;;  %3625 = vmatprep.subr.mxu1 %v8209_v51 }
 0xa28   :  { %3555 = vmatpush1.msra.mxu0 %v8216_v57  ;;  %3626 = vmatpush1.msra.mxu1 %v8221_v58 }
 0xa29   :  { %3556 = vmatprep.subr.mxu0 %v8228_v59  ;;  %3627 = vmatprep.subr.mxu1 %v8233_v60 }
 0xa2a   :  { %3557 = vmatpush1.msra.mxu0 %v8240_v62  ;;  %3628 = vmatpush1.msra.mxu1 %v8245_v19 }
 0xa2b   :  { %3558 = vmatprep.subr.mxu0 %v8252_v21  ;;  %3629 = vmatprep.subr.mxu1 %v8257_v50 }
 0xa2c   :  { %3559 = vmatpush1.msra.mxu0 %v8264_v36  ;;  %3630 = vmatpush1.msra.mxu1 %v8269_v14 }
 0xa2d   :  { %3560 = vmatprep.subr.mxu0 %v8276_v13  ;;  %3631 = vmatprep.subr.mxu1 %v8281_v12 }
 0xa2e   :  { %3561 = vmatpush1.msra.mxu0 %v8288_v47  ;;  %3632 = vmatpush1.msra.mxu1 %v8293_v56 }
 0xa2f   :  { %3562 = vmatprep.subr.mxu0 %v8300_v33  ;;  %3633 = vmatprep.subr.mxu1 %v8305_v43 }
 0xa30   :  { %3563 = vmatpush1.msra.mxu0 %v8310_v8  ;;  %3634 = vmatpush1.msra.mxu1 %v8317_v46 }
 0xa31   :  { %3564 = vmatprep.subr.mxu0 %v8322_v63  ;;  %3635 = vmatprep.subr.mxu1 %v8327_v27 }
 0xa32   :  { %3565 = vmatpush1.msra.mxu0 %v8334_v6  ;;  %3636 = vmatpush1.msra.mxu1 %v8339_v49 }
 0xa33   :  { %3566 = vmatprep.subr.mxu0 %v8344_v16  ;;  %3637 = vmatprep.subr.mxu1 %v8351_v18 }
 0xa34   :  { %3567 = vmatpush1.msra.mxu0 %v8356_v26  ;;  %3638 = vmatpush1.msra.mxu1 %v8361_v28 }
 0xa35   :  { %3568 = vmatprep.subr.mxu0 %v8368_v17  ;;  %3639 = vmatprep.subr.mxu1 %v8373_v35 }
 0xa36   :  { %3569 = vmatpush1.msra.mxu0 %v8380_v22  ;;  %3640 = vmatpush1.msra.mxu1 %v8385_v20 }
 0xa37   :  { %3570 = vmatprep.subr.mxu0 %v8392_v15  ;;  %3641 = vmatprep.subr.mxu1 %v8397_v11 }
 0xa38   :  { %3571 = vmatpush1.msra.mxu0 %v8404_v45  ;;  %3642 = vmatpush1.msra.mxu1 %v8409_v5 }
 0xa39   :  { %3572 = vmatprep.subr.mxu0 %v8416_v54  ;;  %3643 = vmatprep.subr.mxu1 %v8421_v10  ;;  %v8469_v10 = vld [vmem:[%s9152_s5 + $0x38] sm:$0xff] }
 0xa3a   :  { %3573 = vmatpush1.msra.mxu0 %v8428_v53  ;;  %3644 = vmatpush1.msra.mxu1 %v8433_v31  ;;  %9828 = vst [vmem:[#allocation52_spill] sm:$0xff] %v8469_v10  ;;  %v8476_v53 = vld [vmem:[%s9152_s5 + $0x20] sm:$0xff]  ;;  %v8481_v31 = vld [vmem:[%s9152_s5 + $0x30] sm:$0xff] }
 0xa3b   :  { %3574 = vmatprep.subr.mxu0 %v8440_v37  ;;  %3645 = vmatprep.subr.mxu1 %v8445_v9  ;;  %9829 = vst [vmem:[#allocation55_spill] sm:$0xff] %v8476_v53  ;;  %9830 = vst [vmem:[#allocation47_spill] sm:$0xff] %v8481_v31  ;;  %v8488_v37 = vld [vmem:[%s9152_s5 + $0x8] sm:$0xff]  ;;  %v8493_v9 = vld [vmem:[%s9152_s5 + $0x18] sm:$0xff] }
 0xa3c   :  { %3575 = vmatpush1.msra.mxu0 %v8452_v39  ;;  %3646 = vmatpush1.msra.mxu1 %v8457_v3  ;;  %9831 = vst [vmem:[#allocation53_spill] sm:$0xff] %v8488_v37  ;;  %9832 = vst [vmem:[#allocation21_spill] sm:$0xff] %v8493_v9  ;;  %v8500_v39 = vld [vmem:[%s9152_s5] sm:$0xff]  ;;  %v8505_v3 = vld [vmem:[%s9152_s5 + $0x10] sm:$0xff] }
 0xa3d   :  { %3576 = vmatprep.subr.mxu0 %v8464_v61  ;;  %3647 = vmatprep.subr.mxu1 %v8469_v10  ;;  %9833 = vst [vmem:[#allocation49_spill] sm:$0xff] %v8500_v39  ;;  %9834 = vst [vmem:[#allocation46_spill] sm:$0xff] %v8505_v3 }
 0xa3e   :  { %3577 = vmatpush1.msra.mxu0 %v8476_v53  ;;  %3648 = vmatpush1.msra.mxu1 %v8481_v31 }
 0xa3f   :  { %3578 = vmatprep.subr.mxu0 %v8488_v37  ;;  %3649 = vmatprep.subr.mxu1 %v8493_v9  ;;  %v9835_v37 = vsel %vm5918_vm4, %v7835_v4, %v7897_v7 }
 0xa40   :  { %3579 = vmatpush1.msra.mxu0 %v8500_v39  ;;  %3650 = vmatpush1.msra.mxu1 %v8505_v3  ;;  %v9837_v3 = vld [vmem:[#allocation44_spill] sm:$0xff] }
 0xa41   :  { %3787 = vmatprep.subr.mxu0 %v8132_v1  ;;  %3858 = vmatprep.subr.mxu1 %v8137_v55  ;;  %v9836_v1 = vld [vmem:[#allocation17_spill] sm:$0xff] }
 0xa42   :  { %v9838_v55 = vsel %vm5894_vm1, %v9836_v1, %v9837_v3 }
 0xae0   :  { %v3375_v10 = vpop.f32.mrf.mxu0  ;;  %v3446_v39 = vpop.f32.mrf.mxu1 }
 0xae1   :  { %v3451_v61 = vadd.f32 %v3375_v10, %v7901_v41  ;;  %v3453_v53 = vadd.f32 %v3446_v39, %v9838_v55  ;;  %v9839_v10 = vld [vmem:[#allocation18_spill] sm:$0xff] }
 0xae2   :  { %v3377_v54 = vpop.f32.mrf.mxu0  ;;  %v3448_v45 = vpop.f32.mrf.mxu1 }
 0xae3   :  { %v4893_v5 = vmul.f32 -1.442695, %v3451_v61  ;;  %v3452_v31 = vadd.f32 %v3377_v54, %v9835_v37  ;;  %v4895_v41 = vmul.f32 -1.442695, %v3453_v53  ;;  %v9840_v61 = vld [vmem:[#allocation40_spill] sm:$0xff] }
 0xae4   :  { %v9841_v40 = vsel %vm5903_vm3, %v9839_v10, %v9840_v61  ;;  %v9859_v10 = vld [vmem:[#allocation21_spill] sm:$0xff] }
 0xae5   :  { %5141 = vpow2.f32 %v4893_v5  ;;  %v4894_v9 = vmul.f32 -1.442695, %v3452_v31  ;;  %v3454_v11 = vadd.f32 %v3448_v45, %v9841_v40  ;;  %v9860_v61 = vld [vmem:[#allocation49_spill] sm:$0xff] }
 0xae7   :  { %5143 = vpow2.f32 %v4894_v9 }
 0xae8   :  { %5145 = vpow2.f32 %v4895_v41  ;;  %v9847_v41 = vld [vmem:[#allocation22_spill] sm:$0xff] }
 0xae9   :  { %5147 = vtanh.f32 %v3454_v11  ;;  %v9846_v11 = vld [vmem:[#allocation6_spill] sm:$0xff] }
 0xaf2   :  { %v5142_v4 = vpop.eup %5141 }
 0xaf3   :  { %v3464_v37 = vadd.f32 1.0, %v5142_v4 }
 0xaf4   :  { %v5144_v31 = vpop.eup %5143 }
 0xaf5   :  { %5149 = vrcp.f32 %v3464_v37  ;;  %v3465_v9 = vadd.f32 1.0, %v5144_v31  ;;  %v5146_v54 = vpop.eup %5145  ;;  %v9848_v37 = vld [vmem:[#allocation7_spill] sm:$0xff] }
 0xaf6   :  { %v5148_v5 = vpop.eup %5147  ;;  %v3466_v53 = vadd.f32 1.0, %v5146_v54  ;;  %v9849_v31 = vld [vmem:[#allocation23_spill] sm:$0xff]  ;;  %v9851_v54 = vld [vmem:[#allocation24_spill] sm:$0xff] }
 0xaf7   :  { %5151 = vrcp.f32 %v3465_v9  ;;  %v9850_v9 = vld [vmem:[#allocation8_spill] sm:$0xff] }
 0xaf8   :  { %5153 = vrcp.f32 %v3466_v53  ;;  %v9855_v53 = vld [vmem:[#allocation52_spill] sm:$0xff] }
 0xb02   :  { %v5150_v1 = vpop.eup %5149 }
 0xb03   :  { %v3475_v39 = vmul.f32 %v5150_v1, %v5148_v5  ;;  %v9845_v1 = vld [vmem:[#allocation5_spill] sm:$0xff] }
 0xb04   :  { %v5152_v55 = vpop.eup %5151  ;;  %v9852_v5 = vld [vmem:[#allocation9_spill] sm:$0xff] }
 0xb05   :  { %v3474_v3 = vmul.f32 %v5152_v55, %v8120_v29  ;;  %v5154_v4 = vpop.eup %5153  ;;  %v9844_v29 = vld [vmem:[#allocation48_spill] sm:$0xff]  ;;  %v9854_v55 = vld [vmem:[#allocation51_spill] sm:$0xff] }
 0xb07   :  { %v8532_v7 = vadd.f32 %v3475_v39, %v3474_v3  ;;  %v9843_v3 = vld [vmem:[#allocation37_spill] sm:$0xff] }
 0xb08   :  { %v9853_v39 = vld [vmem:[#allocation25_spill] sm:$0xff] }
 0xb09   :  { %5155 = vtanh.f32 %v8532_v7 }
 0xb16   :  { %v5156_v40 = vpop.eup %5155 }
 0xb17   :  { %v8535_v45 = vmul.f32 %v5156_v40, %v5154_v4  ;;  %v9856_v4 = vld [vmem:[#allocation55_spill] sm:$0xff] }
 0xb18   :  { %v9857_v40 = vld [vmem:[#allocation47_spill] sm:$0xff] }
 0xb19   :  { %9842 = vst [vmem:[#allocation26_spill] sm:$0xff] %v8535_v45  ;;  %3613 = vmatmul.mubr.f32.vlgmr.msra.gmra.mxu0 %v8535_v45  ;;  %3684 = vmatmul.mubr.f32.vlgmr.msra.gmra.mxu1 %v8535_v45  ;;  %v9858_v45 = vld [vmem:[#allocation53_spill] sm:$0xff] }
 0xb1a   :  { %3788 = vmatpush1.msra.mxu0 %v8144_v42  ;;  %3859 = vmatpush1.msra.mxu1 %v8149_v25 }
 0xb1b   :  { %3789 = vmatprep.subr.mxu0 %v8156_v38  ;;  %3860 = vmatprep.subr.mxu1 %v8161_v32 }
 0xb1c   :  { %3790 = vmatpush1.msra.mxu0 %v8168_v30  ;;  %3861 = vmatpush1.msra.mxu1 %v8173_v44 }
 0xb1d   :  { %3791 = vmatprep.subr.mxu0 %v8180_v48  ;;  %3862 = vmatprep.subr.mxu1 %v8185_v34 }
 0xb1e   :  { %3792 = vmatpush1.msra.mxu0 %v8192_v2  ;;  %3863 = vmatpush1.msra.mxu1 %v8197_v52 }
 0xb1f   :  { %3793 = vmatprep.subr.mxu0 %v8204_v24  ;;  %3864 = vmatprep.subr.mxu1 %v8209_v51 }
 0xb20   :  { %3794 = vmatpush1.msra.mxu0 %v8216_v57  ;;  %3865 = vmatpush1.msra.mxu1 %v8221_v58 }
 0xb21   :  { %3795 = vmatprep.subr.mxu0 %v8228_v59  ;;  %3866 = vmatprep.subr.mxu1 %v8233_v60 }
 0xb22   :  { %3796 = vmatpush1.msra.mxu0 %v8240_v62  ;;  %3867 = vmatpush1.msra.mxu1 %v8245_v19 }
 0xb23   :  { %3797 = vmatprep.subr.mxu0 %v8252_v21  ;;  %3868 = vmatprep.subr.mxu1 %v8257_v50 }
 0xb24   :  { %3798 = vmatpush1.msra.mxu0 %v8264_v36  ;;  %3869 = vmatpush1.msra.mxu1 %v8269_v14 }
 0xb25   :  { %3799 = vmatprep.subr.mxu0 %v8276_v13  ;;  %3870 = vmatprep.subr.mxu1 %v8281_v12 }
 0xb26   :  { %3800 = vmatpush1.msra.mxu0 %v8288_v47  ;;  %3871 = vmatpush1.msra.mxu1 %v8293_v56 }
 0xb27   :  { %3801 = vmatprep.subr.mxu0 %v8300_v33  ;;  %3872 = vmatprep.subr.mxu1 %v8305_v43 }
 0xb28   :  { %3802 = vmatpush1.msra.mxu0 %v8310_v8  ;;  %3873 = vmatpush1.msra.mxu1 %v8317_v46 }
 0xb29   :  { %3803 = vmatprep.subr.mxu0 %v8322_v63  ;;  %3874 = vmatprep.subr.mxu1 %v8327_v27 }
 0xb2a   :  { %3804 = vmatpush1.msra.mxu0 %v8334_v6  ;;  %3875 = vmatpush1.msra.mxu1 %v8339_v49 }
 0xb2b   :  { %3805 = vmatprep.subr.mxu0 %v8344_v16  ;;  %3876 = vmatprep.subr.mxu1 %v8351_v18 }
 0xb2c   :  { %3806 = vmatpush1.msra.mxu0 %v8356_v26  ;;  %3877 = vmatpush1.msra.mxu1 %v8361_v28 }
 0xb2d   :  { %3807 = vmatprep.subr.mxu0 %v8368_v17  ;;  %3878 = vmatprep.subr.mxu1 %v8373_v35 }
 0xb2e   :  { %3808 = vmatpush1.msra.mxu0 %v8380_v22  ;;  %3879 = vmatpush1.msra.mxu1 %v8385_v20 }
 0xb2f   :  { %3809 = vmatprep.subr.mxu0 %v8392_v15  ;;  %3880 = vmatprep.subr.mxu1 %v9843_v3 }
 0xb30   :  { %3810 = vmatpush1.msra.mxu0 %v9844_v29  ;;  %3881 = vmatpush1.msra.mxu1 %v9845_v1 }
 0xb31   :  { %3811 = vmatprep.subr.mxu0 %v9846_v11  ;;  %3882 = vmatprep.subr.mxu1 %v9847_v41 }
 0xb32   :  { %3812 = vmatpush1.msra.mxu0 %v9848_v37  ;;  %3883 = vmatpush1.msra.mxu1 %v9849_v31  ;;  %v9868_v37 = vld [vmem:[#allocation43_spill] sm:$0xff] }
 0xb33   :  { %3813 = vmatprep.subr.mxu0 %v9850_v9  ;;  %3884 = vmatprep.subr.mxu1 %v9851_v54  ;;  %v9861_v9 = vmov 0.0   ;;  %v9862_v54 = vld [vmem:[#allocation46_spill] sm:$0xff] }
 0xb34   :  { %3814 = vmatpush1.msra.mxu0 %v9852_v5  ;;  %3885 = vmatpush1.msra.mxu1 %v9853_v39  ;;  %v9863_v39 = vld [vmem:[#allocation19_spill] sm:$0xff] }
 0xb35   :  { %3815 = vmatprep.subr.mxu0 %v9854_v55  ;;  %3886 = vmatprep.subr.mxu1 %v9855_v53  ;;  %v9864_v55 = vld [vmem:[#allocation20_spill] sm:$0xff] }
 0xb36   :  { %3816 = vmatpush1.msra.mxu0 %v9856_v4  ;;  %3887 = vmatpush1.msra.mxu1 %v9857_v40  ;;  %v9865_v4 = vld [vmem:[#allocation56_spill] sm:$0xff] }
 0xb37   :  { %3817 = vmatprep.subr.mxu0 %v9858_v45  ;;  %3888 = vmatprep.subr.mxu1 %v9859_v10  ;;  %v9867_v10 = vld [vmem:[#allocation36_spill] sm:$0xff] }
 0xb38   :  { %3818 = vmatpush1.msra.mxu0 %v9860_v61  ;;  %3851 = vmatprep.mubr.f32.mxu0 %v9861_v9  ;;  %v9869_v61 = vsel %vm5918_vm4, %v9867_v10, %v9868_v37 }
 0xb39   :  { %3889 = vmatpush1.msra.mxu1 %v9862_v54  ;;  %3922 = vmatprep.mubr.f32.mxu1 %v9861_v9  ;;  %v9871_v9 = vld [vmem:[#allocation57_spill] sm:$0xff] }
 0xb3a   :  { %4026 = vmatprep.subr.mxu0 %v9863_v39  ;;  %4097 = vmatprep.subr.mxu1 %v9864_v55  ;;  %v9870_v39 = vld [vmem:[#allocation35_spill] sm:$0xff] }
 0xb3b   :  { %v9872_v55 = vsel %vm5894_vm1, %v9870_v39, %v9871_v9 }
 0xbd9   :  { %v3614_v53 = vpop.f32.mrf.mxu0  ;;  %v3685_v54 = vpop.f32.mrf.mxu1 }
 0xbda   :  { %v3690_v5 = vadd.f32 %v3614_v53, %v9865_v4  ;;  %v3692_v1 = vadd.f32 %v3685_v54, %v9872_v55  ;;  %v9874_v4 = vld [vmem:[#allocation59_spill] sm:$0xff] }
 0xbdb   :  { %v3616_v40 = vpop.f32.mrf.mxu0  ;;  %v3687_v29 = vpop.f32.mrf.mxu1 }
 0xbdc   :  { %v4896_v31 = vmul.f32 -1.442695, %v3690_v5  ;;  %v3691_v41 = vadd.f32 %v3616_v40, %v9869_v61  ;;  %v4898_v53 = vmul.f32 -1.442695, %v3692_v1  ;;  %v9873_v5 = vld [vmem:[#allocation58_spill] sm:$0xff] }
 0xbdd   :  { %v9875_v45 = vsel %vm5903_vm3, %v9873_v5, %v9874_v4 }
 0xbde   :  { %5157 = vpow2.f32 %v4896_v31  ;;  %v4897_v11 = vmul.f32 -1.442695, %v3691_v41  ;;  %v3693_v3 = vadd.f32 %v3687_v29, %v9875_v45 }
 0xbe0   :  { %5159 = vpow2.f32 %v4897_v11 }
 0xbe1   :  { %5161 = vpow2.f32 %v4898_v53  ;;  %v9881_v53 = vld [vmem:[#allocation22_spill] sm:$0xff] }
 0xbe2   :  { %5163 = vtanh.f32 %v3693_v3  ;;  %v9879_v3 = vld [vmem:[#allocation5_spill] sm:$0xff] }
 0xbeb   :  { %v5158_v10 = vpop.eup %5157 }
 0xbec   :  { %v3703_v61 = vadd.f32 1.0, %v5158_v10 }
 0xbed   :  { %v5160_v41 = vpop.eup %5159 }
 0xbee   :  { %5165 = vrcp.f32 %v3703_v61  ;;  %v3704_v11 = vadd.f32 1.0, %v5160_v41  ;;  %v5162_v31 = vpop.eup %5161  ;;  %v9882_v61 = vld [vmem:[#allocation7_spill] sm:$0xff] }
 0xbef   :  { %v5164_v40 = vpop.eup %5163  ;;  %v3705_v1 = vadd.f32 1.0, %v5162_v31  ;;  %v9883_v41 = vld [vmem:[#allocation23_spill] sm:$0xff]  ;;  %v9885_v31 = vld [vmem:[#allocation24_spill] sm:$0xff] }
 0xbf0   :  { %5167 = vrcp.f32 %v3704_v11  ;;  %v9884_v11 = vld [vmem:[#allocation8_spill] sm:$0xff] }
 0xbf1   :  { %5169 = vrcp.f32 %v3705_v1  ;;  %v9889_v1 = vld [vmem:[#allocation52_spill] sm:$0xff] }
 0xbfb   :  { %v5166_v39 = vpop.eup %5165 }
 0xbfc   :  { %v3714_v54 = vmul.f32 %v5166_v39, %v5164_v40  ;;  %v9880_v39 = vld [vmem:[#allocation6_spill] sm:$0xff]  ;;  %v9886_v40 = vld [vmem:[#allocation9_spill] sm:$0xff] }
 0xbfd   :  { %v5168_v55 = vpop.eup %5167 }
 0xbfe   :  { %v3713_v23 = vmul.f32 %v5168_v55, %v8532_v7  ;;  %v5170_v10 = vpop.eup %5169  ;;  %v9877_v7 = vld [vmem:[#allocation37_spill] sm:$0xff]  ;;  %v9888_v55 = vld [vmem:[#allocation51_spill] sm:$0xff] }
 0xc00   :  { %v8622_v9 = vadd.f32 %v3714_v54, %v3713_v23  ;;  %v9878_v23 = vld [vmem:[#allocation48_spill] sm:$0xff]  ;;  %v9887_v54 = vld [vmem:[#allocation25_spill] sm:$0xff] }
 0xc02   :  { %5171 = vtanh.f32 %v8622_v9 }
 0xc0f   :  { %v5172_v45 = vpop.eup %5171 }
 0xc10   :  { %v8625_v29 = vmul.f32 %v5172_v45, %v5170_v10  ;;  %v9890_v10 = vld [vmem:[#allocation55_spill] sm:$0xff] }
 0xc11   :  { %v9891_v45 = vld [vmem:[#allocation47_spill] sm:$0xff] }
 0xc12   :  { %9876 = vst [vmem:[#allocation45_spill] sm:$0xff] %v8625_v29  ;;  %3852 = vmatmul.mubr.f32.vlgmr.msra.gmra.mxu0 %v8625_v29  ;;  %3923 = vmatmul.mubr.f32.vlgmr.msra.gmra.mxu1 %v8625_v29  ;;  %v9892_v29 = vld [vmem:[#allocation53_spill] sm:$0xff] }
 0xc13   :  { %4027 = vmatpush1.msra.mxu0 %v8144_v42  ;;  %4098 = vmatpush1.msra.mxu1 %v8149_v25 }
 0xc14   :  { %4028 = vmatprep.subr.mxu0 %v8156_v38  ;;  %4099 = vmatprep.subr.mxu1 %v8161_v32 }
 0xc15   :  { %4029 = vmatpush1.msra.mxu0 %v8168_v30  ;;  %4100 = vmatpush1.msra.mxu1 %v8173_v44 }
 0xc16   :  { %4030 = vmatprep.subr.mxu0 %v8180_v48  ;;  %4101 = vmatprep.subr.mxu1 %v8185_v34 }
 0xc17   :  { %4031 = vmatpush1.msra.mxu0 %v8192_v2  ;;  %4102 = vmatpush1.msra.mxu1 %v8197_v52 }
 0xc18   :  { %4032 = vmatprep.subr.mxu0 %v8204_v24  ;;  %4103 = vmatprep.subr.mxu1 %v8209_v51 }
 0xc19   :  { %4033 = vmatpush1.msra.mxu0 %v8216_v57  ;;  %4104 = vmatpush1.msra.mxu1 %v8221_v58 }
 0xc1a   :  { %4034 = vmatprep.subr.mxu0 %v8228_v59  ;;  %4105 = vmatprep.subr.mxu1 %v8233_v60 }
 0xc1b   :  { %4035 = vmatpush1.msra.mxu0 %v8240_v62  ;;  %4106 = vmatpush1.msra.mxu1 %v8245_v19 }
 0xc1c   :  { %4036 = vmatprep.subr.mxu0 %v8252_v21  ;;  %4107 = vmatprep.subr.mxu1 %v8257_v50 }
 0xc1d   :  { %4037 = vmatpush1.msra.mxu0 %v8264_v36  ;;  %4108 = vmatpush1.msra.mxu1 %v8269_v14 }
 0xc1e   :  { %4038 = vmatprep.subr.mxu0 %v8276_v13  ;;  %4109 = vmatprep.subr.mxu1 %v8281_v12 }
 0xc1f   :  { %4039 = vmatpush1.msra.mxu0 %v8288_v47  ;;  %4110 = vmatpush1.msra.mxu1 %v8293_v56 }
 0xc20   :  { %4040 = vmatprep.subr.mxu0 %v8300_v33  ;;  %4111 = vmatprep.subr.mxu1 %v8305_v43 }
 0xc21   :  { %4041 = vmatpush1.msra.mxu0 %v8310_v8  ;;  %4112 = vmatpush1.msra.mxu1 %v8317_v46 }
 0xc22   :  { %4042 = vmatprep.subr.mxu0 %v8322_v63  ;;  %4113 = vmatprep.subr.mxu1 %v8327_v27 }
 0xc23   :  { %4043 = vmatpush1.msra.mxu0 %v8334_v6  ;;  %4114 = vmatpush1.msra.mxu1 %v8339_v49 }
 0xc24   :  { %4044 = vmatprep.subr.mxu0 %v8344_v16  ;;  %4115 = vmatprep.subr.mxu1 %v8351_v18 }
 0xc25   :  { %4045 = vmatpush1.msra.mxu0 %v8356_v26  ;;  %4116 = vmatpush1.msra.mxu1 %v8361_v28 }
 0xc26   :  { %4046 = vmatprep.subr.mxu0 %v8368_v17  ;;  %4117 = vmatprep.subr.mxu1 %v8373_v35 }
 0xc27   :  { %4047 = vmatpush1.msra.mxu0 %v8380_v22  ;;  %4118 = vmatpush1.msra.mxu1 %v8385_v20 }
 0xc28   :  { %4048 = vmatprep.subr.mxu0 %v8392_v15  ;;  %4119 = vmatprep.subr.mxu1 %v9877_v7 }
 0xc29   :  { %4049 = vmatpush1.msra.mxu0 %v9878_v23  ;;  %4120 = vmatpush1.msra.mxu1 %v9879_v3 }
 0xc2a   :  { %4050 = vmatprep.subr.mxu0 %v9880_v39  ;;  %4121 = vmatprep.subr.mxu1 %v9881_v53 }
 0xc2b   :  { %4051 = vmatpush1.msra.mxu0 %v9882_v61  ;;  %4122 = vmatpush1.msra.mxu1 %v9883_v41  ;;  %v9893_v61 = vld [vmem:[#allocation21_spill] sm:$0xff] }
 0xc2c   :  { %4052 = vmatprep.subr.mxu0 %v9884_v11  ;;  %4123 = vmatprep.subr.mxu1 %v9885_v31  ;;  %v9894_v41 = vld [vmem:[#allocation49_spill] sm:$0xff]  ;;  %v9895_v11 = vmov 0.0   ;;  %v9896_v31 = vld [vmem:[#allocation46_spill] sm:$0xff] }
 0xc2d   :  { %4053 = vmatpush1.msra.mxu0 %v9886_v40  ;;  %4124 = vmatpush1.msra.mxu1 %v9887_v54  ;;  %v9897_v54 = vld [vmem:[#allocation19_spill] sm:$0xff] }
 0xc2e   :  { %4054 = vmatprep.subr.mxu0 %v9888_v55  ;;  %4125 = vmatprep.subr.mxu1 %v9889_v1  ;;  %v9898_v55 = vld [vmem:[#allocation20_spill] sm:$0xff] }
 0xc2f   :  { %4055 = vmatpush1.msra.mxu0 %v9890_v10  ;;  %4126 = vmatpush1.msra.mxu1 %v9891_v45  ;;  %v9899_v10 = vld [vmem:[#allocation42_spill] sm:$0xff] }
 0xc30   :  { %4056 = vmatprep.subr.mxu0 %v9892_v29  ;;  %4127 = vmatprep.subr.mxu1 %v9893_v61  ;;  %v9901_v61 = vld [vmem:[#allocation36_spill] sm:$0xff] }
 0xc31   :  { %4057 = vmatpush1.msra.mxu0 %v9894_v41  ;;  %4090 = vmatprep.mubr.f32.mxu0 %v9895_v11  ;;  %v9902_v41 = vsel %vm5918_vm4, %v9868_v37, %v9901_v61 }
 0xc32   :  { %4128 = vmatpush1.msra.mxu1 %v9896_v31  ;;  %4161 = vmatprep.mubr.f32.mxu1 %v9895_v11  ;;  %v9904_v11 = vld [vmem:[#allocation35_spill] sm:$0xff] }
 0xc33   :  { %4265 = vmatprep.subr.mxu0 %v9897_v54  ;;  %4336 = vmatprep.subr.mxu1 %v9898_v55  ;;  %v9903_v54 = vld [vmem:[#allocation57_spill] sm:$0xff] }
 0xc34   :  { %v9905_v55 = vsel %vm5894_vm1, %v9903_v54, %v9904_v11 }
 0xcd2   :  { %v3853_v1 = vpop.f32.mrf.mxu0  ;;  %v3924_v31 = vpop.f32.mrf.mxu1 }
 0xcd3   :  { %v3929_v40 = vadd.f32 %v3853_v1, %v9899_v10  ;;  %v3931_v23 = vadd.f32 %v3924_v31, %v9905_v55 }
 0xcd4   :  { %v3855_v45 = vpop.f32.mrf.mxu0  ;;  %v3926_v7 = vpop.f32.mrf.mxu1 }
 0xcd5   :  { %v4899_v53 = vmul.f32 -1.442695, %v3929_v40  ;;  %v3930_v39 = vadd.f32 %v3855_v45, %v9902_v41  ;;  %v4901_v1 = vmul.f32 -1.442695, %v3931_v23  ;;  %v9907_v40 = vsel %vm5903_vm3, %v9874_v4, %v9873_v5 }
 0xcd6   :  { %v3932_v29 = vadd.f32 %v3926_v7, %v9907_v40 }
 0xcd7   :  { %5173 = vpow2.f32 %v4899_v53  ;;  %v4900_v3 = vmul.f32 -1.442695, %v3930_v39 }
 0xcd9   :  { %5175 = vpow2.f32 %v4900_v3 }
 0xcda   :  { %5177 = vpow2.f32 %v4901_v1 }
 0xcdb   :  { %5179 = vtanh.f32 %v3932_v29 }
 0xce4   :  { %v5174_v37 = vpop.eup %5173 }
 0xce5   :  { %v3942_v61 = vadd.f32 1.0, %v5174_v37 }
 0xce6   :  { %v5176_v39 = vpop.eup %5175 }
 0xce7   :  { %5181 = vrcp.f32 %v3942_v61  ;;  %v3943_v3 = vadd.f32 1.0, %v5176_v39  ;;  %v5178_v53 = vpop.eup %5177 }
 0xce8   :  { %v5180_v41 = vpop.eup %5179  ;;  %v3944_v23 = vadd.f32 1.0, %v5178_v53 }
 0xce9   :  { %5183 = vrcp.f32 %v3943_v3 }
 0xcea   :  { %5185 = vrcp.f32 %v3944_v23 }
 0xcf4   :  { %v5182_v11 = vpop.eup %5181 }
 0xcf5   :  { %v3953_v31 = vmul.f32 %v5182_v11, %v5180_v41 }
 0xcf6   :  { %v5184_v45 = vpop.eup %5183 }
 0xcf7   :  { %v3952_v54 = vmul.f32 %v5184_v45, %v8622_v9  ;;  %v5186_v5 = vpop.eup %5185 }
 0xcf9   :  { %v8712_v55 = vadd.f32 %v3953_v31, %v3952_v54  ;;  %v4501_v54 = vld [vmem:[%s9152_s5 + $0x1e8] sm:$0xff] }
 0xcfb   :  { %5187 = vtanh.f32 %v8712_v55 }
 0xd08   :  { %v5188_v4 = vpop.eup %5187 }
 0xd09   :  { %v8715_v7 = vmul.f32 %v5188_v4, %v5186_v5  ;;  %v4500_v5 = vld [vmem:[%s9152_s5 + $0x1e0] sm:$0xff]  ;;  %v4502_v4 = vld [vmem:[%s9152_s5 + $0x1f0] sm:$0xff] }
 0xd0b   :  { %4091 = vmatmul.mubr.f32.vlgmr.msra.gmra.mxu0 %v8715_v7  ;;  %4162 = vmatmul.mubr.f32.vlgmr.msra.gmra.mxu1 %v8715_v7 }
 0xd0c   :  { %4266 = vmatpush1.msra.mxu0 %v8144_v42  ;;  %4337 = vmatpush1.msra.mxu1 %v8149_v25  ;;  %v9908_v42 = vld [vmem:[#allocation37_spill] sm:$0xff]  ;;  %v9909_v25 = vld [vmem:[#allocation48_spill] sm:$0xff] }
 0xd0d   :  { %4267 = vmatprep.subr.mxu0 %v8156_v38  ;;  %4338 = vmatprep.subr.mxu1 %v8161_v32  ;;  %v9910_v38 = vld [vmem:[#allocation5_spill] sm:$0xff]  ;;  %v9911_v32 = vld [vmem:[#allocation6_spill] sm:$0xff] }
 0xd0e   :  { %4268 = vmatpush1.msra.mxu0 %v8168_v30  ;;  %4339 = vmatpush1.msra.mxu1 %v8173_v44  ;;  %v9912_v30 = vld [vmem:[#allocation22_spill] sm:$0xff]  ;;  %v9913_v44 = vld [vmem:[#allocation7_spill] sm:$0xff] }
 0xd0f   :  { %4269 = vmatprep.subr.mxu0 %v8180_v48  ;;  %4340 = vmatprep.subr.mxu1 %v8185_v34  ;;  %v9914_v48 = vld [vmem:[#allocation23_spill] sm:$0xff]  ;;  %v9915_v34 = vld [vmem:[#allocation8_spill] sm:$0xff] }
 0xd10   :  { %4270 = vmatpush1.msra.mxu0 %v8192_v2  ;;  %4341 = vmatpush1.msra.mxu1 %v8197_v52  ;;  %v9916_v2 = vld [vmem:[#allocation24_spill] sm:$0xff]  ;;  %v9917_v52 = vld [vmem:[#allocation9_spill] sm:$0xff] }
 0xd11   :  { %4271 = vmatprep.subr.mxu0 %v8204_v24  ;;  %4342 = vmatprep.subr.mxu1 %v8209_v51  ;;  %v9918_v24 = vld [vmem:[#allocation25_spill] sm:$0xff]  ;;  %v9919_v51 = vld [vmem:[#allocation51_spill] sm:$0xff] }
 0xd12   :  { %4272 = vmatpush1.msra.mxu0 %v8216_v57  ;;  %4343 = vmatpush1.msra.mxu1 %v8221_v58  ;;  %v9920_v57 = vld [vmem:[#allocation52_spill] sm:$0xff]  ;;  %v9921_v58 = vld [vmem:[#allocation55_spill] sm:$0xff] }
 0xd13   :  { %4273 = vmatprep.subr.mxu0 %v8228_v59  ;;  %4344 = vmatprep.subr.mxu1 %v8233_v60  ;;  %v9922_v59 = vld [vmem:[#allocation47_spill] sm:$0xff]  ;;  %v9923_v60 = vld [vmem:[#allocation53_spill] sm:$0xff] }
 0xd14   :  { %4274 = vmatpush1.msra.mxu0 %v8240_v62  ;;  %4345 = vmatpush1.msra.mxu1 %v8245_v19  ;;  %v9924_v62 = vld [vmem:[#allocation21_spill] sm:$0xff] }
 0xd15   :  { %4275 = vmatprep.subr.mxu0 %v8252_v21  ;;  %4346 = vmatprep.subr.mxu1 %v8257_v50  ;;  %v9925_v19 = vld [vmem:[#allocation49_spill] sm:$0xff]  ;;  %v9926_v21 = vmov 0.0   ;;  %v9927_v50 = vld [vmem:[#allocation46_spill] sm:$0xff] }
 0xd16   :  { %4276 = vmatpush1.msra.mxu0 %v8264_v36  ;;  %4347 = vmatpush1.msra.mxu1 %v8269_v14  ;;  %v9928_v14 = vld [vmem:[#allocation61_spill] sm:$0xff] }
 0xd17   :  { %4277 = vmatprep.subr.mxu0 %v8276_v13  ;;  %4348 = vmatprep.subr.mxu1 %v8281_v12 }
 0xd18   :  { %4278 = vmatpush1.msra.mxu0 %v8288_v47  ;;  %4349 = vmatpush1.msra.mxu1 %v8293_v56  ;;  %v9957_v56 = vld [vmem:[#allocation70_spill] sm:$0xff] }
 0xd19   :  { %4279 = vmatprep.subr.mxu0 %v8300_v33  ;;  %4350 = vmatprep.subr.mxu1 %v8305_v43  ;;  %v9930_v33 = vld [vmem:[#allocation62_spill] sm:$0xff] }
 0xd1a   :  { %4280 = vmatpush1.msra.mxu0 %v8310_v8  ;;  %4351 = vmatpush1.msra.mxu1 %v8317_v46  ;;  %v9931_v43 = vld [vmem:[#allocation34_spill] sm:$0xff] }
 0xd1b   :  { %4281 = vmatprep.subr.mxu0 %v8322_v63  ;;  %4352 = vmatprep.subr.mxu1 %v8327_v27  ;;  %v9932_v8 = vsel %vm5918_vm4, %v9930_v33, %v9931_v43  ;;  %v4475_v33 = vld [vmem:[%s9152_s5 + $0x118] sm:$0xff]  ;;  %v4472_v43 = vld [vmem:[%s9152_s5 + $0x100] sm:$0xff] }
 0xd1c   :  { %4282 = vmatpush1.msra.mxu0 %v8334_v6  ;;  %4353 = vmatpush1.msra.mxu1 %v8339_v49  ;;  %v9933_v6 = vld [vmem:[#allocation44_spill] sm:$0xff]  ;;  %v9934_v49 = vld [vmem:[#allocation17_spill] sm:$0xff] }
 0xd1d   :  { %4283 = vmatprep.subr.mxu0 %v8344_v16  ;;  %4354 = vmatprep.subr.mxu1 %v8351_v18  ;;  %v9935_v16 = vsel %vm5894_vm1, %v9933_v6, %v9934_v49  ;;  %v4470_v6 = vld [vmem:[%s9152_s5 + $0xf0] sm:$0xff]  ;;  %v4465_v49 = vld [vmem:[%s9152_s5 + $0xc8] sm:$0xff] }
 0xd1e   :  { %4284 = vmatpush1.msra.mxu0 %v8356_v26  ;;  %4355 = vmatpush1.msra.mxu1 %v8361_v28 }
 0xd1f   :  { %4285 = vmatprep.subr.mxu0 %v8368_v17  ;;  %4356 = vmatprep.subr.mxu1 %v8373_v35  ;;  %v9936_v17 = vld [vmem:[#allocation40_spill] sm:$0xff]  ;;  %v9937_v35 = vld [vmem:[#allocation18_spill] sm:$0xff] }
 0xd20   :  { %4286 = vmatpush1.msra.mxu0 %v8380_v22  ;;  %4357 = vmatpush1.msra.mxu1 %v8385_v20  ;;  %v9938_v22 = vsel %vm5903_vm3, %v9936_v17, %v9937_v35  ;;  %v4463_v17 = vld [vmem:[%s9152_s5 + $0xb8] sm:$0xff]  ;;  %v4460_v35 = vld [vmem:[%s9152_s5 + $0xa0] sm:$0xff] }
 0xd21   :  { %4287 = vmatprep.subr.mxu0 %v8392_v15  ;;  %4358 = vmatprep.subr.mxu1 %v9908_v42  ;;  %v4497_v42 = vld [vmem:[%s9152_s5 + $0x1c8] sm:$0xff] }
 0xd22   :  { %4288 = vmatpush1.msra.mxu0 %v9909_v25  ;;  %4359 = vmatpush1.msra.mxu1 %v9910_v38  ;;  %v4499_v25 = vld [vmem:[%s9152_s5 + $0x1d8] sm:$0xff]  ;;  %v4496_v38 = vld [vmem:[%s9152_s5 + $0x1c0] sm:$0xff] }
 0xd23   :  { %4289 = vmatprep.subr.mxu0 %v9911_v32  ;;  %4360 = vmatprep.subr.mxu1 %v9912_v30  ;;  %v4498_v32 = vld [vmem:[%s9152_s5 + $0x1d0] sm:$0xff]  ;;  %v4493_v30 = vld [vmem:[%s9152_s5 + $0x1a8] sm:$0xff] }
 0xd24   :  { %4290 = vmatpush1.msra.mxu0 %v9913_v44  ;;  %4361 = vmatpush1.msra.mxu1 %v9914_v48  ;;  %v4495_v44 = vld [vmem:[%s9152_s5 + $0x1b8] sm:$0xff]  ;;  %v4492_v48 = vld [vmem:[%s9152_s5 + $0x1a0] sm:$0xff] }
 0xd25   :  { %4291 = vmatprep.subr.mxu0 %v9915_v34  ;;  %4362 = vmatprep.subr.mxu1 %v9916_v2  ;;  %v4494_v34 = vld [vmem:[%s9152_s5 + $0x1b0] sm:$0xff]  ;;  %v4489_v2 = vld [vmem:[%s9152_s5 + $0x188] sm:$0xff] }
 0xd26   :  { %4292 = vmatpush1.msra.mxu0 %v9917_v52  ;;  %4363 = vmatpush1.msra.mxu1 %v9918_v24  ;;  %v4491_v52 = vld [vmem:[%s9152_s5 + $0x198] sm:$0xff]  ;;  %v4488_v24 = vld [vmem:[%s9152_s5 + $0x180] sm:$0xff] }
 0xd27   :  { %4293 = vmatprep.subr.mxu0 %v9919_v51  ;;  %4364 = vmatprep.subr.mxu1 %v9920_v57  ;;  %v4490_v51 = vld [vmem:[%s9152_s5 + $0x190] sm:$0xff]  ;;  %v4485_v57 = vld [vmem:[%s9152_s5 + $0x168] sm:$0xff] }
 0xd28   :  { %4294 = vmatpush1.msra.mxu0 %v9921_v58  ;;  %4365 = vmatpush1.msra.mxu1 %v9922_v59  ;;  %v4487_v58 = vld [vmem:[%s9152_s5 + $0x178] sm:$0xff]  ;;  %v4484_v59 = vld [vmem:[%s9152_s5 + $0x160] sm:$0xff] }
 0xd29   :  { %4295 = vmatprep.subr.mxu0 %v9923_v60  ;;  %4366 = vmatprep.subr.mxu1 %v9924_v62  ;;  %v4486_v60 = vld [vmem:[%s9152_s5 + $0x170] sm:$0xff]  ;;  %v4481_v62 = vld [vmem:[%s9152_s5 + $0x148] sm:$0xff] }
 0xd2a   :  { %4296 = vmatpush1.msra.mxu0 %v9925_v19  ;;  %4329 = vmatprep.mubr.f32.mxu0 %v9926_v21  ;;  %v4483_v19 = vld [vmem:[%s9152_s5 + $0x158] sm:$0xff] }
 0xd2b   :  { %4367 = vmatpush1.msra.mxu1 %v9927_v50  ;;  %4400 = vmatprep.mubr.f32.mxu1 %v9926_v21  ;;  %v4482_v50 = vld [vmem:[%s9152_s5 + $0x150] sm:$0xff] }
 0xd2c   :  { %4504 = vmatprep.subr.mxu0 %v4501_v54  ;;  %v4444_v54 = vld [vmem:[%s9152_s5 + $0x20] sm:$0xff] }
 0xdcb   :  { %v4092_v36 = vpop.f32.mrf.mxu0  ;;  %v4163_v27 = vpop.f32.mrf.mxu1 }
 0xdcc   :  { %v4168_v13 = vadd.f32 %v4092_v36, %v9928_v14  ;;  %v4170_v18 = vadd.f32 %v4163_v27, %v9935_v16  ;;  %v4477_v36 = vld [vmem:[%s9152_s5 + $0x128] sm:$0xff]  ;;  %v4479_v14 = vld [vmem:[%s9152_s5 + $0x138] sm:$0xff]  ;;  %v4468_v27 = vld [vmem:[%s9152_s5 + $0xe0] sm:$0xff] }
 0xdcd   :  { %v4094_v12 = vpop.f32.mrf.mxu0  ;;  %v4165_v26 = vpop.f32.mrf.mxu1  ;;  %v4467_v16 = vld [vmem:[%s9152_s5 + $0xd8] sm:$0xff] }
 0xdce   :  { %v4902_v47 = vmul.f32 -1.442695, %v4168_v13  ;;  %v4169_v46 = vadd.f32 %v4094_v12, %v9932_v8  ;;  %v4904_v28 = vmul.f32 -1.442695, %v4170_v18  ;;  %v4171_v20 = vadd.f32 %v4165_v26, %v9938_v22  ;;  %v4476_v13 = vld [vmem:[%s9152_s5 + $0x120] sm:$0xff]  ;;  %v4478_v12 = vld [vmem:[%s9152_s5 + $0x130] sm:$0xff] }
 0xdcf   :  { %v4474_v8 = vld [vmem:[%s9152_s5 + $0x110] sm:$0xff]  ;;  %v4464_v18 = vld [vmem:[%s9152_s5 + $0xc0] sm:$0xff] }
 0xdd0   :  { %5189 = vpow2.f32 %v4902_v47  ;;  %v4903_v63 = vmul.f32 -1.442695, %v4169_v46  ;;  %v4473_v47 = vld [vmem:[%s9152_s5 + $0x108] sm:$0xff]  ;;  %v4466_v26 = vld [vmem:[%s9152_s5 + $0xd0] sm:$0xff] }
 0xdd1   :  { %v4469_v46 = vld [vmem:[%s9152_s5 + $0xe8] sm:$0xff]  ;;  %v4462_v22 = vld [vmem:[%s9152_s5 + $0xb0] sm:$0xff] }
 0xdd2   :  { %5191 = vpow2.f32 %v4903_v63  ;;  %v4471_v63 = vld [vmem:[%s9152_s5 + $0xf8] sm:$0xff] }
 0xdd3   :  { %5193 = vpow2.f32 %v4904_v28  ;;  %v4461_v28 = vld [vmem:[%s9152_s5 + $0xa8] sm:$0xff] }
 0xdd4   :  { %5195 = vtanh.f32 %v4171_v20  ;;  %v4457_v20 = vld [vmem:[%s9152_s5 + $0x88] sm:$0xff] }
 0xddd   :  { %v5190_v15 = vpop.eup %5189 }
 0xdde   :  { %v4181_v9 = vadd.f32 1.0, %v5190_v15  ;;  %v4459_v15 = vld [vmem:[%s9152_s5 + $0x98] sm:$0xff] }
 0xddf   :  { %v5192_v29 = vpop.eup %5191 }
 0xde0   :  { %5197 = vrcp.f32 %v4181_v9  ;;  %v4182_v1 = vadd.f32 1.0, %v5192_v29  ;;  %v5194_v40 = vpop.eup %5193  ;;  %v4456_v9 = vld [vmem:[%s9152_s5 + $0x80] sm:$0xff]  ;;  %v4458_v29 = vld [vmem:[%s9152_s5 + $0x90] sm:$0xff] }
 0xde1   :  { %v5196_v37 = vpop.eup %5195  ;;  %v4183_v53 = vadd.f32 1.0, %v5194_v40  ;;  %v4455_v40 = vld [vmem:[%s9152_s5 + $0x78] sm:$0xff] }
 0xde2   :  { %5199 = vrcp.f32 %v4182_v1  ;;  %v4453_v1 = vld [vmem:[%s9152_s5 + $0x68] sm:$0xff] }
 0xde3   :  { %5201 = vrcp.f32 %v4183_v53  ;;  %v4448_v53 = vld [vmem:[%s9152_s5 + $0x40] sm:$0xff] }
 0xded   :  { %v5198_v61 = vpop.eup %5197 }
 0xdee   :  { %v4192_v39 = vmul.f32 %v5198_v61, %v5196_v37  ;;  %v4452_v37 = vld [vmem:[%s9152_s5 + $0x60] sm:$0xff]  ;;  %v4454_v61 = vld [vmem:[%s9152_s5 + $0x70] sm:$0xff] }
 0xdef   :  { %v5200_v3 = vpop.eup %5199 }
 0xdf0   :  { %v4191_v41 = vmul.f32 %v5200_v3, %v8712_v55  ;;  %v5202_v31 = vpop.eup %5201  ;;  %v4503_v55 = vld [vmem:[%s9152_s5 + $0x1f8] sm:$0xff] }
 0xdf1   :  { %4575 = vmatprep.subr.mxu1 %v4503_v55  ;;  %v4451_v3 = vld [vmem:[%s9152_s5 + $0x58] sm:$0xff]  ;;  %v4446_v55 = vld [vmem:[%s9152_s5 + $0x30] sm:$0xff] }
 0xdf2   :  { %v8800_v11 = vadd.f32 %v4192_v39, %v4191_v41  ;;  %v4449_v39 = vld [vmem:[%s9152_s5 + $0x48] sm:$0xff]  ;;  %v4450_v41 = vld [vmem:[%s9152_s5 + $0x50] sm:$0xff] }
 0xdf4   :  { %5203 = vtanh.f32 %v8800_v11 }
 0xe01   :  { %v5204_v45 = vpop.eup %5203 }
 0xe02   :  { %v8803_v23 = vmul.f32 %v5204_v45, %v5202_v31  ;;  %v4445_v31 = vld [vmem:[%s9152_s5 + $0x28] sm:$0xff]  ;;  %v4447_v45 = vld [vmem:[%s9152_s5 + $0x38] sm:$0xff] }
 0xe04   :  { %4330 = vmatmul.mubr.f32.vlgmr.msra.gmra.mxu0 %v8803_v23  ;;  %4401 = vmatmul.mubr.f32.vlgmr.msra.gmra.mxu1 %v8803_v23 }
 0xe05   :  { %4568 = vmatprep.mubr.f32.mxu0 %v9926_v21  ;;  %4639 = vmatprep.mubr.f32.mxu1 %v9926_v21  ;;  %v4480_v21 = vld [vmem:[%s9152_s5 + $0x140] sm:$0xff] }
 0xe06   :  { %4505 = vmatpush1.msra.mxu0 %v4500_v5  ;;  %4576 = vmatpush1.msra.mxu1 %v4502_v4  ;;  %v4441_v5 = vld [vmem:[%s9152_s5 + $0x8] sm:$0xff]  ;;  %v4443_v4 = vld [vmem:[%s9152_s5 + $0x18] sm:$0xff] }
 0xe07   :  { %4506 = vmatprep.subr.mxu0 %v4497_v42  ;;  %4577 = vmatprep.subr.mxu1 %v4499_v25  ;;  %v4440_v42 = vld [vmem:[%s9152_s5] sm:$0xff]  ;;  %v4442_v25 = vld [vmem:[%s9152_s5 + $0x10] sm:$0xff] }
 0xe08   :  { %4507 = vmatpush1.msra.mxu0 %v4496_v38  ;;  %4578 = vmatpush1.msra.mxu1 %v4498_v32  ;;  %v9939_v32 = vld [vmem:[#allocation63_spill] sm:$0xff] }
 0xe09   :  { %4508 = vmatprep.subr.mxu0 %v4493_v30  ;;  %4579 = vmatprep.subr.mxu1 %v4495_v44 }
 0xe0a   :  { %4509 = vmatpush1.msra.mxu0 %v4492_v48  ;;  %4580 = vmatpush1.msra.mxu1 %v4494_v34  ;;  %v9940_v34 = vld [vmem:[#allocation39_spill] sm:$0xff] }
 0xe0b   :  { %4510 = vmatprep.subr.mxu0 %v4489_v2  ;;  %4581 = vmatprep.subr.mxu1 %v4491_v52  ;;  %v9941_v2 = vld [vmem:[#allocation16_spill] sm:$0xff] }
 0xe0c   :  { %4511 = vmatpush1.msra.mxu0 %v4488_v24  ;;  %4582 = vmatpush1.msra.mxu1 %v4490_v51  ;;  %v9942_v52 = vsel %vm5918_vm4, %v9940_v34, %v9941_v2  ;;  %v9954_v34 = vld [vmem:[#allocation68_spill] sm:$0xff] }
 0xe0d   :  { %4512 = vmatprep.subr.mxu0 %v4485_v57  ;;  %4583 = vmatprep.subr.mxu1 %v4487_v58  ;;  %v9943_v58 = vld [vmem:[#allocation60_spill] sm:$0xff] }
 0xe0e   :  { %4513 = vmatpush1.msra.mxu0 %v4484_v59  ;;  %4584 = vmatpush1.msra.mxu1 %v4486_v60  ;;  %v9944_v59 = vld [vmem:[#allocation32_spill] sm:$0xff] }
 0xe0f   :  { %4514 = vmatprep.subr.mxu0 %v4481_v62  ;;  %4585 = vmatprep.subr.mxu1 %v4483_v19  ;;  %v9945_v60 = vsel %vm5894_vm1, %v9943_v58, %v9944_v59 }
 0xe10   :  { %4515 = vmatpush1.msra.mxu0 %v4480_v21  ;;  %4586 = vmatpush1.msra.mxu1 %v4482_v50  ;;  %v9946_v50 = vld [vmem:[#allocation41_spill] sm:$0xff] }
 0xe11   :  { %4516 = vmatprep.subr.mxu0 %v4477_v36  ;;  %4587 = vmatprep.subr.mxu1 %v4479_v14  ;;  %v9947_v36 = vld [vmem:[#allocation33_spill] sm:$0xff] }
 0xe12   :  { %4517 = vmatpush1.msra.mxu0 %v4476_v13  ;;  %4588 = vmatpush1.msra.mxu1 %v4478_v12  ;;  %v9948_v14 = vsel %vm5903_vm3, %v9946_v50, %v9947_v36 }
 0xe13   :  { %4518 = vmatprep.subr.mxu0 %v4473_v47  ;;  %4589 = vmatprep.subr.mxu1 %v4475_v33 }
 0xe14   :  { %4519 = vmatpush1.msra.mxu0 %v4472_v43  ;;  %4590 = vmatpush1.msra.mxu1 %v4474_v8 }
 0xe15   :  { %4520 = vmatprep.subr.mxu0 %v4469_v46  ;;  %4591 = vmatprep.subr.mxu1 %v4471_v63 }
 0xe16   :  { %4521 = vmatpush1.msra.mxu0 %v4468_v27  ;;  %4592 = vmatpush1.msra.mxu1 %v4470_v6 }
 0xe17   :  { %4522 = vmatprep.subr.mxu0 %v4465_v49  ;;  %4593 = vmatprep.subr.mxu1 %v4467_v16 }
 0xe18   :  { %4523 = vmatpush1.msra.mxu0 %v4464_v18  ;;  %4594 = vmatpush1.msra.mxu1 %v4466_v26 }
 0xe19   :  { %4524 = vmatprep.subr.mxu0 %v4461_v28  ;;  %4595 = vmatprep.subr.mxu1 %v4463_v17 }
 0xe1a   :  { %4525 = vmatpush1.msra.mxu0 %v4460_v35  ;;  %4596 = vmatpush1.msra.mxu1 %v4462_v22  ;;  %v4722_v35 = vld [vmem:[%s9154_s7 + $0x78] sm:$0xff]  ;;  %v4720_v22 = vld [vmem:[%s9154_s7 + $0x68] sm:$0xff] }
 0xe1b   :  { %4526 = vmatprep.subr.mxu0 %v4457_v20  ;;  %4597 = vmatprep.subr.mxu1 %v4459_v15  ;;  %v4719_v20 = vld [vmem:[%s9154_s7 + $0x60] sm:$0xff]  ;;  %v4718_v15 = vld [vmem:[%s9154_s7 + $0x58] sm:$0xff] }
 0xe1c   :  { %4527 = vmatpush1.msra.mxu0 %v4456_v9  ;;  %4598 = vmatpush1.msra.mxu1 %v4458_v29  ;;  %v4717_v9 = vld [vmem:[%s9154_s7 + $0x50] sm:$0xff]  ;;  %v4716_v29 = vld [vmem:[%s9154_s7 + $0x48] sm:$0xff] }
 0xe1d   :  { %4528 = vmatprep.subr.mxu0 %v4453_v1  ;;  %4599 = vmatprep.subr.mxu1 %v4455_v40  ;;  %v4715_v1 = vld [vmem:[%s9154_s7 + $0x40] sm:$0xff]  ;;  %v4714_v40 = vld [vmem:[%s9154_s7 + $0x38] sm:$0xff] }
 0xe1e   :  { %4529 = vmatpush1.msra.mxu0 %v4452_v37  ;;  %4600 = vmatpush1.msra.mxu1 %v4454_v61  ;;  %v4713_v37 = vld [vmem:[%s9154_s7 + $0x30] sm:$0xff]  ;;  %v4712_v61 = vld [vmem:[%s9154_s7 + $0x28] sm:$0xff] }
 0xe1f   :  { %4530 = vmatprep.subr.mxu0 %v4449_v39  ;;  %4601 = vmatprep.subr.mxu1 %v4451_v3  ;;  %v4711_v39 = vld [vmem:[%s9154_s7 + $0x20] sm:$0xff]  ;;  %v4710_v3 = vld [vmem:[%s9154_s7 + $0x18] sm:$0xff] }
 0xe20   :  { %4531 = vmatpush1.msra.mxu0 %v4448_v53  ;;  %4602 = vmatpush1.msra.mxu1 %v4450_v41  ;;  %v4709_v53 = vld [vmem:[%s9154_s7 + $0x10] sm:$0xff]  ;;  %v4708_v41 = vld [vmem:[%s9154_s7 + $0x8] sm:$0xff] }
 0xe21   :  { %4532 = vmatprep.subr.mxu0 %v4445_v31  ;;  %4603 = vmatprep.subr.mxu1 %v4447_v45  ;;  %v4707_v31 = vld [vmem:[%s9154_s7] sm:$0xff] }
 0xe22   :  { %4533 = vmatpush1.msra.mxu0 %v4444_v54  ;;  %4604 = vmatpush1.msra.mxu1 %v4446_v55  ;;  %v9949_v54 = vld [vmem:[#allocation64_spill] sm:$0xff] }
 0xe23   :  { %4534 = vmatprep.subr.mxu0 %v4441_v5  ;;  %4605 = vmatprep.subr.mxu1 %v4443_v4 }
 0xe24   :  { %4535 = vmatpush1.msra.mxu0 %v4440_v42  ;;  %4606 = vmatpush1.msra.mxu1 %v4442_v25  ;;  %v9950_v42 = vld [vmem:[#allocation65_spill] sm:$0xff]  ;;  %v9951_v25 = vld [vmem:[#allocation66_spill] sm:$0xff] }
 0xe25   :  { %4936 = vmatprep.subr.mxu0 %v4722_v35 }
 0xec4   :  { %v4331_v38 = vpop.f32.mrf.mxu0  ;;  %v4402_v57 = vpop.f32.mrf.mxu1 }
 0xec5   :  { %v4407_v30 = vadd.f32 %v4331_v38, %v9939_v32  ;;  %v4409_v62 = vadd.f32 %v4402_v57, %v9945_v60  ;;  %v9952_v38 = vsel %vm5918_vm4, %v9950_v42, %v9951_v25  ;;  %v9956_v57 = vld [vmem:[#allocation69_spill] sm:$0xff] }
 0xec6   :  { %v4333_v44 = vpop.f32.mrf.mxu0  ;;  %v4404_v19 = vpop.f32.mrf.mxu1  ;;  %v9958_v58 = vsel %vm5903_vm3, %v9956_v57, %v9957_v56 }
 0xec7   :  { %v4905_v48 = vmul.f32 -1.442695, %v4407_v30  ;;  %v4408_v24 = vadd.f32 %v4333_v44, %v9942_v52  ;;  %v4907_v21 = vmul.f32 -1.442695, %v4409_v62  ;;  %v4410_v13 = vadd.f32 %v4404_v19, %v9948_v14 }
 0xec9   :  { %5205 = vpow2.f32 %v4905_v48  ;;  %v4906_v51 = vmul.f32 -1.442695, %v4408_v24  ;;  %v9953_v48 = vld [vmem:[#allocation67_spill] sm:$0xff] }
 0xeca   :  { %v9955_v2 = vsel %vm5894_vm1, %v9953_v48, %v9954_v34 }
 0xecb   :  { %5207 = vpow2.f32 %v4906_v51 }
 0xecc   :  { %5209 = vpow2.f32 %v4907_v21 }
 0xecd   :  { %5211 = vtanh.f32 %v4410_v13 }
 0xed6   :  { %v5206_v12 = vpop.eup %5205 }
 0xed7   :  { %v4420_v47 = vadd.f32 1.0, %v5206_v12 }
 0xed8   :  { %v5208_v33 = vpop.eup %5207 }
 0xed9   :  { %5213 = vrcp.f32 %v4420_v47  ;;  %v4421_v43 = vadd.f32 1.0, %v5208_v33  ;;  %v5210_v8 = vpop.eup %5209 }
 0xeda   :  { %v5212_v46 = vpop.eup %5211  ;;  %v4422_v49 = vadd.f32 1.0, %v5210_v8 }
 0xedb   :  { %5215 = vrcp.f32 %v4421_v43 }
 0xedc   :  { %5217 = vrcp.f32 %v4422_v49 }
 0xee6   :  { %v5214_v63 = vpop.eup %5213 }
 0xee7   :  { %v4431_v27 = vmul.f32 %v5214_v63, %v5212_v46  ;;  %v9959_v46 = vld [vmem:[#allocation71_spill] sm:$0xff] }
 0xee8   :  { %v5216_v6 = vpop.eup %5215 }
 0xee9   :  { %v4430_v16 = vmul.f32 %v5216_v6, %v8800_v11  ;;  %v5218_v26 = vpop.eup %5217  ;;  %v4721_v11 = vld [vmem:[%s9154_s7 + $0x70] sm:$0xff]  ;;  %v9961_v6 = vld [vmem:[#allocation4_spill] sm:$0xff] }
 0xeeb   :  { %v9018_v18 = vadd.f32 %v4431_v27, %v4430_v16  ;;  %v9962_v16 = vld [vmem:[#allocation26_spill] sm:$0xff] }
 0xeed   :  { %5219 = vtanh.f32 %v9018_v18 }
 0xefa   :  { %v5220_v28 = vpop.eup %5219 }
 0xefb   :  { %v9021_v17 = vmul.f32 %v5220_v28, %v5218_v26  ;;  %v9963_v26 = vld [vmem:[#allocation45_spill] sm:$0xff] }
 0xefc   :  { %v4695_v28 = vsel %vm85_vm2, %v9963_v26, %v8715_v7 }
 0xefd   :  { %4569 = vmatmul.mubr.f32.vlgmr.msra.gmra.mxu0 %v9021_v17  ;;  %4640 = vmatmul.mubr.f32.vlgmr.msra.gmra.mxu1 %v9021_v17  ;;  %v4683_v49 = vsel %vm85_vm2, %v9961_v6, %v9021_v17 }
 0xefe   :  { %4937 = vmatpush3.msra.mxu0 %v4722_v35  ;;  %v4697_v35 = vsel %vm85_vm2, %v8715_v7, %v9963_v26  ;;  %v4911_v7 = vld [vmem:[%s9155_s8] ss:$0 sm:$0xff] }
 0xeff   :  { %4938 = vmatprep.subr.mxu0 %v4721_v11 }
 0xf00   :  { %4939 = vmatpush3.msra.mxu0 %v4721_v11  ;;  %v4691_v11 = vsel %vm85_vm2, %v8803_v23, %v9962_v16 }
 0xf01   :  { %4940 = vmatprep.subr.mxu0 %v4720_v22 }
 0xf02   :  { %4941 = vmatpush3.msra.mxu0 %v4720_v22  ;;  %v4685_v22 = vsel %vm85_vm2, %v9021_v17, %v9961_v6 }
 0xf03   :  { %4942 = vmatprep.subr.mxu0 %v4719_v20 }
 0xf04   :  { %4943 = vmatpush3.msra.mxu0 %v4719_v20 }
 0xf05   :  { %4944 = vmatprep.subr.mxu0 %v4718_v15 }
 0xf06   :  { %4945 = vmatpush3.msra.mxu0 %v4718_v15 }
 0xf07   :  { %4946 = vmatprep.subr.mxu0 %v4717_v9 }
 0xf08   :  { %4947 = vmatpush3.msra.mxu0 %v4717_v9 }
 0xf09   :  { %4948 = vmatprep.subr.mxu0 %v4716_v29 }
 0xf0a   :  { %4949 = vmatpush3.msra.mxu0 %v4716_v29 }
 0xf0b   :  { %4950 = vmatprep.subr.mxu0 %v4715_v1 }
 0xf0c   :  { %4951 = vmatpush3.msra.mxu0 %v4715_v1 }
 0xf0d   :  { %4952 = vmatprep.subr.mxu0 %v4714_v40 }
 0xf0e   :  { %4953 = vmatpush3.msra.mxu0 %v4714_v40 }
 0xf0f   :  { %4954 = vmatprep.subr.mxu0 %v4713_v37 }
 0xf10   :  { %4955 = vmatpush3.msra.mxu0 %v4713_v37 }
 0xf11   :  { %4956 = vmatprep.subr.mxu0 %v4712_v61 }
 0xf12   :  { %4957 = vmatpush3.msra.mxu0 %v4712_v61 }
 0xf13   :  { %4958 = vmatprep.subr.mxu0 %v4711_v39 }
 0xf14   :  { %4959 = vmatpush3.msra.mxu0 %v4711_v39 }
 0xf15   :  { %4960 = vmatprep.subr.mxu0 %v4710_v3 }
 0xf16   :  { %4961 = vmatpush3.msra.mxu0 %v4710_v3 }
 0xf17   :  { %4962 = vmatprep.subr.mxu0 %v4709_v53 }
 0xf18   :  { %4963 = vmatpush3.msra.mxu0 %v4709_v53 }
 0xf19   :  { %4964 = vmatprep.subr.mxu0 %v4708_v41 }
 0xf1a   :  { %4965 = vmatpush3.msra.mxu0 %v4708_v41 }
 0xf1b   :  { %4966 = vmatprep.subr.mxu0 %v4707_v31 }
 0xf1c   :  { %4967 = vmatpush3.msra.mxu0 %v4707_v31 }
 0xfbd   :  { %v4570_v45 = vpop.f32.mrf.mxu0  ;;  %v4641_v44 = vpop.f32.mrf.mxu1 }
 0xfbe   :  { %v4646_v55 = vadd.f32 %v4570_v45, %v9949_v54  ;;  %v4648_v52 = vadd.f32 %v4641_v44, %v9955_v2 }
 0xfbf   :  { %v4572_v5 = vpop.f32.mrf.mxu0  ;;  %v4643_v24 = vpop.f32.mrf.mxu1 }
 0xfc0   :  { %v4908_v4 = vmul.f32 -1.442695, %v4646_v55  ;;  %v4647_v32 = vadd.f32 %v4572_v5, %v9952_v38  ;;  %v4910_v51 = vmul.f32 -1.442695, %v4648_v52  ;;  %v4649_v59 = vadd.f32 %v4643_v24, %v9958_v58 }
 0xfc2   :  { %5221 = vpow2.f32 %v4908_v4  ;;  %v4909_v30 = vmul.f32 -1.442695, %v4647_v32 }
 0xfc4   :  { %5223 = vpow2.f32 %v4909_v30 }
 0xfc5   :  { %5225 = vpow2.f32 %v4910_v51 }
 0xfc6   :  { %5227 = vtanh.f32 %v4649_v59 }
 0xfcf   :  { %v5222_v60 = vpop.eup %5221 }
 0xfd0   :  { %v4659_v62 = vadd.f32 1.0, %v5222_v60 }
 0xfd1   :  { %v5224_v19 = vpop.eup %5223 }
 0xfd2   :  { %5229 = vrcp.f32 %v4659_v62  ;;  %v4660_v21 = vadd.f32 1.0, %v5224_v19  ;;  %v5226_v0 = vpop.eup %5225 }
 0xfd3   :  { %v5228_v50 = vpop.eup %5227  ;;  %v4661_v12 = vadd.f32 1.0, %v5226_v0 }
 0xfd4   :  { %5231 = vrcp.f32 %v4660_v21 }
 0xfd5   :  { %5233 = vrcp.f32 %v4661_v12 }
 0xfdf   :  { %v5230_v36 = vpop.eup %5229 }
 0xfe0   :  { %v4670_v14 = vmul.f32 %v5230_v36, %v5228_v50 }
 0xfe1   :  { %v5232_v13 = vpop.eup %5231 }
 0xfe2   :  { %v4669_v10 = vmul.f32 %v5232_v13, %v9018_v18  ;;  %v5234_v33 = vpop.eup %5233  ;;  %v4689_v18 = vsel %vm85_vm2, %v9962_v16, %v8803_v23 }
 0xfe4   :  { %v4671_v47 = vadd.f32 %v4670_v14, %v4669_v10 }
 0xfe6   :  { %5235 = vtanh.f32 %v4671_v47 }
 0xff3   :  { %v5236_v43 = vpop.eup %5235 }
 0xff4   :  { %v4673_v8 = vmul.f32 %v5236_v43, %v5234_v33 }
 0xff6   :  { %v4677_v27 = vsel %vm85_vm2, %v9959_v46, %v4673_v8  ;;  %v4679_v20 = vsel %vm85_vm2, %v4673_v8, %v9959_v46 }
 0xff7   :  { %4968 = vmatprep.mubr.f32.mxu0 %v4677_v27 }
 0xff8   :  { %4969 = vmatmul.mubr.f32.vlgmr.msra.gmra.mxu0 %v4683_v49 }
 0xff9   :  { %4971 = vmatprep.mubr.f32.mxu0 %v4689_v18 }
 0xffc   :  { %4972 = vmatmul.mubr.f32.gmra.mxu0 %v4695_v28 }
 0xffd   :  { %4974 = vmatprep.mubr.f32.mxu0 %v4697_v35 }
0x1000   :  { %4975 = vmatmul.mubr.f32.gmra.mxu0 %v4691_v11 }
0x1001   :  { %4977 = vmatprep.mubr.f32.mxu0 %v4685_v22 }
0x1004   :  { %4978 = vmatmul.mubr.f32.gmra.mxu0 %v4679_v20 }
0x10b8   :  { %v4970_v15 = vpop.f32.mrf.mxu0 }
0x10b9   :  { %v4802_v9 = vadd.f32 %v4970_v15, %v4911_v7 }
0x10ba   :  { %v4796_v29 = vpop.f32.mrf.mxu0 }
0x10bb   :  { %4836 = vst [vmem:[%s9156_s9 + $0x8] sm:$0xff] %v4802_v9  ;;  %v4797_v23 = vadd.f32 %v4911_v7, %v4796_v29 }
0x10bc   :  { %v4973_v1 = vpop.f32.mrf.mxu0 }
0x10bd   :  { %4835 = vst [vmem:[%s9156_s9] sm:$0xff] %v4797_v23  ;;  %v4812_v17 = vadd.f32 %v4973_v1, %v4911_v7 }
0x10be   :  { %v4806_v40 = vpop.f32.mrf.mxu0 }
0x10bf   :  { %4838 = vst [vmem:[%s9156_s9 + $0x18] sm:$0xff] %v4812_v17  ;;  %v4807_v37 = vadd.f32 %v4911_v7, %v4806_v40 }
0x10c0   :  { %v4976_v61 = vpop.f32.mrf.mxu0 }
0x10c1   :  { %4837 = vst [vmem:[%s9156_s9 + $0x10] sm:$0xff] %v4807_v37  ;;  %v4822_v39 = vadd.f32 %v4976_v61, %v4911_v7 }
0x10c2   :  { %v4816_v3 = vpop.f32.mrf.mxu0 }
0x10c3   :  { %4840 = vst [vmem:[%s9156_s9 + $0x28] sm:$0xff] %v4822_v39  ;;  %v4817_v53 = vadd.f32 %v4911_v7, %v4816_v3 }
0x10c4   :  { %v4979_v41 = vpop.f32.mrf.mxu0 }
0x10c5   :  { %4839 = vst [vmem:[%s9156_s9 + $0x20] sm:$0xff] %v4817_v53  ;;  %v4832_v31 = vadd.f32 %v4979_v41, %v4911_v7 }
0x10c6   :  { %v4826_v45 = vpop.f32.mrf.mxu0 }
0x10c7   :  { %4842 = vst [vmem:[%s9156_s9 + $0x38] sm:$0xff] %v4832_v31  ;;  %v4827_v54 = vadd.f32 %v4911_v7, %v4826_v45 }
0x10c9   :  { %4841 = vst [vmem:[%s9156_s9 + $0x30] sm:$0xff] %v4827_v54 }

</bundles_post_ra>
